<compile_context>
chip_gen: v7x
topology: tpu7x:2x2x1
jax: 0.10.0
libtpu: 0.0.40
codegen_flags: <defaults>
</compile_context>

<pallas_src>
import functools

import jax
import jax.numpy as jnp
from jax.experimental import pallas as pl
from jax.experimental.pallas import tpu as pltpu


def _bcc_kernel(pts_ref, gridT_ref, out_ref, *, R, kc, sub_n):
    """pts_ref: [SB, 3, sub_n], gridT_ref: [D, G] (latents^T), out_ref: [SB, D, sub_n]."""
    G = R * R * R
    SB = out_ref.shape[0]
    D = out_ref.shape[1]
    num_chunks = G // kc

    # Hoisted once per grid step: sublane iota shared by every sub-block / chunk.
    sub_iota = jax.lax.broadcasted_iota(jnp.int32, (kc, sub_n), 0)   # [kc, sub_n]

    def sub_block(sb, carry):
        pts = pts_ref[sb].astype(jnp.float32)            # [3, sub_n] lane vectors

        # scale by size_volume = [2R-1, 2R-1, R-1]
        x = pts[0:1, :] * (2.0 * R - 1.0)
        y = pts[1:2, :] * (2.0 * R - 1.0)
        z = pts[2:3, :] * (R - 1.0)

        a = (x + y) * 0.5
        b = (x + z) * 0.5
        c = (y + z) * 0.5
        fa = jnp.floor(a)
        fb = jnp.floor(b)
        fc = jnp.floor(c)
        a = a - fa
        b = b - fb
        c = c - fc

        # tetrahedron base vertex p1
        p1x = fa + fb - fc
        p1y = fa - fb + fc
        p1z = -fa + fb + fc

        # barycentric "sorting" = [1, max, min, sum-max-min]
        s1 = jnp.maximum(jnp.maximum(a, b), c)
        s2 = jnp.minimum(jnp.minimum(a, b), c)
        s3 = a + b + c - s1 - s2

        # reference uses |u-v| < 1e-18 on fp32 values, i.e. exact equality (keep f32)
        eq = lambda u, v: (u == v).astype(jnp.float32)
        e1b = eq(s1, b)
        e1c = eq(s1, c)
        e2a = eq(s2, a)
        e2b = eq(s2, b)

        p2x = p1x + 1.0
        p2y = p1y + 1.0
        p2z = p1z + 1.0

        p3x = p1x + 1.0 - 2.0 * e1c
        p3y = p1y + 1.0 - 2.0 * e1b
        p3z = p1z - 1.0 + 2.0 * e1b + 2.0 * e1c

        p4x = p1x + 2.0 - 2.0 * e2a - 2.0 * e2b
        p4y = p1y + 2.0 * e2b
        p4z = p1z + 2.0 * e2a

        # get_data_for_point: floor(p * [0.5, 0.5, 1.0]), clamp, flatten
        def flat_idx(px, py, pz):
            ix = jnp.clip(jnp.floor(px * 0.5), 0.0, R - 1.0).astype(jnp.int32)
            iy = jnp.clip(jnp.floor(py * 0.5), 0.0, R - 1.0).astype(jnp.int32)
            iz = jnp.clip(jnp.floor(pz), 0.0, R - 1.0).astype(jnp.int32)
            return ix * (R * R) + iy * R + iz            # [1, sub_n] int32

        # i*/c* computed up front -> a,b,c,fa..fc,p*,e* are dead before the matmuls
        i1 = flat_idx(p1x, p1y, p1z)
        i2 = flat_idx(p2x, p2y, p2z)
        i3 = flat_idx(p3x, p3y, p3z)
        i4 = flat_idx(p4x, p4y, p4z)

        c1 = 1.0 - s1
        c2 = s2
        c3 = s1 - s3
        c4 = s3 - s2

        # K-chunked transposed one-hot matmul: out = gridT @ W^T, f32 accumulate.
        acc = jnp.zeros((D, sub_n), jnp.float32)
        for ci in range(num_chunks):
            base = ci * kc
            # four cheap [1, sub_n] int subtracts instead of per-chunk iota + add
            j1 = i1 - base
            j2 = i2 - base
            j3 = i3 - base
            j4 = i4 - base
            # additive one-hot (indices may collide; coefficients must sum);
            # c_k is a [1, sub_n] operand -> sublane-broadcast select.
            wt = (jnp.where(sub_iota == j1, c1, 0.0)
                  + jnp.where(sub_iota == j2, c2, 0.0)
                  + jnp.where(sub_iota == j3, c3, 0.0)
                  + jnp.where(sub_iota == j4, c4, 0.0))  # [kc, sub_n] W^T chunk
            acc = acc + jnp.dot(gridT_ref[:, base:base + kc], wt,
                                preferred_element_type=jnp.float32,
                                precision=jax.lax.Precision.HIGHEST)

        out_ref[sb] = acc.astype(out_ref.dtype)          # lane-dense [D, sub_n] store
        return carry

    jax.lax.fori_loop(0, SB, sub_block, 0)


def bcc_encoding_forward(pts, latents, grid_resolution, *, tn=512,
                         return_blocked=False):
    """pts: [N, 3] f32, latents: [R^3, D] f32 -> [N, D] f32 (or blocked [NB, D, 128])."""
    N, pdim = pts.shape
    assert pdim == 3
    G, D = latents.shape
    R = grid_resolution
    assert G == R ** 3

    SUB = 128
    tn = max(SUB, (tn // SUB) * SUB)
    SB = tn // SUB

    kc = min(128, G)
    assert G % kc == 0

    # Tail/padding path: pad N up to a multiple of tn (padded points are zeros,
    # which go through the normal code path and are sliced off afterwards).
    N_pad = ((N + tn - 1) // tn) * tn
    if N_pad != N:
        pts = jnp.concatenate(
            [pts, jnp.zeros((N_pad - N, 3), pts.dtype)], axis=0)
    NB = N_pad // SUB                                    # number of 128-point sub-blocks

    pts_blk = pts.reshape(NB, SUB, 3).transpose(0, 2, 1)  # [NB, 3, 128] lane-major
    gridT = latents.T.astype(jnp.float32)                 # [D, G] pre-transposed table

    kernel = functools.partial(_bcc_kernel, R=R, kc=kc, sub_n=SUB)
    out_blk = pl.pallas_call(
        kernel,
        out_shape=jax.ShapeDtypeStruct((NB, D, SUB), jnp.float32),
        grid_spec=pltpu.PrefetchScalarGridSpec(
            num_scalar_prefetch=0,
            grid=(N_pad // tn,),
            in_specs=[
                pl.BlockSpec((SB, 3, SUB), lambda i: (i, 0, 0)),   # SB point sub-blocks
                pl.BlockSpec((D, G), lambda i: (0, 0)),            # latent table (resident)
            ],
            out_specs=pl.BlockSpec((SB, D, SUB), lambda i: (i, 0, 0)),
        ),
        compiler_params=pltpu.CompilerParams(
            dimension_semantics=("parallel",)),          # shards N across v7x cores
    )(pts_blk, gridT)

    if return_blocked:
        # Lane-dense blocked layout for consumers that can fuse the transpose.
        return out_blk
    out = out_blk.transpose(0, 2, 1).reshape(N_pad, D)
    return out[:N]


def bcc_reference(pts, latents, R):
    """Pure-JAX mirror of the PyTorch forward (pre_interpolation=True)."""
    scaled = pts * jnp.array([2 * R - 1, 2 * R - 1, R - 1], jnp.float32)
    x, y, z = scaled[:, 0], scaled[:, 1], scaled[:, 2]
    abc = jnp.stack([x + y, x + z, y + z], -1) * 0.5
    floors = jnp.floor(abc)
    abc = abc - floors
    fx, fy, fz = floors[:, 0], floors[:, 1], floors[:, 2]
    p1 = jnp.stack([fx + fy - fz, fx - fy + fz, -fx + fy + fz], -1)
    p2 = p1 + jnp.array([1., 1., 1.])
    p3 = p1 + jnp.array([1., 1., -1.])
    p4 = p1 + jnp.array([2., 0., 0.])
    s1 = abc.max(-1)
    s2 = abc.min(-1)
    s3 = abc.sum(-1) - s1 - s2
    close = lambda u, v: (jnp.abs(u - v) < 1e-18).astype(jnp.float32)[:, None]
    p3 = (p3 + close(s1, abc[:, 1]) * jnp.array([0., -2., 2.])
             + close(s1, abc[:, 2]) * jnp.array([-2., 0., 2.]))
    p4 = (p4 + close(s2, abc[:, 0]) * jnp.array([-2., 0., 2.])
             + close(s2, abc[:, 1]) * jnp.array([-2., 2., 0.]))

    def gather(p):
        q = jnp.floor(p * jnp.array([0.5, 0.5, 1.0]))
        q = jnp.clip(q, 0, R - 1).astype(jnp.int32)
        idx = q[:, 0] * R * R + q[:, 1] * R + q[:, 2]
        return latents[idx]

    d1, d2, d3, d4 = gather(p1), gather(p2), gather(p3), gather(p4)
    vals = jnp.stack([d1, d3 - d1, d2 - d4, d4 - d3], -2)      # [N, 4, D]
    interp = jnp.stack([jnp.ones_like(s1), s1, s2, s3], -1)    # [N, 4]
    return jnp.einsum('nji,nj->ni', vals, interp)


if __name__ == "__main__":
    R = 8          # grid_resolution
    D = 32         # feats_per_level_if_latent (latent_dim)
    N = 1000       # query points; exercises the padding/tail path (pads to 1024)

    key = jax.random.PRNGKey(0)
    k_pts, k_lat = jax.random.split(key)
    pts = jax.random.uniform(k_pts, (N, 3), dtype=jnp.float32)          # points in [0, 1)
    latents = jax.random.normal(k_lat, (R ** 3, D), dtype=jnp.float32) * 0.01

    out = bcc_encoding_forward(pts, latents, R, tn=512)
    out = jax.block_until_ready(out)

    ref = bcc_reference(pts, latents, R)
    assert out.shape == (N, D)
    err = float(jnp.max(jnp.abs(out - ref)))
    assert err < 1e-5, f"max abs error {err}"
    print("KERNEL_OK")
</pallas_src>

<mosaic_0001>
module attributes {stable_mosaic.version = 11 : i64} {
  func.func @_bcc_kernel(%arg0: i32, %arg1: memref<4x3x128xf32, #tpu.memory_space<vmem>>, %arg2: memref<32x512xf32, #tpu.memory_space<vmem>>, %arg3: memref<4x32x128xf32, #tpu.memory_space<vmem>>) attributes {dimension_semantics = [#tpu.dimension_semantics<parallel>], iteration_bounds = array<i64: 2>, scalar_prefetch = 0 : i64, scratch_operands = 0 : i64, tpu.core_type = #tpu.core_type<tc>, window_params = [{transform_indices = @transform_0, window_bounds = array<i64: 4, 3, 128>}, {pipeline_mode = #tpu.pipeline_mode<synchronous>, transform_indices = @transform_1, window_bounds = array<i64: 32, 512>}, {transform_indices = @transform_2, window_bounds = array<i64: 4, 32, 128>}]} {
    %0 = tpu.iota {dimensions = array<i32: 0>} : vector<128x128xi32>
    %c0_i32 = arith.constant 0 : i32
    %c4_i32 = arith.constant 4 : i32
    %1 = arith.addi %c0_i32, %c4_i32 : i32
    %c1_i32 = arith.constant 1 : i32
    scf.for %arg4 = %c0_i32 to %1 step %c1_i32  : i32 {
      %2 = arith.index_cast %arg4 : i32 to index
      %c0 = arith.constant 0 : index
      %c0_1 = arith.constant 0 : index
      %3 = vector.load %arg1[%2, %c0, %c0_1] : memref<4x3x128xf32, #tpu.memory_space<vmem>>, vector<1x3x128xf32>
      %4 = vector.shape_cast %3 : vector<1x3x128xf32> to vector<3x128xf32>
      %5 = vector.extract_strided_slice %4 {offsets = [0, 0], sizes = [1, 128], strides = [1, 1]} : vector<3x128xf32> to vector<1x128xf32>
      %cst = arith.constant 1.500000e+01 : f32
      %6 = vector.broadcast %cst : f32 to vector<1x128xf32>
      %7 = arith.mulf %5, %6 : vector<1x128xf32>
      %8 = vector.extract_strided_slice %4 {offsets = [1, 0], sizes = [1, 128], strides = [1, 1]} : vector<3x128xf32> to vector<1x128xf32>
      %cst_2 = arith.constant 1.500000e+01 : f32
      %9 = vector.broadcast %cst_2 : f32 to vector<1x128xf32>
      %10 = arith.mulf %8, %9 : vector<1x128xf32>
      %11 = vector.extract_strided_slice %4 {offsets = [2, 0], sizes = [1, 128], strides = [1, 1]} : vector<3x128xf32> to vector<1x128xf32>
      %cst_3 = arith.constant 7.000000e+00 : f32
      %12 = vector.broadcast %cst_3 : f32 to vector<1x128xf32>
      %13 = arith.mulf %11, %12 : vector<1x128xf32>
      %14 = arith.addf %7, %10 : vector<1x128xf32>
      %cst_4 = arith.constant 5.000000e-01 : f32
      %15 = vector.broadcast %cst_4 : f32 to vector<1x128xf32>
      %16 = arith.mulf %14, %15 : vector<1x128xf32>
      %17 = arith.addf %7, %13 : vector<1x128xf32>
      %cst_5 = arith.constant 5.000000e-01 : f32
      %18 = vector.broadcast %cst_5 : f32 to vector<1x128xf32>
      %19 = arith.mulf %17, %18 : vector<1x128xf32>
      %20 = arith.addf %10, %13 : vector<1x128xf32>
      %cst_6 = arith.constant 5.000000e-01 : f32
      %21 = vector.broadcast %cst_6 : f32 to vector<1x128xf32>
      %22 = arith.mulf %20, %21 : vector<1x128xf32>
      %23 = math.floor %16 : vector<1x128xf32>
      %24 = math.floor %19 : vector<1x128xf32>
      %25 = math.floor %22 : vector<1x128xf32>
      %26 = arith.subf %16, %23 : vector<1x128xf32>
      %27 = arith.subf %19, %24 : vector<1x128xf32>
      %28 = arith.subf %22, %25 : vector<1x128xf32>
      %29 = arith.addf %23, %24 : vector<1x128xf32>
      %30 = arith.subf %29, %25 : vector<1x128xf32>
      %31 = arith.subf %23, %24 : vector<1x128xf32>
      %32 = arith.addf %31, %25 : vector<1x128xf32>
      %cst_7 = arith.constant 0.000000e+00 : f32
      %33 = vector.broadcast %cst_7 : f32 to vector<1x128xf32>
      %34 = arith.subf %33, %23 : vector<1x128xf32>
      %35 = arith.addf %34, %24 : vector<1x128xf32>
      %36 = arith.addf %35, %25 : vector<1x128xf32>
      %37 = arith.maximumf %26, %27 : vector<1x128xf32>
      %38 = arith.maximumf %37, %28 : vector<1x128xf32>
      %39 = arith.minimumf %26, %27 : vector<1x128xf32>
      %40 = arith.minimumf %39, %28 : vector<1x128xf32>
      %41 = arith.addf %26, %27 : vector<1x128xf32>
      %42 = arith.addf %41, %28 : vector<1x128xf32>
      %43 = arith.subf %42, %38 : vector<1x128xf32>
      %44 = arith.subf %43, %40 : vector<1x128xf32>
      %45 = arith.cmpf oeq, %38, %27 : vector<1x128xf32>
      %46 = arith.extui %45 : vector<1x128xi1> to vector<1x128xi32>
      %47 = arith.sitofp %46 : vector<1x128xi32> to vector<1x128xf32>
      %48 = arith.cmpf oeq, %38, %28 : vector<1x128xf32>
      %49 = arith.extui %48 : vector<1x128xi1> to vector<1x128xi32>
      %50 = arith.sitofp %49 : vector<1x128xi32> to vector<1x128xf32>
      %51 = arith.cmpf oeq, %40, %26 : vector<1x128xf32>
      %52 = arith.extui %51 : vector<1x128xi1> to vector<1x128xi32>
      %53 = arith.sitofp %52 : vector<1x128xi32> to vector<1x128xf32>
      %54 = arith.cmpf oeq, %40, %27 : vector<1x128xf32>
      %55 = arith.extui %54 : vector<1x128xi1> to vector<1x128xi32>
      %56 = arith.sitofp %55 : vector<1x128xi32> to vector<1x128xf32>
      %cst_8 = arith.constant 1.000000e+00 : f32
      %57 = vector.broadcast %cst_8 : f32 to vector<1x128xf32>
      %58 = arith.addf %30, %57 : vector<1x128xf32>
      %cst_9 = arith.constant 1.000000e+00 : f32
      %59 = vector.broadcast %cst_9 : f32 to vector<1x128xf32>
      %60 = arith.addf %32, %59 : vector<1x128xf32>
      %cst_10 = arith.constant 1.000000e+00 : f32
      %61 = vector.broadcast %cst_10 : f32 to vector<1x128xf32>
      %62 = arith.addf %36, %61 : vector<1x128xf32>
      %cst_11 = arith.constant 1.000000e+00 : f32
      %63 = vector.broadcast %cst_11 : f32 to vector<1x128xf32>
      %64 = arith.addf %30, %63 : vector<1x128xf32>
      %cst_12 = arith.constant 2.000000e+00 : f32
      %65 = vector.broadcast %cst_12 : f32 to vector<1x128xf32>
      %66 = arith.mulf %65, %50 : vector<1x128xf32>
      %67 = arith.subf %64, %66 : vector<1x128xf32>
      %cst_13 = arith.constant 1.000000e+00 : f32
      %68 = vector.broadcast %cst_13 : f32 to vector<1x128xf32>
      %69 = arith.addf %32, %68 : vector<1x128xf32>
      %cst_14 = arith.constant 2.000000e+00 : f32
      %70 = vector.broadcast %cst_14 : f32 to vector<1x128xf32>
      %71 = arith.mulf %70, %47 : vector<1x128xf32>
      %72 = arith.subf %69, %71 : vector<1x128xf32>
      %cst_15 = arith.constant 1.000000e+00 : f32
      %73 = vector.broadcast %cst_15 : f32 to vector<1x128xf32>
      %74 = arith.subf %36, %73 : vector<1x128xf32>
      %cst_16 = arith.constant 2.000000e+00 : f32
      %75 = vector.broadcast %cst_16 : f32 to vector<1x128xf32>
      %76 = arith.mulf %75, %47 : vector<1x128xf32>
      %77 = arith.addf %74, %76 : vector<1x128xf32>
      %cst_17 = arith.constant 2.000000e+00 : f32
      %78 = vector.broadcast %cst_17 : f32 to vector<1x128xf32>
      %79 = arith.mulf %78, %50 : vector<1x128xf32>
      %80 = arith.addf %77, %79 : vector<1x128xf32>
      %cst_18 = arith.constant 2.000000e+00 : f32
      %81 = vector.broadcast %cst_18 : f32 to vector<1x128xf32>
      %82 = arith.addf %30, %81 : vector<1x128xf32>
      %cst_19 = arith.constant 2.000000e+00 : f32
      %83 = vector.broadcast %cst_19 : f32 to vector<1x128xf32>
      %84 = arith.mulf %83, %53 : vector<1x128xf32>
      %85 = arith.subf %82, %84 : vector<1x128xf32>
      %cst_20 = arith.constant 2.000000e+00 : f32
      %86 = vector.broadcast %cst_20 : f32 to vector<1x128xf32>
      %87 = arith.mulf %86, %56 : vector<1x128xf32>
      %88 = arith.subf %85, %87 : vector<1x128xf32>
      %cst_21 = arith.constant 2.000000e+00 : f32
      %89 = vector.broadcast %cst_21 : f32 to vector<1x128xf32>
      %90 = arith.mulf %89, %56 : vector<1x128xf32>
      %91 = arith.addf %32, %90 : vector<1x128xf32>
      %cst_22 = arith.constant 2.000000e+00 : f32
      %92 = vector.broadcast %cst_22 : f32 to vector<1x128xf32>
      %93 = arith.mulf %92, %53 : vector<1x128xf32>
      %94 = arith.addf %36, %93 : vector<1x128xf32>
      %cst_23 = arith.constant 5.000000e-01 : f32
      %95 = vector.broadcast %cst_23 : f32 to vector<1x128xf32>
      %96 = arith.mulf %30, %95 : vector<1x128xf32>
      %97 = math.floor %96 : vector<1x128xf32>
      %cst_24 = arith.constant 0.000000e+00 : f32
      %cst_25 = arith.constant 7.000000e+00 : f32
      %98 = vector.broadcast %cst_24 : f32 to vector<1x128xf32>
      %99 = arith.maximumf %98, %97 : vector<1x128xf32>
      %100 = vector.broadcast %cst_25 : f32 to vector<1x128xf32>
      %101 = arith.minimumf %100, %99 : vector<1x128xf32>
      %102 = arith.fptosi %101 : vector<1x128xf32> to vector<1x128xi32>
      %cst_26 = arith.constant 5.000000e-01 : f32
      %103 = vector.broadcast %cst_26 : f32 to vector<1x128xf32>
      %104 = arith.mulf %32, %103 : vector<1x128xf32>
      %105 = math.floor %104 : vector<1x128xf32>
      %cst_27 = arith.constant 0.000000e+00 : f32
      %cst_28 = arith.constant 7.000000e+00 : f32
      %106 = vector.broadcast %cst_27 : f32 to vector<1x128xf32>
      %107 = arith.maximumf %106, %105 : vector<1x128xf32>
      %108 = vector.broadcast %cst_28 : f32 to vector<1x128xf32>
      %109 = arith.minimumf %108, %107 : vector<1x128xf32>
      %110 = arith.fptosi %109 : vector<1x128xf32> to vector<1x128xi32>
      %111 = math.floor %36 : vector<1x128xf32>
      %cst_29 = arith.constant 0.000000e+00 : f32
      %cst_30 = arith.constant 7.000000e+00 : f32
      %112 = vector.broadcast %cst_29 : f32 to vector<1x128xf32>
      %113 = arith.maximumf %112, %111 : vector<1x128xf32>
      %114 = vector.broadcast %cst_30 : f32 to vector<1x128xf32>
      %115 = arith.minimumf %114, %113 : vector<1x128xf32>
      %116 = arith.fptosi %115 : vector<1x128xf32> to vector<1x128xi32>
      %c64_i32 = arith.constant 64 : i32
      %117 = vector.broadcast %c64_i32 : i32 to vector<1x128xi32>
      %118 = arith.muli %102, %117 : vector<1x128xi32>
      %c8_i32 = arith.constant 8 : i32
      %119 = vector.broadcast %c8_i32 : i32 to vector<1x128xi32>
      %120 = arith.muli %110, %119 : vector<1x128xi32>
      %121 = arith.addi %118, %120 : vector<1x128xi32>
      %122 = arith.addi %121, %116 : vector<1x128xi32>
      %cst_31 = arith.constant 5.000000e-01 : f32
      %123 = vector.broadcast %cst_31 : f32 to vector<1x128xf32>
      %124 = arith.mulf %58, %123 : vector<1x128xf32>
      %125 = math.floor %124 : vector<1x128xf32>
      %cst_32 = arith.constant 0.000000e+00 : f32
      %cst_33 = arith.constant 7.000000e+00 : f32
      %126 = vector.broadcast %cst_32 : f32 to vector<1x128xf32>
      %127 = arith.maximumf %126, %125 : vector<1x128xf32>
      %128 = vector.broadcast %cst_33 : f32 to vector<1x128xf32>
      %129 = arith.minimumf %128, %127 : vector<1x128xf32>
      %130 = arith.fptosi %129 : vector<1x128xf32> to vector<1x128xi32>
      %cst_34 = arith.constant 5.000000e-01 : f32
      %131 = vector.broadcast %cst_34 : f32 to vector<1x128xf32>
      %132 = arith.mulf %60, %131 : vector<1x128xf32>
      %133 = math.floor %132 : vector<1x128xf32>
      %cst_35 = arith.constant 0.000000e+00 : f32
      %cst_36 = arith.constant 7.000000e+00 : f32
      %134 = vector.broadcast %cst_35 : f32 to vector<1x128xf32>
      %135 = arith.maximumf %134, %133 : vector<1x128xf32>
      %136 = vector.broadcast %cst_36 : f32 to vector<1x128xf32>
      %137 = arith.minimumf %136, %135 : vector<1x128xf32>
      %138 = arith.fptosi %137 : vector<1x128xf32> to vector<1x128xi32>
      %139 = math.floor %62 : vector<1x128xf32>
      %cst_37 = arith.constant 0.000000e+00 : f32
      %cst_38 = arith.constant 7.000000e+00 : f32
      %140 = vector.broadcast %cst_37 : f32 to vector<1x128xf32>
      %141 = arith.maximumf %140, %139 : vector<1x128xf32>
      %142 = vector.broadcast %cst_38 : f32 to vector<1x128xf32>
      %143 = arith.minimumf %142, %141 : vector<1x128xf32>
      %144 = arith.fptosi %143 : vector<1x128xf32> to vector<1x128xi32>
      %c64_i32_39 = arith.constant 64 : i32
      %145 = vector.broadcast %c64_i32_39 : i32 to vector<1x128xi32>
      %146 = arith.muli %130, %145 : vector<1x128xi32>
      %c8_i32_40 = arith.constant 8 : i32
      %147 = vector.broadcast %c8_i32_40 : i32 to vector<1x128xi32>
      %148 = arith.muli %138, %147 : vector<1x128xi32>
      %149 = arith.addi %146, %148 : vector<1x128xi32>
      %150 = arith.addi %149, %144 : vector<1x128xi32>
      %cst_41 = arith.constant 5.000000e-01 : f32
      %151 = vector.broadcast %cst_41 : f32 to vector<1x128xf32>
      %152 = arith.mulf %67, %151 : vector<1x128xf32>
      %153 = math.floor %152 : vector<1x128xf32>
      %cst_42 = arith.constant 0.000000e+00 : f32
      %cst_43 = arith.constant 7.000000e+00 : f32
      %154 = vector.broadcast %cst_42 : f32 to vector<1x128xf32>
      %155 = arith.maximumf %154, %153 : vector<1x128xf32>
      %156 = vector.broadcast %cst_43 : f32 to vector<1x128xf32>
      %157 = arith.minimumf %156, %155 : vector<1x128xf32>
      %158 = arith.fptosi %157 : vector<1x128xf32> to vector<1x128xi32>
      %cst_44 = arith.constant 5.000000e-01 : f32
      %159 = vector.broadcast %cst_44 : f32 to vector<1x128xf32>
      %160 = arith.mulf %72, %159 : vector<1x128xf32>
      %161 = math.floor %160 : vector<1x128xf32>
      %cst_45 = arith.constant 0.000000e+00 : f32
      %cst_46 = arith.constant 7.000000e+00 : f32
      %162 = vector.broadcast %cst_45 : f32 to vector<1x128xf32>
      %163 = arith.maximumf %162, %161 : vector<1x128xf32>
      %164 = vector.broadcast %cst_46 : f32 to vector<1x128xf32>
      %165 = arith.minimumf %164, %163 : vector<1x128xf32>
      %166 = arith.fptosi %165 : vector<1x128xf32> to vector<1x128xi32>
      %167 = math.floor %80 : vector<1x128xf32>
      %cst_47 = arith.constant 0.000000e+00 : f32
      %cst_48 = arith.constant 7.000000e+00 : f32
      %168 = vector.broadcast %cst_47 : f32 to vector<1x128xf32>
      %169 = arith.maximumf %168, %167 : vector<1x128xf32>
      %170 = vector.broadcast %cst_48 : f32 to vector<1x128xf32>
      %171 = arith.minimumf %170, %169 : vector<1x128xf32>
      %172 = arith.fptosi %171 : vector<1x128xf32> to vector<1x128xi32>
      %c64_i32_49 = arith.constant 64 : i32
      %173 = vector.broadcast %c64_i32_49 : i32 to vector<1x128xi32>
      %174 = arith.muli %158, %173 : vector<1x128xi32>
      %c8_i32_50 = arith.constant 8 : i32
      %175 = vector.broadcast %c8_i32_50 : i32 to vector<1x128xi32>
      %176 = arith.muli %166, %175 : vector<1x128xi32>
      %177 = arith.addi %174, %176 : vector<1x128xi32>
      %178 = arith.addi %177, %172 : vector<1x128xi32>
      %cst_51 = arith.constant 5.000000e-01 : f32
      %179 = vector.broadcast %cst_51 : f32 to vector<1x128xf32>
      %180 = arith.mulf %88, %179 : vector<1x128xf32>
      %181 = math.floor %180 : vector<1x128xf32>
      %cst_52 = arith.constant 0.000000e+00 : f32
      %cst_53 = arith.constant 7.000000e+00 : f32
      %182 = vector.broadcast %cst_52 : f32 to vector<1x128xf32>
      %183 = arith.maximumf %182, %181 : vector<1x128xf32>
      %184 = vector.broadcast %cst_53 : f32 to vector<1x128xf32>
      %185 = arith.minimumf %184, %183 : vector<1x128xf32>
      %186 = arith.fptosi %185 : vector<1x128xf32> to vector<1x128xi32>
      %cst_54 = arith.constant 5.000000e-01 : f32
      %187 = vector.broadcast %cst_54 : f32 to vector<1x128xf32>
      %188 = arith.mulf %91, %187 : vector<1x128xf32>
      %189 = math.floor %188 : vector<1x128xf32>
      %cst_55 = arith.constant 0.000000e+00 : f32
      %cst_56 = arith.constant 7.000000e+00 : f32
      %190 = vector.broadcast %cst_55 : f32 to vector<1x128xf32>
      %191 = arith.maximumf %190, %189 : vector<1x128xf32>
      %192 = vector.broadcast %cst_56 : f32 to vector<1x128xf32>
      %193 = arith.minimumf %192, %191 : vector<1x128xf32>
      %194 = arith.fptosi %193 : vector<1x128xf32> to vector<1x128xi32>
      %195 = math.floor %94 : vector<1x128xf32>
      %cst_57 = arith.constant 0.000000e+00 : f32
      %cst_58 = arith.constant 7.000000e+00 : f32
      %196 = vector.broadcast %cst_57 : f32 to vector<1x128xf32>
      %197 = arith.maximumf %196, %195 : vector<1x128xf32>
      %198 = vector.broadcast %cst_58 : f32 to vector<1x128xf32>
      %199 = arith.minimumf %198, %197 : vector<1x128xf32>
      %200 = arith.fptosi %199 : vector<1x128xf32> to vector<1x128xi32>
      %c64_i32_59 = arith.constant 64 : i32
      %201 = vector.broadcast %c64_i32_59 : i32 to vector<1x128xi32>
      %202 = arith.muli %186, %201 : vector<1x128xi32>
      %c8_i32_60 = arith.constant 8 : i32
      %203 = vector.broadcast %c8_i32_60 : i32 to vector<1x128xi32>
      %204 = arith.muli %194, %203 : vector<1x128xi32>
      %205 = arith.addi %202, %204 : vector<1x128xi32>
      %206 = arith.addi %205, %200 : vector<1x128xi32>
      %cst_61 = arith.constant 1.000000e+00 : f32
      %207 = vector.broadcast %cst_61 : f32 to vector<1x128xf32>
      %208 = arith.subf %207, %38 : vector<1x128xf32>
      %209 = arith.subf %38, %44 : vector<1x128xf32>
      %210 = arith.subf %44, %40 : vector<1x128xf32>
      %cst_62 = arith.constant 0.000000e+00 : f32
      %211 = vector.broadcast %cst_62 : f32 to vector<32x128xf32>
      %c0_i32_63 = arith.constant 0 : i32
      %212 = vector.broadcast %c0_i32_63 : i32 to vector<1x128xi32>
      %213 = arith.subi %122, %212 : vector<1x128xi32>
      %c0_i32_64 = arith.constant 0 : i32
      %214 = vector.broadcast %c0_i32_64 : i32 to vector<1x128xi32>
      %215 = arith.subi %150, %214 : vector<1x128xi32>
      %c0_i32_65 = arith.constant 0 : i32
      %216 = vector.broadcast %c0_i32_65 : i32 to vector<1x128xi32>
      %217 = arith.subi %178, %216 : vector<1x128xi32>
      %c0_i32_66 = arith.constant 0 : i32
      %218 = vector.broadcast %c0_i32_66 : i32 to vector<1x128xi32>
      %219 = arith.subi %206, %218 : vector<1x128xi32>
      %220 = vector.broadcast %213 : vector<1x128xi32> to vector<128x128xi32>
      %221 = arith.cmpi eq, %0, %220 : vector<128x128xi32>
      %cst_67 = arith.constant 0.000000e+00 : f32
      %222 = vector.shape_cast %208 : vector<1x128xf32> to vector<1x128xf32>
      %223 = vector.broadcast %222 : vector<1x128xf32> to vector<128x128xf32>
      %224 = vector.broadcast %cst_67 : f32 to vector<128x128xf32>
      %225 = arith.select %221, %223, %224 : vector<128x128xi1>, vector<128x128xf32>
      %226 = vector.broadcast %215 : vector<1x128xi32> to vector<128x128xi32>
      %227 = arith.cmpi eq, %0, %226 : vector<128x128xi32>
      %cst_68 = arith.constant 0.000000e+00 : f32
      %228 = vector.shape_cast %40 : vector<1x128xf32> to vector<1x128xf32>
      %229 = vector.broadcast %228 : vector<1x128xf32> to vector<128x128xf32>
      %230 = vector.broadcast %cst_68 : f32 to vector<128x128xf32>
      %231 = arith.select %227, %229, %230 : vector<128x128xi1>, vector<128x128xf32>
      %232 = arith.addf %225, %231 : vector<128x128xf32>
      %233 = vector.broadcast %217 : vector<1x128xi32> to vector<128x128xi32>
      %234 = arith.cmpi eq, %0, %233 : vector<128x128xi32>
      %cst_69 = arith.constant 0.000000e+00 : f32
      %235 = vector.shape_cast %209 : vector<1x128xf32> to vector<1x128xf32>
      %236 = vector.broadcast %235 : vector<1x128xf32> to vector<128x128xf32>
      %237 = vector.broadcast %cst_69 : f32 to vector<128x128xf32>
      %238 = arith.select %234, %236, %237 : vector<128x128xi1>, vector<128x128xf32>
      %239 = arith.addf %232, %238 : vector<128x128xf32>
      %240 = vector.broadcast %219 : vector<1x128xi32> to vector<128x128xi32>
      %241 = arith.cmpi eq, %0, %240 : vector<128x128xi32>
      %cst_70 = arith.constant 0.000000e+00 : f32
      %242 = vector.shape_cast %210 : vector<1x128xf32> to vector<1x128xf32>
      %243 = vector.broadcast %242 : vector<1x128xf32> to vector<128x128xf32>
      %244 = vector.broadcast %cst_70 : f32 to vector<128x128xf32>
      %245 = arith.select %241, %243, %244 : vector<128x128xi1>, vector<128x128xf32>
      %246 = arith.addf %239, %245 : vector<128x128xf32>
      %c0_71 = arith.constant 0 : index
      %c0_72 = arith.constant 0 : index
      %247 = vector.load %arg2[%c0_71, %c0_72] : memref<32x512xf32, #tpu.memory_space<vmem>>, vector<32x128xf32>
      %cst_73 = arith.constant dense<0.000000e+00> : vector<32x128xf32>
      %248 = tpu.matmul %247, %246, %cst_73 {dimension_numbers = #tpu.dot_dimension_numbers<[1], [0], [0], [1], [0, 0, 1, 1], [], []>, precision = #tpu.contract_precision<fp32>} : vector<32x128xf32>, vector<128x128xf32>, vector<32x128xf32> -> vector<32x128xf32>
      %249 = arith.addf %211, %248 : vector<32x128xf32>
      %c128_i32 = arith.constant 128 : i32
      %250 = vector.broadcast %c128_i32 : i32 to vector<1x128xi32>
      %251 = arith.subi %122, %250 : vector<1x128xi32>
      %c128_i32_74 = arith.constant 128 : i32
      %252 = vector.broadcast %c128_i32_74 : i32 to vector<1x128xi32>
      %253 = arith.subi %150, %252 : vector<1x128xi32>
      %c128_i32_75 = arith.constant 128 : i32
      %254 = vector.broadcast %c128_i32_75 : i32 to vector<1x128xi32>
      %255 = arith.subi %178, %254 : vector<1x128xi32>
      %c128_i32_76 = arith.constant 128 : i32
      %256 = vector.broadcast %c128_i32_76 : i32 to vector<1x128xi32>
      %257 = arith.subi %206, %256 : vector<1x128xi32>
      %258 = vector.broadcast %251 : vector<1x128xi32> to vector<128x128xi32>
      %259 = arith.cmpi eq, %0, %258 : vector<128x128xi32>
      %cst_77 = arith.constant 0.000000e+00 : f32
      %260 = vector.shape_cast %208 : vector<1x128xf32> to vector<1x128xf32>
      %261 = vector.broadcast %260 : vector<1x128xf32> to vector<128x128xf32>
      %262 = vector.broadcast %cst_77 : f32 to vector<128x128xf32>
      %263 = arith.select %259, %261, %262 : vector<128x128xi1>, vector<128x128xf32>
      %264 = vector.broadcast %253 : vector<1x128xi32> to vector<128x128xi32>
      %265 = arith.cmpi eq, %0, %264 : vector<128x128xi32>
      %cst_78 = arith.constant 0.000000e+00 : f32
      %266 = vector.shape_cast %40 : vector<1x128xf32> to vector<1x128xf32>
      %267 = vector.broadcast %266 : vector<1x128xf32> to vector<128x128xf32>
      %268 = vector.broadcast %cst_78 : f32 to vector<128x128xf32>
      %269 = arith.select %265, %267, %268 : vector<128x128xi1>, vector<128x128xf32>
      %270 = arith.addf %263, %269 : vector<128x128xf32>
      %271 = vector.broadcast %255 : vector<1x128xi32> to vector<128x128xi32>
      %272 = arith.cmpi eq, %0, %271 : vector<128x128xi32>
      %cst_79 = arith.constant 0.000000e+00 : f32
      %273 = vector.shape_cast %209 : vector<1x128xf32> to vector<1x128xf32>
      %274 = vector.broadcast %273 : vector<1x128xf32> to vector<128x128xf32>
      %275 = vector.broadcast %cst_79 : f32 to vector<128x128xf32>
      %276 = arith.select %272, %274, %275 : vector<128x128xi1>, vector<128x128xf32>
      %277 = arith.addf %270, %276 : vector<128x128xf32>
      %278 = vector.broadcast %257 : vector<1x128xi32> to vector<128x128xi32>
      %279 = arith.cmpi eq, %0, %278 : vector<128x128xi32>
      %cst_80 = arith.constant 0.000000e+00 : f32
      %280 = vector.shape_cast %210 : vector<1x128xf32> to vector<1x128xf32>
      %281 = vector.broadcast %280 : vector<1x128xf32> to vector<128x128xf32>
      %282 = vector.broadcast %cst_80 : f32 to vector<128x128xf32>
      %283 = arith.select %279, %281, %282 : vector<128x128xi1>, vector<128x128xf32>
      %284 = arith.addf %277, %283 : vector<128x128xf32>
      %c0_81 = arith.constant 0 : index
      %c128 = arith.constant 128 : index
      %285 = vector.load %arg2[%c0_81, %c128] : memref<32x512xf32, #tpu.memory_space<vmem>>, vector<32x128xf32>
      %cst_82 = arith.constant dense<0.000000e+00> : vector<32x128xf32>
      %286 = tpu.matmul %285, %284, %cst_82 {dimension_numbers = #tpu.dot_dimension_numbers<[1], [0], [0], [1], [0, 0, 1, 1], [], []>, precision = #tpu.contract_precision<fp32>} : vector<32x128xf32>, vector<128x128xf32>, vector<32x128xf32> -> vector<32x128xf32>
      %287 = arith.addf %249, %286 : vector<32x128xf32>
      %c256_i32 = arith.constant 256 : i32
      %288 = vector.broadcast %c256_i32 : i32 to vector<1x128xi32>
      %289 = arith.subi %122, %288 : vector<1x128xi32>
      %c256_i32_83 = arith.constant 256 : i32
      %290 = vector.broadcast %c256_i32_83 : i32 to vector<1x128xi32>
      %291 = arith.subi %150, %290 : vector<1x128xi32>
      %c256_i32_84 = arith.constant 256 : i32
      %292 = vector.broadcast %c256_i32_84 : i32 to vector<1x128xi32>
      %293 = arith.subi %178, %292 : vector<1x128xi32>
      %c256_i32_85 = arith.constant 256 : i32
      %294 = vector.broadcast %c256_i32_85 : i32 to vector<1x128xi32>
      %295 = arith.subi %206, %294 : vector<1x128xi32>
      %296 = vector.broadcast %289 : vector<1x128xi32> to vector<128x128xi32>
      %297 = arith.cmpi eq, %0, %296 : vector<128x128xi32>
      %cst_86 = arith.constant 0.000000e+00 : f32
      %298 = vector.shape_cast %208 : vector<1x128xf32> to vector<1x128xf32>
      %299 = vector.broadcast %298 : vector<1x128xf32> to vector<128x128xf32>
      %300 = vector.broadcast %cst_86 : f32 to vector<128x128xf32>
      %301 = arith.select %297, %299, %300 : vector<128x128xi1>, vector<128x128xf32>
      %302 = vector.broadcast %291 : vector<1x128xi32> to vector<128x128xi32>
      %303 = arith.cmpi eq, %0, %302 : vector<128x128xi32>
      %cst_87 = arith.constant 0.000000e+00 : f32
      %304 = vector.shape_cast %40 : vector<1x128xf32> to vector<1x128xf32>
      %305 = vector.broadcast %304 : vector<1x128xf32> to vector<128x128xf32>
      %306 = vector.broadcast %cst_87 : f32 to vector<128x128xf32>
      %307 = arith.select %303, %305, %306 : vector<128x128xi1>, vector<128x128xf32>
      %308 = arith.addf %301, %307 : vector<128x128xf32>
      %309 = vector.broadcast %293 : vector<1x128xi32> to vector<128x128xi32>
      %310 = arith.cmpi eq, %0, %309 : vector<128x128xi32>
      %cst_88 = arith.constant 0.000000e+00 : f32
      %311 = vector.shape_cast %209 : vector<1x128xf32> to vector<1x128xf32>
      %312 = vector.broadcast %311 : vector<1x128xf32> to vector<128x128xf32>
      %313 = vector.broadcast %cst_88 : f32 to vector<128x128xf32>
      %314 = arith.select %310, %312, %313 : vector<128x128xi1>, vector<128x128xf32>
      %315 = arith.addf %308, %314 : vector<128x128xf32>
      %316 = vector.broadcast %295 : vector<1x128xi32> to vector<128x128xi32>
      %317 = arith.cmpi eq, %0, %316 : vector<128x128xi32>
      %cst_89 = arith.constant 0.000000e+00 : f32
      %318 = vector.shape_cast %210 : vector<1x128xf32> to vector<1x128xf32>
      %319 = vector.broadcast %318 : vector<1x128xf32> to vector<128x128xf32>
      %320 = vector.broadcast %cst_89 : f32 to vector<128x128xf32>
      %321 = arith.select %317, %319, %320 : vector<128x128xi1>, vector<128x128xf32>
      %322 = arith.addf %315, %321 : vector<128x128xf32>
      %c0_90 = arith.constant 0 : index
      %c256 = arith.constant 256 : index
      %323 = vector.load %arg2[%c0_90, %c256] : memref<32x512xf32, #tpu.memory_space<vmem>>, vector<32x128xf32>
      %cst_91 = arith.constant dense<0.000000e+00> : vector<32x128xf32>
      %324 = tpu.matmul %323, %322, %cst_91 {dimension_numbers = #tpu.dot_dimension_numbers<[1], [0], [0], [1], [0, 0, 1, 1], [], []>, precision = #tpu.contract_precision<fp32>} : vector<32x128xf32>, vector<128x128xf32>, vector<32x128xf32> -> vector<32x128xf32>
      %325 = arith.addf %287, %324 : vector<32x128xf32>
      %c384_i32 = arith.constant 384 : i32
      %326 = vector.broadcast %c384_i32 : i32 to vector<1x128xi32>
      %327 = arith.subi %122, %326 : vector<1x128xi32>
      %c384_i32_92 = arith.constant 384 : i32
      %328 = vector.broadcast %c384_i32_92 : i32 to vector<1x128xi32>
      %329 = arith.subi %150, %328 : vector<1x128xi32>
      %c384_i32_93 = arith.constant 384 : i32
      %330 = vector.broadcast %c384_i32_93 : i32 to vector<1x128xi32>
      %331 = arith.subi %178, %330 : vector<1x128xi32>
      %c384_i32_94 = arith.constant 384 : i32
      %332 = vector.broadcast %c384_i32_94 : i32 to vector<1x128xi32>
      %333 = arith.subi %206, %332 : vector<1x128xi32>
      %334 = vector.broadcast %327 : vector<1x128xi32> to vector<128x128xi32>
      %335 = arith.cmpi eq, %0, %334 : vector<128x128xi32>
      %cst_95 = arith.constant 0.000000e+00 : f32
      %336 = vector.shape_cast %208 : vector<1x128xf32> to vector<1x128xf32>
      %337 = vector.broadcast %336 : vector<1x128xf32> to vector<128x128xf32>
      %338 = vector.broadcast %cst_95 : f32 to vector<128x128xf32>
      %339 = arith.select %335, %337, %338 : vector<128x128xi1>, vector<128x128xf32>
      %340 = vector.broadcast %329 : vector<1x128xi32> to vector<128x128xi32>
      %341 = arith.cmpi eq, %0, %340 : vector<128x128xi32>
      %cst_96 = arith.constant 0.000000e+00 : f32
      %342 = vector.shape_cast %40 : vector<1x128xf32> to vector<1x128xf32>
      %343 = vector.broadcast %342 : vector<1x128xf32> to vector<128x128xf32>
      %344 = vector.broadcast %cst_96 : f32 to vector<128x128xf32>
      %345 = arith.select %341, %343, %344 : vector<128x128xi1>, vector<128x128xf32>
      %346 = arith.addf %339, %345 : vector<128x128xf32>
      %347 = vector.broadcast %331 : vector<1x128xi32> to vector<128x128xi32>
      %348 = arith.cmpi eq, %0, %347 : vector<128x128xi32>
      %cst_97 = arith.constant 0.000000e+00 : f32
      %349 = vector.shape_cast %209 : vector<1x128xf32> to vector<1x128xf32>
      %350 = vector.broadcast %349 : vector<1x128xf32> to vector<128x128xf32>
      %351 = vector.broadcast %cst_97 : f32 to vector<128x128xf32>
      %352 = arith.select %348, %350, %351 : vector<128x128xi1>, vector<128x128xf32>
      %353 = arith.addf %346, %352 : vector<128x128xf32>
      %354 = vector.broadcast %333 : vector<1x128xi32> to vector<128x128xi32>
      %355 = arith.cmpi eq, %0, %354 : vector<128x128xi32>
      %cst_98 = arith.constant 0.000000e+00 : f32
      %356 = vector.shape_cast %210 : vector<1x128xf32> to vector<1x128xf32>
      %357 = vector.broadcast %356 : vector<1x128xf32> to vector<128x128xf32>
      %358 = vector.broadcast %cst_98 : f32 to vector<128x128xf32>
      %359 = arith.select %355, %357, %358 : vector<128x128xi1>, vector<128x128xf32>
      %360 = arith.addf %353, %359 : vector<128x128xf32>
      %c0_99 = arith.constant 0 : index
      %c384 = arith.constant 384 : index
      %361 = vector.load %arg2[%c0_99, %c384] : memref<32x512xf32, #tpu.memory_space<vmem>>, vector<32x128xf32>
      %cst_100 = arith.constant dense<0.000000e+00> : vector<32x128xf32>
      %362 = tpu.matmul %361, %360, %cst_100 {dimension_numbers = #tpu.dot_dimension_numbers<[1], [0], [0], [1], [0, 0, 1, 1], [], []>, precision = #tpu.contract_precision<fp32>} : vector<32x128xf32>, vector<128x128xf32>, vector<32x128xf32> -> vector<32x128xf32>
      %363 = arith.addf %325, %362 : vector<32x128xf32>
      %364 = arith.index_cast %arg4 : i32 to index
      %c0_101 = arith.constant 0 : index
      %c0_102 = arith.constant 0 : index
      %365 = vector.load %arg3[%364, %c0_101, %c0_102] : memref<4x32x128xf32, #tpu.memory_space<vmem>>, vector<1x32x128xf32>
      %366 = vector.shape_cast %365 : vector<1x32x128xf32> to vector<32x128xf32>
      %367 = vector.shape_cast %363 : vector<32x128xf32> to vector<1x32x128xf32>
      tpu.vector_store %arg3[%364, %c0_101, %c0_102], %367 {strides = array<i32>} : memref<4x32x128xf32, #tpu.memory_space<vmem>>, vector<1x32x128xf32>,
    }
    %c4_i32_0 = arith.constant 4 : i32
    return
  }
  func.func @transform_0(%arg0: i32) -> (i32, i32, i32) {
    %c0_i32 = arith.constant 0 : i32
    %c0_i32_0 = arith.constant 0 : i32
    %c0_i32_1 = arith.constant 0 : i32
    return %arg0, %c0_i32, %c0_i32_0 : i32, i32, i32
  }
  func.func @transform_1(%arg0: i32) -> (i32, i32) {
    %c0_i32 = arith.constant 0 : i32
    %c0_i32_0 = arith.constant 0 : i32
    %c0_i32_1 = arith.constant 0 : i32
    return %c0_i32, %c0_i32_0 : i32, i32
  }
  func.func @transform_2(%arg0: i32) -> (i32, i32, i32) {
    %c0_i32 = arith.constant 0 : i32
    %c0_i32_0 = arith.constant 0 : i32
    %c0_i32_1 = arith.constant 0 : i32
    return %arg0, %c0_i32, %c0_i32_0 : i32, i32, i32
  }
}

</mosaic_0001>

<bundles_post_ra>
// kernel: tpu_custom_call.1
= control target key start
LH: loop header
LB: loop body
LE: loop exit
PB: predicated region body
PF: predicated region fallthrough
CT: control target
= control target key end

     0   :  { %7 = vsyncpa [#allocation3], 0  ;;  %s9870_s0 = inlined_call_operand.vmem [shape: f32[8,3,128], index: 0, kind: input, shape index: {}]   ;;  %s9871_s1 = inlined_call_operand.hbm [shape: f32[32,512], index: 1, kind: input, shape index: {}]   ;;  %s9872_s2 = inlined_call_operand.hbm [shape: f32[8,32,128], index: 2, kind: output, shape index: {}]  }
   0x1   :  { %8 = vsyncpa [#allocation4], 0 }
   0x2   :  { %10 = vsyncpa [#allocation4 + $0x1], 0  ;;  %s6838_s9 = smov 0   ;;  %s6840_s10 = smov 0  }
   0x3   :  { %s6842_s11 = smov 0   ;;  %s6844_s12 = smov 0  }
   0x4 LB: > { %s6859_s13 = sadd.s32 4294967295, %s6810_s12   ;;  %s4337_s14 = sadd.s32 4294967294, %s6810_s12   ;;  %s6810_s12 = sphi %s6844_s12, %s10642_s12   ;;  %s6806_s11 = sphi %s6842_s11, %s10641_s11   ;;  %s6802_s10 = sphi %s6840_s10, %s10640_s10   ;;  %s6798_s9 = sphi %s6838_s9, %s10639_s9  }
   0x5   : > { %s6863_s15 = sadd.s32 1, %s6810_s12   ;;  %s70_s16 = sadd.s32 1, %s6806_s11 }
   0x6   : > { %s67_s17 = ssub.s32 %s6810_s12, %s6863_s15  ;;  %p80_p0 = scmp.ne.s32.totalorder %s6806_s11, %s6802_s10 }
   0x7   : > { %p68_p1 = scmp.eq.s32.totalorder %s67_s17, 0  ;;  %p81_p2 = scmp.eq.s32.totalorder %s6859_s13, 1 }
   0x8   : > { %p86_p3 = scmp.ne.s32.totalorder %s6802_s10, %s6798_s9  ;;  %p87_p4 = scmp.eq.s32.totalorder %s4337_s14, 1 }
   0x9   : > { %s6874_s18 = scalar_select %p68_p1, %s6806_s11, %s70_s16  }
   0xa   : > { %p6876_p5 = por %p81_p2, %p80_p0  ;;  %p6880_p6 = por %p87_p4, %p86_p3 }
   0xb   : > { %p4338_p7 = scmp.ge.s32.totalorder %s6810_s12, 1  ;;  %p94_p8 = scmp.lt.s32.totalorder %s6810_s12, 3 }
   0xc   : > { %s10170_s19 = scalar_select %p6876_p5, 1, 0 }
   0xd   : > { %s10171_s20 = scalar_select %p6880_p6, 1, 0 }
   0xe   : > { %p9873_p9 = scmp.eq.s32.totalorder %s6859_s13, 0  ;;  %p6887_p10 = pnand %p4338_p7, %p94_p8 }
   0xf   : > { %s6816_s22 = smov [#allocation2]   ;;  %s6712_s27 = scalar_lea.hbm %s9871_s1, 2048 }
  0x10   : > { %s10172_s21 = scalar_select %p6887_p10, 1, 0 }
  0x11   : > { %s106_s23 = sshll.u32 %s6816_s22, 4  ;;  %p6655_p11 = pneg %p6887_p10  ;;  %s107_s23 = int_to_ptr.vmem [resolvable:$true] %s106_s23 }
  0x12   : > { %p6713_p13 = scmp.ne.s32.totalorder %s9871_s1, %s6712_s27  ;;  %p6719_p3 = scmp.lt.u32.totalorder %s6712_s27, %s9871_s1 }
  0x13   : > { %p6895_p12 = pnand %p9873_p9, %p6655_p11 }
  0x15   : > { %p6714_p0 = pneg %p6895_p12 }
  0x17   : > { %p6715_p1 = pnand %p6714_p0, %p6713_p13 }
  0x19   : > { %p6716_p2 = pneg %p6715_p1 }
  0x1b   : > { %p6721_p4 = pnand %p6719_p3, %p6716_p2 }
  0x1d   : > { %6724 = shalt.err (!%p6721_p4)
}
  0x1e   : > { %s6725_s4 = scalar_lea.vmem %s107_s23, 2048  ;;  %p6733_p9 = scmp.lt.s32.totalorder %s107_s23, %s107_s23 }
  0x1f   : > { %p6726_p7 = scmp.ne.s32.totalorder %s107_s23, %s6725_s4  ;;  %p6734_p6 = scmp.lt.s32.totalorder %s6725_s4, %s6725_s4 }
  0x21   : > { %p6728_p8 = pnand %p6726_p7, %p6714_p0  ;;  %p6735_p5 = por %p6734_p6, %p6733_p9 }
  0x23   : > { %p6729_p11 = pneg %p6728_p8 }
  0x25   : > { %p6736_p10 = pnand %p6735_p5, %p6729_p11 }
  0x27   : > { %6739 = shalt.err (!%p6736_p10)
}
  0x28   : > { %s6817_s5 = smov 512   ;;  %s6818_s6 = smov 32  }
  0x29   : > { %6658 = dma.hbm_to_vmem [thread:$0]  (!%p6895_p12), %s9871_s1, 2048, %s107_s23, [#allocation3], %s6817_s5, %s6817_s5, %s6818_s6  }
  0x2a   : > { %p10174_p13 = scmp.ne.s32.totalorder %s10172_s21, 0 }
  0x2c   : > { %131 = sbr.rel (%p10174_p13) target bundleno = 848 (0x350), region = 28 }
  0x33   : > { %p10175_p1 = scmp.eq.s32.totalorder %s6859_s13, 0 }
  0x35   : > { %6789 = dma.done.wait (%p10175_p1), [#allocation3], 2048   ;;  %p10176_p0 = pmov %p10175_p1 }
  0x36   : > { %s150_s14 = sand.u32 1, %s6802_s10   ;;  %s4344_s16 = sshll.u32 %s6859_s13, 2  ;;  %v160_v0 = vlaneseq }
  0x37   : > { %6791 = vsyncadd (%p10176_p0), [#allocation3], 4294965248  ;;  %s6925_s17 = sshll.u32 %s150_s14, 7  ;;  %p154_p5 = scmp.lt.s32.totalorder %s4344_s16, 7 }
  0x38   : > { %v6927_v1 = vshrl.u32 %v160_v0, 7  ;;  %s152_s25 = scalar_lea.vmem [#allocation5], %s6925_s17  ;;  %s6980_s26 = smov 0  }
  0x39   : > { %s10644_s16 = smov (!%p154_p5, %s4344_s16), 7 }
  0x3a   : > { %10177 = vst [vmem:[#allocation8_spill] sm:$0xff] %v6927_v1  ;;  %v6930_v2 = vadd.s32 8, %v6927_v1  ;;  %v6933_v3 = vadd.s32 16, %v6927_v1  ;;  %v6936_v4 = vadd.s32 24, %v6927_v1  ;;  %v6939_v5 = vadd.s32 32, %v6927_v1  ;;  %s4345_s21 = sshll.u32 %s10644_s16, 2 }
  0x3b   : > { %v6942_v6 = vadd.s32 40, %v6927_v1  ;;  %v6945_v7 = vadd.s32 48, %v6927_v1  ;;  %v6948_v8 = vadd.s32 56, %v6927_v1  ;;  %v6951_v9 = vadd.s32 64, %v6927_v1  ;;  %s6956_s24 = scalar_lea.vmem %s9870_s0, %s4345_s21 }
  0x3c   : > { %10178 = vst [vmem:[#allocation9_spill] sm:$0xff] %v6930_v2  ;;  %10179 = vst [vmem:[#allocation10_spill] sm:$0xff] %v6933_v3  ;;  %v6959_v10 = vadd.s32 72, %v6927_v1  ;;  %v6962_v11 = vadd.s32 80, %v6927_v1  ;;  %v6965_v12 = vadd.s32 88, %v6927_v1  ;;  %v6968_v13 = vadd.s32 96, %v6927_v1 }
  0x3d   : > { %10180 = vst [vmem:[#allocation11_spill] sm:$0xff] %v6936_v4  ;;  %10181 = vst [vmem:[#allocation12_spill] sm:$0xff] %v6939_v5  ;;  %v6971_v14 = vadd.s32 104, %v6927_v1  ;;  %v6974_v15 = vadd.s32 112, %v6927_v1  ;;  %v6977_v16 = vadd.s32 120, %v6927_v1 }
  0x3e   : > { %10182 = vst [vmem:[#allocation13_spill] sm:$0xff] %v6942_v6  ;;  %10183 = vst [vmem:[#allocation14_spill] sm:$0xff] %v6945_v7 }
  0x3f   : > { %10184 = vst [vmem:[#allocation15_spill] sm:$0xff] %v6948_v8  ;;  %10185 = vst [vmem:[#allocation16_spill] sm:$0xff] %v6951_v9 }
  0x40   : > { %10186 = vst [vmem:[#allocation17_spill] sm:$0xff] %v6959_v10  ;;  %10187 = vst [vmem:[#allocation18_spill] sm:$0xff] %v6962_v11 }
  0x41   : > { %10188 = vst [vmem:[#allocation19_spill] sm:$0xff] %v6965_v12  ;;  %10189 = vst [vmem:[#allocation20_spill] sm:$0xff] %v6968_v13 }
  0x42   : > { %10190 = vst [vmem:[#allocation21_spill] sm:$0xff] %v6971_v14  ;;  %10191 = vst [vmem:[#allocation22_spill] sm:$0xff] %v6974_v15 }
  0x43   : > { %10192 = vst [vmem:[#allocation23_spill] sm:$0xff] %v6977_v16 }
  0x44 LB: >> { %v10193_v1 = vld [vmem:[#allocation8_spill] sm:$0xff]  ;;  %v10194_v2 = vld [vmem:[#allocation9_spill] sm:$0xff]  ;;  %v10195_v3 = vld [vmem:[#allocation10_spill] sm:$0xff]  ;;  %s4346_s27 = sshll.u32 %s6814_s26, 2  ;;  %v6819_v55 = vmov 0.0   ;;  %s4364_s29 = sshll.u32 %s6814_s26, 5  ;;  %s6814_s26 = sphi %s6980_s26, %s182_s26  }
  0x45   : >> { %v10196_v4 = vld [vmem:[#allocation11_spill] sm:$0xff]  ;;  %v10205_v5 = vld [vmem:[#allocation12_spill] sm:$0xff]  ;;  %v10206_v7 = vld [vmem:[#allocation14_spill] sm:$0xff]  ;;  %s184_s28 = scalar_lea.vmem %s6956_s24, %s4346_s27  ;;  %v6992_v49 = vsub.s32 0, %v10193_v1  ;;  %s4234_s30 = scalar_lea.vmem %s152_s25, %s4364_s29 [#allocation5] }
  0x46   : >> { %v10203_v9 = vld [vmem:[#allocation16_spill] sm:$0xff]  ;;  %v10207_v8 = vld [vmem:[#allocation15_spill] sm:$0xff]  ;;  %v10208_v6 = vld [vmem:[#allocation13_spill] sm:$0xff]  ;;  %s182_s26 = sadd.s32 1, %s6814_s26  }
  0x47   : >> { %v10201_v11 = vld [vmem:[#allocation18_spill] sm:$0xff]  ;;  %v10204_v10 = vld [vmem:[#allocation17_spill] sm:$0xff]  ;;  %v185_v17 = vld [vmem:[%s184_s28] sm:$0x7]  ;;  %p179_p6 = scmp.ge.s32.totalorder %s182_s26, 4  }
  0x48   : >> { %v10198_v13 = vld [vmem:[#allocation20_spill] sm:$0xff]  ;;  %v10202_v12 = vld [vmem:[#allocation19_spill] sm:$0xff]  ;;  %v186_v18 = vmul.f32 15.0, %v185_v17  ;;  %v187_v19 = vmul.f32 7.0, %v185_v17  ;;  %s4372_s3 = sshll.u32 (%p179_p6), %s6859_s13, 11  ;;  %s4254_s7 = sshll.u32 (%p179_p6), %s152_s25, 4  ;;  %s9825_s7 = int_to_ptr.vmem [resolvable:$true] %s4254_s7 }
  0x49   : >> { %v10199_v15 = vld [vmem:[#allocation22_spill] sm:$0xff]  ;;  %v10200_v14 = vld [vmem:[#allocation21_spill] sm:$0xff]  ;;  %s9821_s6 = scalar_lea.hbm (%p179_p6), %s9872_s2, %s4372_s3  ;;  %s9829_s8 = scalar_lea.sflag (%p179_p6), [#allocation4], %s150_s14 }
  0x4a   : >> { %v10197_v16 = vld [vmem:[#allocation23_spill] sm:$0xff]  ;;  %v189_v20 = vrot.slane %v186_v18, 1  ;;  %v194_v21 = vrot.slane %v187_v19, 2  ;;  %v198_v22 = vrot.slane %v187_v19, 1  ;;  %s6740_s16 = scalar_lea.vmem (%p179_p6), %s9825_s7, 2048  ;;  %p10637_p10 = scmp.ne.s32.totalorder (%p179_p6), %s10170_s19, 0 }
  0x4b   : > { %p6741_p9 = scmp.ne.s32.totalorder (%p179_p6), %s9825_s7, %s6740_s16  ;;  %s6820_s13 = smov (%p179_p6), [#allocation5]  }
  0x4c   : >> { %v191_v23 = vadd.f32 %v189_v20, %v186_v18  ;;  %v196_v24 = vadd.f32 %v194_v21, %v186_v18  ;;  %v200_v25 = vadd.f32 %v198_v22, %v186_v18  ;;  %s6744_s21 = sshll.u32 (%p179_p6), %s6820_s13, 4  ;;  %s6745_s21 = int_to_ptr.vmem [resolvable:$false] %s6744_s21 }
  0x4d   : > { %p6742_p12 = pnand (%p179_p6), %p6741_p9, %p10637_p10  ;;  %s6746_s22 = scalar_lea.vmem (%p179_p6), %s6745_s21, 4096 }
  0x4e   : >> { %v192_v26 = vmul.f32 0.5, %v191_v23  ;;  %v197_v27 = vmul.f32 0.5, %v196_v24  ;;  %v201_v28 = vmul.f32 0.5, %v200_v25  ;;  %p6747_p3 = scmp.lt.s32.totalorder (%p179_p6), %s9825_s7, %s6745_s21  ;;  %p6748_p4 = scmp.lt.s32.totalorder (%p179_p6), %s6746_s22, %s6740_s16 }
  0x4f   : > { %p6743_p2 = pneg (%p179_p6), %p6742_p12 }
  0x50   : >> { %v202_v29 = vfloor.f32 %v192_v26  ;;  %v203_v30 = vfloor.f32 %v197_v27  ;;  %v204_v31 = vfloor.f32 %v201_v28  ;;  %p6749_p7 = por (%p179_p6), %p6748_p4, %p6747_p3 }
  0x52   : >> { %v205_v32 = vsub.f32 %v192_v26, %v202_v29  ;;  %v206_v33 = vsub.f32 %v197_v27, %v203_v30  ;;  %v207_v34 = vsub.f32 %v201_v28, %v204_v31  ;;  %v208_v35 = vadd.f32 %v203_v30, %v202_v29  ;;  %p6750_p8 = pnand (%p179_p6), %p6749_p7, %p6743_p2 }
  0x53   : >> { %v210_v36 = vrot.slane %v204_v31, 1  ;;  %v213_v37 = vsub.f32 %v202_v29, %v203_v30  ;;  %v215_v38 = vsub.f32 0.0, %v202_v29 }
  0x54   : >> { %v218_v39 = vmax.f32 %v205_v32, %v206_v33  ;;  %v220_v40 = vrot.slane %v207_v34, 1  ;;  %v223_v41 = vmin.f32 %v205_v32, %v206_v33  ;;  %v225_v42 = vadd.f32 %v206_v33, %v205_v32 }
  0x55   : >> { %v212_v43 = vsub.f32 %v208_v35, %v210_v36  ;;  %v214_v44 = vadd.f32 %v213_v37, %v210_v36  ;;  %v216_v45 = vadd.f32 %v215_v38, %v203_v30 }
  0x56   : >> { %v6987_v46 = vmax.f32 %v218_v39, %v220_v40  ;;  %v6989_v47 = vmin.f32 %v223_v41, %v220_v40  ;;  %v226_v48 = vadd.f32 %v225_v42, %v220_v40 }
  0x57   : >> { %v217_v50 = vadd.f32 %v216_v45, %v210_v36  ;;  %v241_v51 = vadd.f32 1.0, %v212_v43  ;;  %v242_v52 = vadd.f32 1.0, %v214_v44  ;;  %v251_v53 = vadd.f32 2.0, %v212_v43 }
  0x58   : >> { %v227_v54 = vsub.f32 %v226_v48, %v6987_v46  ;;  %vm229_vm0 = vcmp.eq.f32.partialorder %v6987_v46, %v206_v33  ;;  %vm232_vm1 = vcmp.eq.f32.partialorder %v6987_v46, %v220_v40  ;;  %vm235_vm2 = vcmp.eq.f32.partialorder %v6989_v47, %v205_v32 }
  0x59   : >> { %v4347_v56 = vsel %vm229_vm0, 1.0, %v6819_v55  ;;  %v4348_v57 = vsel %vm232_vm1, 1.0, %v6819_v55  ;;  %v4349_v58 = vsel %vm235_vm2, 1.0, %v6819_v55  ;;  %vm238_vm3 = vcmp.eq.f32.partialorder %v6989_v47, %v206_v33 }
  0x5a   : >> { %v7000_v59 = vsub.f32 %v227_v54, %v6989_v47  ;;  %v4350_v60 = vsel %vm238_vm3, 1.0, %v6819_v55  ;;  %v243_v61 = vadd.f32 1.0, %v217_v50  ;;  %v244_v62 = vmul.f32 2.0, %v4348_v57 }
  0x5b   : >> { %v246_v63 = vmul.f32 2.0, %v4347_v56  ;;  %v4351_v0 = vadd.f32 -1.0, %v217_v50  ;;  %v252_v17 = vmul.f32 2.0, %v4349_v58  ;;  %v254_v18 = vmul.f32 2.0, %v4350_v60 }
  0x5c   : >> { %v245_v19 = vsub.f32 %v241_v51, %v244_v62  ;;  %v258_v20 = vmul.f32 0.5, %v212_v43  ;;  %v263_v21 = vmul.f32 0.5, %v214_v44  ;;  %v268_v22 = vfloor.f32 %v217_v50 }
  0x5d   : >> { %v247_v23 = vsub.f32 %v242_v52, %v246_v63  ;;  %v249_v24 = vadd.f32 %v4351_v0, %v246_v63  ;;  %v253_v25 = vsub.f32 %v251_v53, %v252_v17  ;;  %v256_v26 = vadd.f32 %v254_v18, %v214_v44 }
  0x5e   : >> { %v7002_v27 = vadd.f32 %v252_v17, %v217_v50  ;;  %v259_v28 = vfloor.f32 %v258_v20  ;;  %v264_v29 = vfloor.f32 %v263_v21  ;;  %v269_v30 = vmax.f32 %v268_v22, 0.0 }
  0x5f   : >> { %v250_v31 = vadd.f32 %v249_v24, %v244_v62  ;;  %v255_v32 = vsub.f32 %v253_v25, %v254_v18  ;;  %v276_v33 = vmul.f32 0.5, %v241_v51  ;;  %v281_v34 = vmul.f32 0.5, %v242_v52 }
  0x60   : >> { %v260_v35 = vmax.f32 %v259_v28, 0.0  ;;  %v265_v36 = vmax.f32 %v264_v29, 0.0  ;;  %v270_v37 = vmin.f32 %v269_v30, 7.0  ;;  %v286_v38 = vfloor.f32 %v243_v61 }
  0x61   : >> { %v277_v39 = vfloor.f32 %v276_v33  ;;  %v282_v40 = vfloor.f32 %v281_v34  ;;  %v294_v41 = vmul.f32 0.5, %v245_v19  ;;  %v299_v42 = vmul.f32 0.5, %v247_v23 }
  0x62   : >> { %v261_v43 = vmin.f32 %v260_v35, 7.0  ;;  %v266_v45 = vmin.f32 %v265_v36, 7.0  ;;  %v6629_v44 = vtrunc.f32 %v270_v37  ;;  %v287_v48 = vmax.f32 %v286_v38, 0.0 }
  0x63   : >> { %v278_v50 = vmax.f32 %v277_v39, 0.0  ;;  %v283_v53 = vmax.f32 %v282_v40, 0.0  ;;  %v295_v54 = vfloor.f32 %v294_v41  ;;  %v300_v55 = vfloor.f32 %v299_v42 }
  0x64   : >> { %v6625_v56 = vtrunc.f32 %v261_v43  ;;  %v6627_v57 = vtrunc.f32 %v266_v45  ;;  %v6630_v51 = vcvt.f32.s32 %v6629_v44  ;;  %v288_v52 = vmin.f32 %v287_v48, 7.0 }
  0x65   : >> { %v279_v58 = vmin.f32 %v278_v50, 7.0  ;;  %v284_v60 = vmin.f32 %v283_v53, 7.0  ;;  %v296_v62 = vmax.f32 %v295_v54, 0.0  ;;  %v301_v61 = vmax.f32 %v300_v55, 0.0 }
  0x66   : >> { %v6626_v63 = vcvt.f32.s32 %v6625_v56  ;;  %v6628_v0 = vcvt.f32.s32 %v6627_v57  ;;  %v6635_v17 = vtrunc.f32 %v288_v52  ;;  %v304_v18 = vfloor.f32 %v250_v31 }
  0x67   : >> { %v6631_v19 = vtrunc.f32 %v279_v58  ;;  %v6633_v20 = vtrunc.f32 %v284_v60  ;;  %v297_v21 = vmin.f32 %v296_v62, 7.0  ;;  %v302_v22 = vmin.f32 %v301_v61, 7.0 }
  0x68   : >> { %v272_v23 = vmul.u32 64, %v6626_v63  ;;  %v273_v24 = vmul.u32 8, %v6628_v0  ;;  %v6636_v25 = vcvt.f32.s32 %v6635_v17  ;;  %v305_v28 = vmax.f32 %v304_v18, 0.0 }
  0x69   : >> { %v6632_v29 = vcvt.f32.s32 %v6631_v19  ;;  %v6634_v30 = vcvt.f32.s32 %v6633_v20  ;;  %v6637_v33 = vtrunc.f32 %v297_v21  ;;  %v6639_v34 = vtrunc.f32 %v302_v22 }
  0x6a   : >> { %v274_v35 = vadd.s32 %v273_v24, %v272_v23  ;;  %v306_v36 = vmin.f32 %v305_v28, 7.0  ;;  %v312_v37 = vmul.f32 0.5, %v255_v32  ;;  %v317_v38 = vmul.f32 0.5, %v256_v26 }
  0x6b   : >> { %v290_v39 = vmul.u32 64, %v6632_v29  ;;  %v291_v40 = vmul.u32 8, %v6634_v30  ;;  %v6638_v41 = vcvt.f32.s32 %v6637_v33  ;;  %v6640_v31 = vcvt.f32.s32 %v6639_v34 }
  0x6c   : >> { %v7004_v42 = vadd.s32 %v6630_v51, %v274_v35  ;;  %v6641_v43 = vtrunc.f32 %v306_v36  ;;  %v313_v45 = vfloor.f32 %v312_v37  ;;  %v318_v44 = vfloor.f32 %v317_v38 }
  0x6d   : >> { %v292_v48 = vadd.s32 %v291_v40, %v290_v39  ;;  %v308_v50 = vmul.u32 64, %v6638_v41  ;;  %v309_v53 = vmul.u32 8, %v6640_v31  ;;  %v322_v54 = vfloor.f32 %v7002_v27 }
  0x6e   : >> { %v6642_v55 = vcvt.f32.s32 %v6641_v43  ;;  %v314_v56 = vmax.f32 %v313_v45, 0.0  ;;  %v319_v57 = vmax.f32 %v318_v44, 0.0  ;;  %v330_v32 = vsub.f32 1.0, %v6987_v46 }
  0x6f   : >> { %v7008_v26 = vadd.s32 %v6636_v25, %v292_v48  ;;  %v310_v52 = vadd.s32 %v309_v53, %v308_v50  ;;  %v323_v58 = vmax.f32 %v322_v54, 0.0  ;;  %v331_v51 = vsub.f32 %v6987_v46, %v7000_v59 }
  0x70   : >> { %v315_v60 = vmin.f32 %v314_v56, 7.0  ;;  %v320_v62 = vmin.f32 %v319_v57, 7.0  ;;  %v332_v61 = vsub.f32 %v7000_v59, %v6989_v47  ;;  %v7015_v63 = vrot.slane %v330_v32, %v6992_v49 }
  0x71   : >> { %v7017_v27 = vadd.s32 %v6642_v55, %v310_v52  ;;  %v324_v0 = vmin.f32 %v323_v58, 7.0  ;;  %v7021_v17 = vrot.slane %v6989_v47, %v6992_v49  ;;  %v7024_v18 = vrot.slane %v331_v51, %v6992_v49 }
  0x72   : >> { %10209 = vst [vmem:[#allocation24_spill] sm:$0xff] %v7015_v63  ;;  %v6643_v19 = vtrunc.f32 %v315_v60  ;;  %v6645_v46 = vtrunc.f32 %v320_v62  ;;  %v7027_v20 = vrot.slane %v332_v61, %v6992_v49  ;;  %v4352_v59 = vadd.s32 4294967168, %v7004_v42 }
  0x73   : >> { %10210 = vst [vmem:[#allocation25_spill] sm:$0xff] %v7017_v27  ;;  %10211 = vst [vmem:[#allocation26_spill] sm:$0xff] %v7021_v17  ;;  %v6647_v21 = vtrunc.f32 %v324_v0  ;;  %v4353_v22 = vadd.s32 4294967168, %v7008_v26  ;;  %v4354_v23 = vadd.s32 4294967168, %v7017_v27  ;;  %v4356_v24 = vadd.s32 4294967040, %v7004_v42 }
  0x74   : >> { %10212 = vst [vmem:[#allocation27_spill] sm:$0xff] %v7024_v18  ;;  %10213 = vst [vmem:[#allocation28_spill] sm:$0xff] %v7027_v20  ;;  %v6644_v25 = vcvt.f32.s32 %v6643_v19  ;;  %v6646_v47 = vcvt.f32.s32 %v6645_v46  ;;  %v7034_v28 = vrot.slane %v4352_v59, %v6992_v49  ;;  %v4357_v29 = vadd.s32 4294967040, %v7008_v26 }
  0x75   : >> { %v6648_v30 = vcvt.f32.s32 %v6647_v21  ;;  %v7038_v33 = vrot.slane %v4353_v22, %v6992_v49  ;;  %v7041_v34 = vrot.slane %v4354_v23, %v6992_v49  ;;  %v4358_v35 = vadd.s32 4294967040, %v7017_v27 }
  0x76   : >> { %v326_v36 = vmul.u32 64, %v6644_v25  ;;  %v327_v37 = vmul.u32 8, %v6646_v47  ;;  %vm553_vm4 = vcmp.eq.s32.totalorder %v10193_v1, %v7034_v28  ;;  %vm554_vm5 = vcmp.eq.s32.totalorder %v10194_v2, %v7034_v28 }
  0x77   : >> { %v569_v38 = vsel %vm553_vm4, %v7015_v63, 0.0  ;;  %v570_v39 = vsel %vm554_vm5, %v7015_v63, 0.0  ;;  %vm589_vm6 = vcmp.eq.s32.totalorder %v10193_v1, %v7038_v33  ;;  %vm590_vm7 = vcmp.eq.s32.totalorder %v10194_v2, %v7038_v33 }
  0x78   : >> { %v328_v40 = vadd.s32 %v327_v37, %v326_v36  ;;  %v605_v41 = vsel %vm589_vm6, %v7021_v17, 0.0  ;;  %v606_v31 = vsel %vm590_vm7, %v7021_v17, 0.0  ;;  %vm641_vm8 = vcmp.eq.s32.totalorder %v10193_v1, %v7041_v34 }
  0x79   : >> { %v621_v43 = vadd.f32 %v605_v41, %v569_v38  ;;  %v622_v45 = vadd.f32 %v606_v31, %v570_v39  ;;  %vm642_vm9 = vcmp.eq.s32.totalorder %v10194_v2, %v7041_v34  ;;  %v657_v44 = vsel %vm641_vm8, %v7024_v18, 0.0 }
  0x7a   : >> { %v7061_v48 = vadd.s32 %v6648_v30, %v328_v40  ;;  %v658_v50 = vsel %vm642_vm9, %v7024_v18, 0.0  ;;  %v7065_v53 = vrot.slane %v4356_v24, %v6992_v49  ;;  %v7068_v54 = vrot.slane %v4357_v29, %v6992_v49 }
  0x7b   : >> { %v673_v55 = vadd.f32 %v657_v44, %v621_v43  ;;  %v674_v56 = vadd.f32 %v658_v50, %v622_v45  ;;  %v7071_v57 = vrot.slane %v4358_v35, %v6992_v49  ;;  %vm555_vm10 = vcmp.eq.s32.totalorder %v10195_v3, %v7034_v28 }
  0x7c   : >> { %10214 = vst [vmem:[#allocation29_spill] sm:$0xff] %v7061_v48  ;;  %v4355_v32 = vadd.s32 4294967168, %v7061_v48  ;;  %v4359_v52 = vadd.s32 4294967040, %v7061_v48  ;;  %vm2293_vm11 = vcmp.eq.s32.totalorder %v10193_v1, %v7065_v53  ;;  %vm2294_vm12 = vcmp.eq.s32.totalorder %v10194_v2, %v7065_v53 }
  0x7d   : >> { %v2309_v58 = vsel %vm2293_vm11, %v7015_v63, 0.0  ;;  %v2310_v51 = vsel %vm2294_vm12, %v7015_v63, 0.0  ;;  %vm2329_vm13 = vcmp.eq.s32.totalorder %v10193_v1, %v7068_v54  ;;  %vm2330_vm14 = vcmp.eq.s32.totalorder %v10194_v2, %v7068_v54 }
  0x7e   : >> { %v7088_v60 = vrot.slane %v4355_v32, %v6992_v49  ;;  %v2345_v62 = vsel %vm2329_vm13, %v7021_v17, 0.0  ;;  %v2346_v61 = vsel %vm2330_vm14, %v7021_v17, 0.0  ;;  %vm2381_vm15 = vcmp.eq.s32.totalorder %v10193_v1, %v7071_v57 }
  0x7f   : >> { %v2361_v0 = vadd.f32 %v2345_v62, %v2309_v58  ;;  %v2362_v19 = vadd.f32 %v2346_v61, %v2310_v51  ;;  %vm2382_vm0 = vcmp.eq.s32.totalorder %v10194_v2, %v7071_v57  ;;  %v2397_v46 = vsel %vm2381_vm15, %v7024_v18, 0.0 }
  0x80   : >> { %vm693_vm1 = vcmp.eq.s32.totalorder %v10193_v1, %v7088_v60  ;;  %vm694_vm2 = vcmp.eq.s32.totalorder %v10194_v2, %v7088_v60  ;;  %v2398_v59 = vsel %vm2382_vm0, %v7024_v18, 0.0  ;;  %v7103_v21 = vrot.slane %v4359_v52, %v6992_v49 }
  0x81   : >> { %v709_v22 = vsel %vm693_vm1, %v7027_v20, 0.0  ;;  %v710_v23 = vsel %vm694_vm2, %v7027_v20, 0.0  ;;  %v2413_v24 = vadd.f32 %v2397_v46, %v2361_v0  ;;  %v2414_v25 = vadd.f32 %v2398_v59, %v2362_v19 }
  0x82   : >> { %v7107_v47 = vadd.f32 %v709_v22, %v673_v55  ;;  %v7109_v29 = vadd.f32 %v710_v23, %v674_v56  ;;  %vm2433_vm3 = vcmp.eq.s32.totalorder %v10193_v1, %v7103_v21  ;;  %vm2434_vm4 = vcmp.eq.s32.totalorder %v10194_v2, %v7103_v21 }
  0x83   : >> { %v2449_v30 = vsel %vm2433_vm3, %v7027_v20, 0.0  ;;  %v2450_v35 = vsel %vm2434_vm4, %v7027_v20, 0.0  ;;  %vm556_vm5 = vcmp.eq.s32.totalorder %v10196_v4, %v7034_v28  ;;  %v571_v36 = vsel %vm555_vm10, %v7015_v63, 0.0 }
  0x84   : >> { %v9887_v37 = vand.u32 4294901760, %v7107_v47  ;;  %v9886_v38 = vand.u32 4294901760, %v7109_v29  ;;  %v7125_v39 = vadd.f32 %v2449_v30, %v2413_v24  ;;  %v7127_v40 = vadd.f32 %v2450_v35, %v2414_v25 }
  0x85   : >> { %v572_v41 = vsel %vm556_vm5, %v7015_v63, 0.0  ;;  %vm591_vm6 = vcmp.eq.s32.totalorder %v10195_v3, %v7038_v33  ;;  %vm592_vm7 = vcmp.eq.s32.totalorder %v10196_v4, %v7038_v33  ;;  %vm643_vm8 = vcmp.eq.s32.totalorder %v10195_v3, %v7041_v34 }
  0x86   : >> { %v7140_v31 = vpack.c.bf16 %v9886_v38, %v9887_v37  ;;  %v9883_v43 = vand.u32 4294901760, %v7125_v39  ;;  %v9882_v45 = vand.u32 4294901760, %v7127_v40  ;;  %v607_v44 = vsel %vm591_vm6, %v7021_v17, 0.0 }
  0x87   : >> { %v608_v50 = vsel %vm592_vm7, %v7021_v17, 0.0  ;;  %v623_v55 = vadd.f32 %v607_v44, %v571_v36  ;;  %vm644_vm9 = vcmp.eq.s32.totalorder %v10196_v4, %v7041_v34  ;;  %v659_v56 = vsel %vm643_vm8, %v7024_v18, 0.0 }
  0x88   : >> { %10215 = vst [vmem:[#allocation30_spill] sm:$0xff] %v7140_v31  ;;  %5766 = vmatprep.subr.bf16.mxu1 %v7140_v31  ;;  %v7154_v32 = vpack.c.bf16 %v9882_v45, %v9883_v43  ;;  %v624_v52 = vadd.f32 %v608_v50, %v572_v41  ;;  %v660_v58 = vsel %vm644_vm9, %v7024_v18, 0.0  ;;  %vm695_vm10 = vcmp.eq.s32.totalorder %v10195_v3, %v7088_v60 }
  0x89   : >> { %5768 = vmatpush3.bf16.msra.mxu1 %v7140_v31  ;;  %v675_v51 = vadd.f32 %v659_v56, %v623_v55  ;;  %vm696_vm11 = vcmp.eq.s32.totalorder %v10196_v4, %v7088_v60  ;;  %v711_v62 = vsel %vm695_vm10, %v7027_v20, 0.0  ;;  %vm2295_vm12 = vcmp.eq.s32.totalorder %v10195_v3, %v7065_v53 }
  0x8a   : >> { %10216 = vst [vmem:[#allocation31_spill] sm:$0xff] %v7154_v32  ;;  %6150 = vmatprep.subr.bf16.mxu0 %v7154_v32  ;;  %v676_v61 = vadd.f32 %v660_v58, %v624_v52  ;;  %v712_v0 = vsel %vm696_vm11, %v7027_v20, 0.0  ;;  %vm2296_vm13 = vcmp.eq.s32.totalorder %v10196_v4, %v7065_v53  ;;  %v2311_v19 = vsel %vm2295_vm12, %v7015_v63, 0.0 }
  0x8b   : >> { %6152 = vmatpush3.bf16.msra.mxu0 %v7154_v32  ;;  %v7171_v46 = vadd.f32 %v711_v62, %v675_v51  ;;  %v2312_v59 = vsel %vm2296_vm13, %v7015_v63, 0.0  ;;  %vm2331_vm14 = vcmp.eq.s32.totalorder %v10195_v3, %v7068_v54  ;;  %vm2332_vm15 = vcmp.eq.s32.totalorder %v10196_v4, %v7068_v54 }
  0x8c   : >> { %v7178_v22 = vadd.f32 %v712_v0, %v676_v61  ;;  %v2347_v23 = vsel %vm2331_vm14, %v7021_v17, 0.0  ;;  %v2348_v24 = vsel %vm2332_vm15, %v7021_v17, 0.0  ;;  %vm2383_vm0 = vcmp.eq.s32.totalorder %v10195_v3, %v7071_v57 }
  0x8d   : >> { %v9881_v25 = vand.u32 4294901760, %v7171_v46  ;;  %v2363_v30 = vadd.f32 %v2347_v23, %v2311_v19  ;;  %v2364_v35 = vadd.f32 %v2348_v24, %v2312_v59  ;;  %vm2384_vm1 = vcmp.eq.s32.totalorder %v10196_v4, %v7071_v57 }
  0x8e   : >> { %v9878_v36 = vand.u32 4294901760, %v7178_v22  ;;  %v2399_v41 = vsel %vm2383_vm0, %v7024_v18, 0.0  ;;  %v2400_v44 = vsel %vm2384_vm1, %v7024_v18, 0.0  ;;  %vm2435_vm2 = vcmp.eq.s32.totalorder %v10195_v3, %v7103_v21 }
  0x8f   : >> { %v2415_v50 = vadd.f32 %v2399_v41, %v2363_v30  ;;  %v2416_v55 = vadd.f32 %v2400_v44, %v2364_v35  ;;  %vm2436_vm3 = vcmp.eq.s32.totalorder %v10196_v4, %v7103_v21  ;;  %v2451_v56 = vsel %vm2435_vm2, %v7027_v20, 0.0 }
  0x90   : >> { %v7199_v52 = vpack.c.bf16 %v9878_v36, %v9881_v25  ;;  %v2452_v58 = vsel %vm2436_vm3, %v7027_v20, 0.0  ;;  %vm557_vm4 = vcmp.eq.s32.totalorder %v10205_v5, %v7034_v28  ;;  %vm558_vm5 = vcmp.eq.s32.totalorder %v10208_v6, %v7034_v28 }
  0x91   : >> { %v7206_v51 = vadd.f32 %v2451_v56, %v2415_v50  ;;  %v7208_v62 = vadd.f32 %v2452_v58, %v2416_v55  ;;  %v573_v61 = vsel %vm557_vm4, %v7015_v63, 0.0  ;;  %v574_v0 = vsel %vm558_vm5, %v7015_v63, 0.0 }
  0x92   : >> { %10217 = vst [vmem:[#allocation32_spill] sm:$0xff] %v7199_v52  ;;  %5770 = vmatprep.subr.bf16.mxu1 %v7199_v52  ;;  %vm593_vm6 = vcmp.eq.s32.totalorder %v10205_v5, %v7038_v33  ;;  %vm594_vm7 = vcmp.eq.s32.totalorder %v10208_v6, %v7038_v33  ;;  %vm645_vm8 = vcmp.eq.s32.totalorder %v10205_v5, %v7041_v34 }
  0x93   : >> { %vm646_vm9 = vcmp.eq.s32.totalorder %v10208_v6, %v7041_v34  ;;  %v9877_v19 = vand.u32 4294901760, %v7206_v51  ;;  %v9876_v59 = vand.u32 4294901760, %v7208_v62  ;;  %5772 = vmatpush3.bf16.msra.mxu1 %v7199_v52  ;;  %v609_v23 = vsel %vm593_vm6, %v7021_v17, 0.0 }
  0x94   : >> { %v610_v24 = vsel %vm594_vm7, %v7021_v17, 0.0  ;;  %v625_v30 = vadd.f32 %v609_v23, %v573_v61  ;;  %v661_v41 = vsel %vm645_vm8, %v7024_v18, 0.0  ;;  %v662_v44 = vsel %vm646_vm9, %v7024_v18, 0.0 }
  0x95   : >> { %v626_v35 = vadd.f32 %v610_v24, %v574_v0  ;;  %v7232_v50 = vpack.c.bf16 %v9876_v59, %v9877_v19  ;;  %vm697_vm10 = vcmp.eq.s32.totalorder %v10205_v5, %v7088_v60  ;;  %vm698_vm11 = vcmp.eq.s32.totalorder %v10208_v6, %v7088_v60 }
  0x96   : >> { %vm2297_vm12 = vcmp.eq.s32.totalorder %v10205_v5, %v7065_v53  ;;  %v677_v55 = vadd.f32 %v661_v41, %v625_v30  ;;  %v713_v58 = vsel %vm697_vm10, %v7027_v20, 0.0  ;;  %v714_v61 = vsel %vm698_vm11, %v7027_v20, 0.0 }
  0x97   : >> { %10218 = vst [vmem:[#allocation33_spill] sm:$0xff] %v7232_v50  ;;  %v678_v56 = vadd.f32 %v662_v44, %v626_v35  ;;  %6154 = vmatprep.subr.bf16.mxu0 %v7232_v50  ;;  %vm2298_vm13 = vcmp.eq.s32.totalorder %v10208_v6, %v7065_v53  ;;  %v2313_v0 = vsel %vm2297_vm12, %v7015_v63, 0.0  ;;  %vm2333_vm14 = vcmp.eq.s32.totalorder %v10205_v5, %v7068_v54 }
  0x98   : >> { %vm2334_vm15 = vcmp.eq.s32.totalorder %v10208_v6, %v7068_v54  ;;  %6156 = vmatpush3.bf16.msra.mxu0 %v7232_v50  ;;  %v7251_v23 = vadd.f32 %v713_v58, %v677_v55  ;;  %v2314_v30 = vsel %vm2298_vm13, %v7015_v63, 0.0  ;;  %v2349_v35 = vsel %vm2333_vm14, %v7021_v17, 0.0 }
  0x99   : >> { %v7253_v24 = vadd.f32 %v714_v61, %v678_v56  ;;  %v2350_v41 = vsel %vm2334_vm15, %v7021_v17, 0.0  ;;  %v2365_v44 = vadd.f32 %v2349_v35, %v2313_v0  ;;  %vm2385_vm0 = vcmp.eq.s32.totalorder %v10205_v5, %v7071_v57 }
  0x9a   : >> { %vm2386_vm1 = vcmp.eq.s32.totalorder %v10208_v6, %v7071_v57  ;;  %v9880_v59 = vand.u32 4294901760, %v7251_v23  ;;  %v2366_v58 = vadd.f32 %v2350_v41, %v2314_v30  ;;  %v2401_v56 = vsel %vm2385_vm0, %v7024_v18, 0.0 }
  0x9b   : >> { %v9879_v55 = vand.u32 4294901760, %v7253_v24  ;;  %v2402_v61 = vsel %vm2386_vm1, %v7024_v18, 0.0  ;;  %v2417_v19 = vadd.f32 %v2401_v56, %v2365_v44  ;;  %vm2437_vm2 = vcmp.eq.s32.totalorder %v10205_v5, %v7103_v21 }
  0x9c   : >> { %vm2438_vm3 = vcmp.eq.s32.totalorder %v10208_v6, %v7103_v21  ;;  %v2418_v35 = vadd.f32 %v2402_v61, %v2366_v58  ;;  %v2453_v30 = vsel %vm2437_vm2, %v7027_v20, 0.0  ;;  %vm559_vm4 = vcmp.eq.s32.totalorder %v10206_v7, %v7034_v28 }
  0x9d   : >> { %v7274_v0 = vpack.c.bf16 %v9879_v55, %v9880_v59  ;;  %v2454_v41 = vsel %vm2438_vm3, %v7027_v20, 0.0  ;;  %v7278_v36 = vadd.f32 %v2453_v30, %v2417_v19  ;;  %vm560_vm5 = vcmp.eq.s32.totalorder %v10207_v8, %v7034_v28 }
  0x9e   : >> { %vm595_vm6 = vcmp.eq.s32.totalorder %v10206_v7, %v7038_v33  ;;  %v7287_v44 = vadd.f32 %v2454_v41, %v2418_v35  ;;  %v575_v58 = vsel %vm559_vm4, %v7015_v63, 0.0  ;;  %v576_v56 = vsel %vm560_vm5, %v7015_v63, 0.0 }
  0x9f   : >> { %10219 = vst [vmem:[#allocation34_spill] sm:$0xff] %v7274_v0  ;;  %5774 = vmatprep.subr.bf16.mxu1 %v7274_v0  ;;  %vm596_vm7 = vcmp.eq.s32.totalorder %v10207_v8, %v7038_v33  ;;  %v9885_v19 = vand.u32 4294901760, %v7278_v36  ;;  %v611_v61 = vsel %vm595_vm6, %v7021_v17, 0.0  ;;  %vm647_vm8 = vcmp.eq.s32.totalorder %v10206_v7, %v7041_v34 }
  0xa0   : >> { %5776 = vmatpush3.bf16.msra.mxu1 %v7274_v0  ;;  %v612_v30 = vsel %vm596_vm7, %v7021_v17, 0.0  ;;  %v9884_v35 = vand.u32 4294901760, %v7287_v44  ;;  %v627_v41 = vadd.f32 %v611_v61, %v575_v58  ;;  %vm648_vm9 = vcmp.eq.s32.totalorder %v10207_v8, %v7041_v34 }
  0xa1   : >> { %v628_v55 = vadd.f32 %v612_v30, %v576_v56  ;;  %v663_v59 = vsel %vm647_vm8, %v7024_v18, 0.0  ;;  %v664_v25 = vsel %vm648_vm9, %v7024_v18, 0.0  ;;  %vm699_vm10 = vcmp.eq.s32.totalorder %v10206_v7, %v7088_v60 }
  0xa2   : >> { %vm700_vm11 = vcmp.eq.s32.totalorder %v10207_v8, %v7088_v60  ;;  %v7312_v45 = vpack.c.bf16 %v9884_v35, %v9885_v19  ;;  %v679_v58 = vadd.f32 %v663_v59, %v627_v41  ;;  %v715_v61 = vsel %vm699_vm10, %v7027_v20, 0.0 }
  0xa3   : >> { %v680_v56 = vadd.f32 %v664_v25, %v628_v55  ;;  %v716_v30 = vsel %vm700_vm11, %v7027_v20, 0.0  ;;  %vm2299_vm12 = vcmp.eq.s32.totalorder %v10206_v7, %v7065_v53  ;;  %vm2300_vm13 = vcmp.eq.s32.totalorder %v10207_v8, %v7065_v53 }
  0xa4   : >> { %10220 = vst [vmem:[#allocation35_spill] sm:$0xff] %v7312_v45  ;;  %vm2335_vm14 = vcmp.eq.s32.totalorder %v10206_v7, %v7068_v54  ;;  %6158 = vmatprep.subr.bf16.mxu0 %v7312_v45  ;;  %v7323_v43 = vadd.f32 %v715_v61, %v679_v58  ;;  %v2315_v25 = vsel %vm2299_vm12, %v7015_v63, 0.0  ;;  %v2316_v59 = vsel %vm2300_vm13, %v7015_v63, 0.0 }
  0xa5   : >> { %v7325_v35 = vadd.f32 %v716_v30, %v680_v56  ;;  %6160 = vmatpush3.bf16.msra.mxu0 %v7312_v45  ;;  %vm2336_vm15 = vcmp.eq.s32.totalorder %v10207_v8, %v7068_v54  ;;  %v2351_v55 = vsel %vm2335_vm14, %v7021_v17, 0.0  ;;  %vm2387_vm0 = vcmp.eq.s32.totalorder %v10206_v7, %v7071_v57 }
  0xa6   : >> { %vm2388_vm1 = vcmp.eq.s32.totalorder %v10207_v8, %v7071_v57  ;;  %v9891_v41 = vand.u32 4294901760, %v7323_v43  ;;  %v2352_v56 = vsel %vm2336_vm15, %v7021_v17, 0.0  ;;  %v2367_v61 = vadd.f32 %v2351_v55, %v2315_v25 }
  0xa7   : >> { %v9890_v58 = vand.u32 4294901760, %v7325_v35  ;;  %v2368_v30 = vadd.f32 %v2352_v56, %v2316_v59  ;;  %v2403_v19 = vsel %vm2387_vm0, %v7024_v18, 0.0  ;;  %v2404_v38 = vsel %vm2388_vm1, %v7024_v18, 0.0 }
  0xa8   : >> { %vm2439_vm2 = vcmp.eq.s32.totalorder %v10206_v7, %v7103_v21  ;;  %v2419_v6 = vadd.f32 %v2403_v19, %v2367_v61  ;;  %vm2440_vm3 = vcmp.eq.s32.totalorder %v10207_v8, %v7103_v21  ;;  %vm561_vm4 = vcmp.eq.s32.totalorder %v10203_v9, %v7034_v28 }
  0xa9   : >> { %v7348_v37 = vpack.c.bf16 %v9890_v58, %v9891_v41  ;;  %v2455_v25 = vsel %vm2439_vm2, %v7027_v20, 0.0  ;;  %v2420_v59 = vadd.f32 %v2404_v38, %v2368_v30  ;;  %v2456_v55 = vsel %vm2440_vm3, %v7027_v20, 0.0 }
  0xaa   : >> { %vm562_vm5 = vcmp.eq.s32.totalorder %v10204_v10, %v7034_v28  ;;  %v7359_v56 = vadd.f32 %v2455_v25, %v2419_v6  ;;  %v577_v19 = vsel %vm561_vm4, %v7015_v63, 0.0  ;;  %vm597_vm6 = vcmp.eq.s32.totalorder %v10203_v9, %v7038_v33 }
  0xab   : >> { %10221 = vst [vmem:[#allocation36_spill] sm:$0xff] %v7348_v37  ;;  %5778 = vmatprep.subr.bf16.mxu1 %v7348_v37  ;;  %v578_v61 = vsel %vm562_vm5, %v7015_v63, 0.0  ;;  %v7365_v38 = vadd.f32 %v2456_v55, %v2420_v59  ;;  %vm598_vm7 = vcmp.eq.s32.totalorder %v10204_v10, %v7038_v33  ;;  %v613_v30 = vsel %vm597_vm6, %v7021_v17, 0.0 }
  0xac   : >> { %5780 = vmatpush3.bf16.msra.mxu1 %v7348_v37  ;;  %vm649_vm8 = vcmp.eq.s32.totalorder %v10203_v9, %v7041_v34  ;;  %v9899_v6 = vand.u32 4294901760, %v7359_v56  ;;  %v614_v25 = vsel %vm598_vm7, %v7021_v17, 0.0  ;;  %v629_v58 = vadd.f32 %v613_v30, %v577_v19 }
  0xad   : >> { %vm650_vm9 = vcmp.eq.s32.totalorder %v10204_v10, %v7041_v34  ;;  %v9898_v59 = vand.u32 4294901760, %v7365_v38  ;;  %v630_v55 = vadd.f32 %v614_v25, %v578_v61  ;;  %v665_v41 = vsel %vm649_vm8, %v7024_v18, 0.0 }
  0xae   : >> { %v666_v8 = vsel %vm650_vm9, %v7024_v18, 0.0  ;;  %v681_v7 = vadd.f32 %v665_v41, %v629_v58  ;;  %vm701_vm10 = vcmp.eq.s32.totalorder %v10203_v9, %v7088_v60  ;;  %vm702_vm11 = vcmp.eq.s32.totalorder %v10204_v10, %v7088_v60 }
  0xaf   : >> { %vm2301_vm12 = vcmp.eq.s32.totalorder %v10203_v9, %v7065_v53  ;;  %v7390_v19 = vpack.c.bf16 %v9898_v59, %v9899_v6  ;;  %v682_v61 = vadd.f32 %v666_v8, %v630_v55  ;;  %v717_v30 = vsel %vm701_vm10, %v7027_v20, 0.0 }
  0xb0   : >> { %v718_v41 = vsel %vm702_vm11, %v7027_v20, 0.0  ;;  %v7394_v58 = vadd.f32 %v717_v30, %v681_v7  ;;  %vm2302_vm13 = vcmp.eq.s32.totalorder %v10204_v10, %v7065_v53  ;;  %v2317_v25 = vsel %vm2301_vm12, %v7015_v63, 0.0 }
  0xb1   : >> { %10222 = vst [vmem:[#allocation37_spill] sm:$0xff] %v7390_v19  ;;  %vm2337_vm14 = vcmp.eq.s32.totalorder %v10203_v9, %v7068_v54  ;;  %6162 = vmatprep.subr.bf16.mxu0 %v7390_v19  ;;  %v7402_v5 = vadd.f32 %v718_v41, %v682_v61  ;;  %v2318_v8 = vsel %vm2302_vm13, %v7015_v63, 0.0  ;;  %vm2338_vm15 = vcmp.eq.s32.totalorder %v10204_v10, %v7068_v54 }
  0xb2   : >> { %v2353_v7 = vsel %vm2337_vm14, %v7021_v17, 0.0  ;;  %6164 = vmatpush3.bf16.msra.mxu0 %v7390_v19  ;;  %v9907_v55 = vand.u32 4294901760, %v7394_v58  ;;  %v2354_v30 = vsel %vm2338_vm15, %v7021_v17, 0.0  ;;  %vm2389_vm0 = vcmp.eq.s32.totalorder %v10203_v9, %v7071_v57 }
  0xb3   : >> { %v2369_v59 = vadd.f32 %v2353_v7, %v2317_v25  ;;  %v9906_v61 = vand.u32 4294901760, %v7402_v5  ;;  %v2370_v41 = vadd.f32 %v2354_v30, %v2318_v8  ;;  %vm2390_vm1 = vcmp.eq.s32.totalorder %v10204_v10, %v7071_v57 }
  0xb4   : >> { %v2405_v6 = vsel %vm2389_vm0, %v7024_v18, 0.0  ;;  %v2406_v37 = vsel %vm2390_vm1, %v7024_v18, 0.0  ;;  %vm2441_vm2 = vcmp.eq.s32.totalorder %v10203_v9, %v7103_v21  ;;  %vm2442_vm3 = vcmp.eq.s32.totalorder %v10204_v10, %v7103_v21 }
  0xb5   : >> { %v2421_v45 = vadd.f32 %v2405_v6, %v2369_v59  ;;  %v7426_v25 = vpack.c.bf16 %v9906_v61, %v9907_v55  ;;  %v2422_v8 = vadd.f32 %v2406_v37, %v2370_v41  ;;  %v2457_v7 = vsel %vm2441_vm2, %v7027_v20, 0.0 }
  0xb6   : >> { %v2458_v30 = vsel %vm2442_vm3, %v7027_v20, 0.0  ;;  %vm563_vm4 = vcmp.eq.s32.totalorder %v10201_v11, %v7034_v28  ;;  %vm564_vm5 = vcmp.eq.s32.totalorder %v10202_v12, %v7034_v28  ;;  %vm599_vm6 = vcmp.eq.s32.totalorder %v10201_v11, %v7038_v33 }
  0xb7   : >> { %10223 = vst [vmem:[#allocation38_spill] sm:$0xff] %v7426_v25  ;;  %v7430_v19 = vadd.f32 %v2457_v7, %v2421_v45  ;;  %5782 = vmatprep.subr.bf16.mxu1 %v7426_v25  ;;  %v7439_v6 = vadd.f32 %v2458_v30, %v2422_v8  ;;  %v579_v37 = vsel %vm563_vm4, %v7015_v63, 0.0  ;;  %v580_v59 = vsel %vm564_vm5, %v7015_v63, 0.0 }
  0xb8   : >> { %vm600_vm7 = vcmp.eq.s32.totalorder %v10202_v12, %v7038_v33  ;;  %5784 = vmatpush3.bf16.msra.mxu1 %v7426_v25  ;;  %v615_v41 = vsel %vm599_vm6, %v7021_v17, 0.0  ;;  %vm651_vm8 = vcmp.eq.s32.totalorder %v10201_v11, %v7041_v34  ;;  %vm652_vm9 = vcmp.eq.s32.totalorder %v10202_v12, %v7041_v34 }
  0xb9   : >> { %v616_v7 = vsel %vm600_vm7, %v7021_v17, 0.0  ;;  %v9914_v8 = vand.u32 4294901760, %v7439_v6  ;;  %v631_v30 = vadd.f32 %v615_v41, %v579_v37  ;;  %v667_v55 = vsel %vm651_vm8, %v7024_v18, 0.0 }
  0xba   : >> { %v632_v61 = vadd.f32 %v616_v7, %v580_v59  ;;  %v668_v45 = vsel %vm652_vm9, %v7024_v18, 0.0  ;;  %vm703_vm10 = vcmp.eq.s32.totalorder %v10201_v11, %v7088_v60  ;;  %vm704_vm11 = vcmp.eq.s32.totalorder %v10202_v12, %v7088_v60 }
  0xbb   : >> { %v10224_v10 = vand.u32 4294901760, %v7430_v19  ;;  %v683_v37 = vadd.f32 %v667_v55, %v631_v30  ;;  %v719_v41 = vsel %vm703_vm10, %v7027_v20, 0.0  ;;  %v720_v7 = vsel %vm704_vm11, %v7027_v20, 0.0 }
  0xbc   : >> { %v684_v59 = vadd.f32 %v668_v45, %v632_v61  ;;  %vm2303_vm12 = vcmp.eq.s32.totalorder %v10201_v11, %v7065_v53  ;;  %vm2304_vm13 = vcmp.eq.s32.totalorder %v10202_v12, %v7065_v53  ;;  %vm2339_vm14 = vcmp.eq.s32.totalorder %v10201_v11, %v7068_v54 }
  0xbd   : >> { %v7464_v9 = vpack.c.bf16 %v9914_v8, %v10224_v10  ;;  %v7475_v25 = vadd.f32 %v719_v41, %v683_v37  ;;  %v2319_v55 = vsel %vm2303_vm12, %v7015_v63, 0.0  ;;  %v2320_v61 = vsel %vm2304_vm13, %v7015_v63, 0.0 }
  0xbe   : >> { %v7477_v10 = vadd.f32 %v720_v7, %v684_v59  ;;  %vm2340_vm15 = vcmp.eq.s32.totalorder %v10202_v12, %v7068_v54  ;;  %v2355_v45 = vsel %vm2339_vm14, %v7021_v17, 0.0  ;;  %vm2391_vm0 = vcmp.eq.s32.totalorder %v10201_v11, %v7071_v57 }
  0xbf   : >> { %10225 = vst [vmem:[#allocation39_spill] sm:$0xff] %v7464_v9  ;;  %6166 = vmatprep.subr.bf16.mxu0 %v7464_v9  ;;  %vm2392_vm1 = vcmp.eq.s32.totalorder %v10202_v12, %v7071_v57  ;;  %v9922_v30 = vand.u32 4294901760, %v7475_v25  ;;  %v2356_v59 = vsel %vm2340_vm15, %v7021_v17, 0.0  ;;  %v2371_v41 = vadd.f32 %v2355_v45, %v2319_v55 }
  0xc0   : >> { %6168 = vmatpush3.bf16.msra.mxu0 %v7464_v9  ;;  %v9921_v37 = vand.u32 4294901760, %v7477_v10  ;;  %v2372_v7 = vadd.f32 %v2356_v59, %v2320_v61  ;;  %v2407_v8 = vsel %vm2391_vm0, %v7024_v18, 0.0  ;;  %v2408_v9 = vsel %vm2392_vm1, %v7024_v18, 0.0 }
  0xc1   : >> { %vm2443_vm2 = vcmp.eq.s32.totalorder %v10201_v11, %v7103_v21  ;;  %v2423_v50 = vadd.f32 %v2407_v8, %v2371_v41  ;;  %vm2444_vm3 = vcmp.eq.s32.totalorder %v10202_v12, %v7103_v21  ;;  %vm565_vm4 = vcmp.eq.s32.totalorder %v10198_v13, %v7034_v28 }
  0xc2   : >> { %v7500_v0 = vpack.c.bf16 %v9921_v37, %v9922_v30  ;;  %v2459_v55 = vsel %vm2443_vm2, %v7027_v20, 0.0  ;;  %v2424_v61 = vadd.f32 %v2408_v9, %v2372_v7  ;;  %v2460_v45 = vsel %vm2444_vm3, %v7027_v20, 0.0 }
  0xc3   : >> { %vm566_vm5 = vcmp.eq.s32.totalorder %v10200_v14, %v7034_v28  ;;  %v7511_v59 = vadd.f32 %v2459_v55, %v2423_v50  ;;  %v581_v8 = vsel %vm565_vm4, %v7015_v63, 0.0  ;;  %vm601_vm6 = vcmp.eq.s32.totalorder %v10198_v13, %v7038_v33 }
  0xc4   : >> { %10226 = vst [vmem:[#allocation40_spill] sm:$0xff] %v7500_v0  ;;  %5786 = vmatprep.subr.bf16.mxu1 %v7500_v0  ;;  %v582_v41 = vsel %vm566_vm5, %v7015_v63, 0.0  ;;  %v7517_v9 = vadd.f32 %v2460_v45, %v2424_v61  ;;  %vm602_vm7 = vcmp.eq.s32.totalorder %v10200_v14, %v7038_v33  ;;  %v617_v7 = vsel %vm601_vm6, %v7021_v17, 0.0 }
  0xc5   : >> { %5788 = vmatpush3.bf16.msra.mxu1 %v7500_v0  ;;  %vm653_vm8 = vcmp.eq.s32.totalorder %v10198_v13, %v7041_v34  ;;  %v9930_v50 = vand.u32 4294901760, %v7511_v59  ;;  %v618_v55 = vsel %vm602_vm7, %v7021_v17, 0.0  ;;  %v633_v37 = vadd.f32 %v617_v7, %v581_v8 }
  0xc6   : >> { %vm654_vm9 = vcmp.eq.s32.totalorder %v10200_v14, %v7041_v34  ;;  %v9929_v61 = vand.u32 4294901760, %v7517_v9  ;;  %v634_v45 = vadd.f32 %v618_v55, %v582_v41  ;;  %v669_v30 = vsel %vm653_vm8, %v7024_v18, 0.0 }
  0xc7   : >> { %v670_v12 = vsel %vm654_vm9, %v7024_v18, 0.0  ;;  %v685_v11 = vadd.f32 %v669_v30, %v633_v37  ;;  %vm705_vm10 = vcmp.eq.s32.totalorder %v10198_v13, %v7088_v60  ;;  %vm706_vm11 = vcmp.eq.s32.totalorder %v10200_v14, %v7088_v60 }
  0xc8   : >> { %vm2305_vm12 = vcmp.eq.s32.totalorder %v10198_v13, %v7065_v53  ;;  %v7542_v8 = vpack.c.bf16 %v9929_v61, %v9930_v50  ;;  %v686_v41 = vadd.f32 %v670_v12, %v634_v45  ;;  %v721_v7 = vsel %vm705_vm10, %v7027_v20, 0.0 }
  0xc9   : >> { %v722_v30 = vsel %vm706_vm11, %v7027_v20, 0.0  ;;  %v7546_v37 = vadd.f32 %v721_v7, %v685_v11  ;;  %vm2306_vm13 = vcmp.eq.s32.totalorder %v10200_v14, %v7065_v53  ;;  %v2321_v55 = vsel %vm2305_vm12, %v7015_v63, 0.0 }
  0xca   : >> { %10227 = vst [vmem:[#allocation41_spill] sm:$0xff] %v7542_v8  ;;  %vm2341_vm14 = vcmp.eq.s32.totalorder %v10198_v13, %v7068_v54  ;;  %6170 = vmatprep.subr.bf16.mxu0 %v7542_v8  ;;  %v7554_v0 = vadd.f32 %v722_v30, %v686_v41  ;;  %v2322_v12 = vsel %vm2306_vm13, %v7015_v63, 0.0  ;;  %vm2342_vm15 = vcmp.eq.s32.totalorder %v10200_v14, %v7068_v54 }
  0xcb   : >> { %v2357_v11 = vsel %vm2341_vm14, %v7021_v17, 0.0  ;;  %6172 = vmatpush3.bf16.msra.mxu0 %v7542_v8  ;;  %v9938_v45 = vand.u32 4294901760, %v7546_v37  ;;  %v2358_v7 = vsel %vm2342_vm15, %v7021_v17, 0.0  ;;  %vm2393_vm0 = vcmp.eq.s32.totalorder %v10198_v13, %v7071_v57 }
  0xcc   : >> { %v2373_v61 = vadd.f32 %v2357_v11, %v2321_v55  ;;  %v9937_v41 = vand.u32 4294901760, %v7554_v0  ;;  %v2374_v30 = vadd.f32 %v2358_v7, %v2322_v12  ;;  %vm2394_vm1 = vcmp.eq.s32.totalorder %v10200_v14, %v7071_v57 }
  0xcd   : >> { %v2409_v50 = vsel %vm2393_vm0, %v7024_v18, 0.0  ;;  %v2410_v52 = vsel %vm2394_vm1, %v7024_v18, 0.0  ;;  %vm2445_vm2 = vcmp.eq.s32.totalorder %v10198_v13, %v7103_v21  ;;  %vm2446_vm3 = vcmp.eq.s32.totalorder %v10200_v14, %v7103_v21 }
  0xce   : >> { %v2425_v32 = vadd.f32 %v2409_v50, %v2373_v61  ;;  %v7578_v55 = vpack.c.bf16 %v9937_v41, %v9938_v45  ;;  %v2426_v12 = vadd.f32 %v2410_v52, %v2374_v30  ;;  %v2461_v11 = vsel %vm2445_vm2, %v7027_v20, 0.0 }
  0xcf   : >> { %v2462_v7 = vsel %vm2446_vm3, %v7027_v20, 0.0  ;;  %vm567_vm4 = vcmp.eq.s32.totalorder %v10199_v15, %v7034_v28  ;;  %vm568_vm5 = vcmp.eq.s32.totalorder %v10197_v16, %v7034_v28  ;;  %vm603_vm6 = vcmp.eq.s32.totalorder %v10199_v15, %v7038_v33 }
  0xd0   : >> { %10228 = vst [vmem:[#allocation42_spill] sm:$0xff] %v7578_v55  ;;  %v7582_v8 = vadd.f32 %v2461_v11, %v2425_v32  ;;  %5790 = vmatprep.subr.bf16.mxu1 %v7578_v55  ;;  %v7591_v50 = vadd.f32 %v2462_v7, %v2426_v12  ;;  %v583_v52 = vsel %vm567_vm4, %v7015_v63, 0.0  ;;  %v584_v61 = vsel %vm568_vm5, %v7015_v63, 0.0 }
  0xd1   : >> { %vm604_vm7 = vcmp.eq.s32.totalorder %v10197_v16, %v7038_v33  ;;  %5792 = vmatpush3.bf16.msra.mxu1 %v7578_v55  ;;  %v619_v28 = vsel %vm603_vm6, %v7021_v17, 0.0  ;;  %vm655_vm8 = vcmp.eq.s32.totalorder %v10199_v15, %v7041_v34  ;;  %vm656_vm9 = vcmp.eq.s32.totalorder %v10197_v16, %v7041_v34 }
  0xd2   : >> { %v9940_v32 = vand.u32 4294901760, %v7582_v8  ;;  %v620_v30 = vsel %vm604_vm7, %v7021_v17, 0.0  ;;  %v9939_v12 = vand.u32 4294901760, %v7591_v50  ;;  %v635_v11 = vadd.f32 %v619_v28, %v583_v52 }
  0xd3   : >> { %v636_v7 = vadd.f32 %v620_v30, %v584_v61  ;;  %v671_v33 = vsel %vm655_vm8, %v7024_v18, 0.0  ;;  %v672_v41 = vsel %vm656_vm9, %v7024_v18, 0.0  ;;  %vm707_vm10 = vcmp.eq.s32.totalorder %v10199_v15, %v7088_v60 }
  0xd4   : >> { %vm708_vm11 = vcmp.eq.s32.totalorder %v10197_v16, %v7088_v60  ;;  %v7616_v45 = vpack.c.bf16 %v9939_v12, %v9940_v32  ;;  %v687_v52 = vadd.f32 %v671_v33, %v635_v11  ;;  %v723_v34 = vsel %vm707_vm10, %v7027_v20, 0.0  ;;  %v2481_v32 = vld [vmem:[#allocation2 + $0x10] sm:$0xff] }
  0xd5   : >> { %v688_v61 = vadd.f32 %v672_v41, %v636_v7  ;;  %v724_v28 = vsel %vm708_vm11, %v7027_v20, 0.0  ;;  %vm2307_vm12 = vcmp.eq.s32.totalorder %v10199_v15, %v7065_v53  ;;  %vm2308_vm13 = vcmp.eq.s32.totalorder %v10197_v16, %v7065_v53 }
  0xd6   : >> { %10229 = vst [vmem:[#allocation43_spill] sm:$0xff] %v7616_v45  ;;  %vm2343_vm14 = vcmp.eq.s32.totalorder %v10199_v15, %v7068_v54  ;;  %6174 = vmatprep.subr.bf16.mxu0 %v7616_v45  ;;  %v7627_v60 = vadd.f32 %v723_v34, %v687_v52  ;;  %v2323_v41 = vsel %vm2307_vm12, %v7015_v63, 0.0  ;;  %v2324_v11 = vsel %vm2308_vm13, %v7015_v63, 0.0  ;;  %v741_v34 = vld [vmem:[#allocation2 + $0x8] sm:$0xff] }
  0xd7   : >> { %v7629_v30 = vadd.f32 %v724_v28, %v688_v61  ;;  %6176 = vmatpush3.bf16.msra.mxu0 %v7616_v45  ;;  %vm2344_vm15 = vcmp.eq.s32.totalorder %v10197_v16, %v7068_v54  ;;  %v2359_v53 = vsel %vm2343_vm14, %v7021_v17, 0.0  ;;  %vm2395_vm0 = vcmp.eq.s32.totalorder %v10199_v15, %v7071_v57 }
  0xd8   : >> { %vm2396_vm1 = vcmp.eq.s32.totalorder %v10197_v16, %v7071_v57  ;;  %v9948_v7 = vand.u32 4294901760, %v7627_v60  ;;  %v2360_v52 = vsel %vm2344_vm15, %v7021_v17, 0.0  ;;  %v2375_v61 = vadd.f32 %v2359_v53, %v2323_v41 }
  0xd9   : >> { %v9947_v33 = vand.u32 4294901760, %v7629_v30  ;;  %v2376_v28 = vadd.f32 %v2360_v52, %v2324_v11  ;;  %v2411_v12 = vsel %vm2395_vm0, %v7024_v18, 0.0  ;;  %v2412_v54 = vsel %vm2396_vm1, %v7024_v18, 0.0 }
  0xda   : >> { %vm2447_vm2 = vcmp.eq.s32.totalorder %v10199_v15, %v7103_v21  ;;  %v2427_v14 = vadd.f32 %v2411_v12, %v2375_v61  ;;  %vm2448_vm3 = vcmp.eq.s32.totalorder %v10197_v16, %v7103_v21  ;;  %v7658_v52 = vand.u32 4294901760, %v741_v34 }
  0xdb   : >> { %v7652_v57 = vpack.c.bf16 %v9947_v33, %v9948_v7  ;;  %v2463_v41 = vsel %vm2447_vm2, %v7027_v20, 0.0  ;;  %v2428_v11 = vadd.f32 %v2412_v54, %v2376_v28  ;;  %v2464_v53 = vsel %vm2448_vm3, %v7027_v20, 0.0 }
  0xdc   : >> { %v10231_v15 = vand.u32 4294901760, %v7107_v47  ;;  %v7666_v33 = vadd.f32 %v2463_v41, %v2427_v14  ;;  %v10232_v12 = vand.u32 4294901760, %v7109_v29  ;;  %v7673_v61 = vand.u32 4294901760, %v2481_v32  ;;  %v742_v41 = vld [vmem:[#allocation2 + $0x28] sm:$0xff] }
  0xdd   : >> { %10230 = vst [vmem:[#allocation44_spill] sm:$0xff] %v7652_v57  ;;  %5794 = vmatprep.subr.bf16.mxu1 %v7652_v57  ;;  %v10233_v28 = vand.u32 4294901760, %v7125_v39  ;;  %v7680_v7 = vadd.f32 %v2464_v53, %v2428_v11 }
  0xde   : >> { %v7663_v13 = vsub.f32 %v7107_v47, %v10231_v15  ;;  %v7671_v21 = vsub.f32 %v7109_v29, %v10232_v12  ;;  %5796 = vmatpush3.bf16.msra.mxu1 %v7652_v57  ;;  %v7684_v15 = vsub.f32 %v741_v34, %v7658_v52  ;;  %v10234_v47 = vand.u32 4294901760, %v7127_v40  ;;  %v2482_v34 = vld [vmem:[#allocation2 + $0x30] sm:$0xff] }
  0xdf   : >> { %v7678_v54 = vsub.f32 %v7125_v39, %v10233_v28  ;;  %v7695_v11 = vsub.f32 %v2481_v32, %v7673_v61  ;;  %v7711_v57 = vand.u32 4294901760, %v742_v41  ;;  %v10236_v28 = vand.u32 4294901760, %v7666_v33 }
  0xe0   : >> { %v9955_v14 = vand.u32 4294901760, %v7663_v13  ;;  %v7690_v29 = vsub.f32 %v7127_v40, %v10234_v47  ;;  %v9958_v39 = vand.u32 4294901760, %v7671_v21  ;;  %v10237_v45 = vand.u32 4294901760, %v7680_v7 }
  0xe1   : >> { %v9963_v53 = vand.u32 4294901760, %v7678_v54  ;;  %10235 = vst [vmem:[#allocation45_spill] sm:$0xff] %v7711_v57  ;;  %v10239_v40 = vand.u32 4294901760, %v7684_v15  ;;  %v7729_v18 = vsub.f32 %v742_v41, %v7711_v57  ;;  %v7732_v48 = vand.u32 4294901760, %v2482_v34 }
  0xe2   : >> { %v870_v16 = vsub.f32 %v7663_v13, %v9955_v14  ;;  %v877_v47 = vsub.f32 %v7671_v21, %v9958_v39  ;;  %v7717_v14 = vpack.c.bf16 %v10237_v45, %v10236_v28  ;;  %v10240_v12 = vand.u32 4294901760, %v7690_v29 }
  0xe3   : >> { %v2610_v32 = vsub.f32 %v7678_v54, %v9963_v53  ;;  %v829_v55 = vsub.f32 %v7684_v15, %v10239_v40  ;;  %v10241_v53 = vand.u32 4294901760, %v7695_v11  ;;  %10242 = vst [vmem:[#allocation47_spill] sm:$0xff] %v7729_v18  ;;  %10243 = vst [vmem:[#allocation48_spill] sm:$0xff] %v7732_v48  ;;  %v10245_v41 = vand.u32 4294901760, %v7178_v22 }
  0xe4   : >> { %10238 = vst [vmem:[#allocation46_spill] sm:$0xff] %v7717_v14  ;;  %v871_v39 = vand.u32 4294901760, %v870_v16  ;;  %v2617_v4 = vsub.f32 %v7690_v29, %v10240_v12  ;;  %v878_v31 = vand.u32 4294901760, %v877_v47  ;;  %6178 = vmatprep.subr.bf16.mxu0 %v7717_v14  ;;  %v10244_v16 = vand.u32 4294901760, %v7171_v46 }
  0xe5   : >> { %v2569_v3 = vsub.f32 %v7695_v11, %v10241_v53  ;;  %v2611_v20 = vand.u32 4294901760, %v2610_v32  ;;  %v830_v45 = vand.u32 4294901760, %v829_v55  ;;  %6180 = vmatpush3.bf16.msra.mxu0 %v7717_v14  ;;  %v9974_v53 = vand.u32 4294901760, %v7729_v18 }
  0xe6   : >> { %v2618_v28 = vand.u32 4294901760, %v2617_v4  ;;  %v7737_v40 = vsub.f32 %v7171_v46, %v10244_v16  ;;  %v5797_v12 = vpack.c.bf16 %v878_v31, %v871_v39  ;;  %v7744_v32 = vsub.f32 %v7178_v22, %v10245_v41 }
  0xe7   : >> { %v2570_v47 = vand.u32 4294901760, %v2569_v3  ;;  %4885 = vmatprep.mubr.f32.mxu1 %v830_v45  ;;  %v7747_v55 = vsub.f32 %v2482_v34, %v7732_v48  ;;  %v10247_v46 = vand.u32 4294901760, %v7206_v51  ;;  %v839_v3 = vsub.f32 %v7729_v18, %v9974_v53 }
  0xe8   : >> { %v6181_v4 = vpack.c.bf16 %v2618_v28, %v2611_v20  ;;  %v9975_v17 = vand.u32 4294901760, %v7737_v40  ;;  %5798 = vmatprep.subr.bf16.mxu1 %v5797_v12  ;;  %v9976_v31 = vand.u32 4294901760, %v7744_v32  ;;  %v10248_v20 = vand.u32 4294901760, %v7208_v62 }
  0xe9   : >> { %10246 = vst [vmem:[#allocation49_spill] sm:$0xff] %v7747_v55  ;;  %v7753_v16 = vsub.f32 %v7206_v51, %v10247_v46  ;;  %5341 = vmatprep.mubr.f32.mxu0 %v2570_v47  ;;  %v10249_v39 = vand.u32 4294901760, %v7251_v23  ;;  %v9979_v51 = vand.u32 4294901760, %v7747_v55  ;;  %v10250_v47 = vand.u32 4294901760, %v7253_v24 }
  0xea   : >> { %v7762_v22 = vsub.f32 %v7208_v62, %v10248_v20  ;;  %6182 = vmatprep.subr.bf16.mxu0 %v6181_v4  ;;  %v884_v45 = vsub.f32 %v7737_v40, %v9975_v17  ;;  %v840_v62 = vand.u32 4294901760, %v839_v3  ;;  %v10251_v14 = vand.u32 4294901760, %v7278_v36 }
  0xeb   : >> { %v7767_v34 = vsub.f32 %v7251_v23, %v10249_v39  ;;  %v9980_v28 = vand.u32 4294901760, %v7753_v16  ;;  %v7777_v41 = vsub.f32 %v7253_v24, %v10250_v47  ;;  %v891_v23 = vsub.f32 %v7744_v32, %v9976_v31 }
  0xec   : >> { %v9981_v46 = vand.u32 4294901760, %v7762_v22  ;;  %v2579_v39 = vsub.f32 %v7747_v55, %v9979_v51  ;;  %v885_v53 = vand.u32 4294901760, %v884_v45  ;;  %4886 = vmatmul.mubr.f32.vlgmr.msra.gmra.mrb[0].mxu1 %v840_v62  ;;  %v7800_v45 = vsub.f32 %v7278_v36, %v10251_v14  ;;  %v7810_v55 = vld [vmem:[#allocation2 + $0x48] sm:$0xff] }
  0xed   : >> { %v9984_v20 = vand.u32 4294901760, %v7767_v34  ;;  %v2624_v17 = vsub.f32 %v7753_v16, %v9980_v28  ;;  %v9989_v24 = vand.u32 4294901760, %v7777_v41  ;;  %v892_v3 = vand.u32 4294901760, %v891_v23  ;;  %5800 = vmatpush3.bf16.msra.mxu1 %v5797_v12 }
  0xee   : >> { %v2631_v47 = vsub.f32 %v7762_v22, %v9981_v46  ;;  %v2580_v51 = vand.u32 4294901760, %v2579_v39  ;;  %v10252_v23 = vand.u32 4294901760, %v7287_v44  ;;  %v9994_v36 = vand.u32 4294901760, %v7800_v45 }
  0xef   : >> { %v898_v31 = vsub.f32 %v7767_v34, %v9984_v20  ;;  %v2625_v28 = vand.u32 4294901760, %v2624_v17  ;;  %v905_v62 = vsub.f32 %v7777_v41, %v9989_v24  ;;  %v5801_v20 = vpack.c.bf16 %v892_v3, %v885_v53 }
  0xf0   : >> { %v7808_v46 = vsub.f32 %v7287_v44, %v10252_v23  ;;  %v2632_v18 = vand.u32 4294901760, %v2631_v47  ;;  %5342 = vmatmul.mubr.f32.vlgmr.msra.gmra.mrb[0].mxu0 %v2580_v51  ;;  %v10253_v12 = vand.u32 4294901760, %v7323_v43  ;;  %v10254_v24 = vand.u32 4294901760, %v7325_v35 }
  0xf1   : >> { %v899_v63 = vand.u32 4294901760, %v898_v31  ;;  %v906_v14 = vand.u32 4294901760, %v905_v62  ;;  %6184 = vmatpush3.bf16.msra.mxu0 %v6181_v4  ;;  %5802 = vmatprep.subr.bf16.mxu1 %v5801_v20  ;;  %v2638_v31 = vsub.f32 %v7800_v45, %v9994_v36  ;;  %v10255_v51 = vand.u32 4294901760, %v7359_v56 }
  0xf2   : >> { %v9992_v17 = vand.u32 4294901760, %v7808_v46  ;;  %v7817_v39 = vsub.f32 %v7323_v43, %v10253_v12  ;;  %v7822_v44 = vsub.f32 %v7325_v35, %v10254_v24  ;;  %v6185_v53 = vpack.c.bf16 %v2632_v18, %v2625_v28  ;;  %5804 = vmatpush3.bf16.msra.mxu1 %v5801_v20 }
  0xf3   : >> { %v7830_v3 = vsub.f32 %v7359_v56, %v10255_v51  ;;  %v7833_v43 = vand.u32 4294901760, %v7810_v55  ;;  %v5805_v47 = vpack.c.bf16 %v906_v14, %v899_v63  ;;  %v2639_v28 = vand.u32 4294901760, %v2638_v31 }
  0xf4   : >> { %v2645_v35 = vsub.f32 %v7808_v46, %v9992_v17  ;;  %v9991_v18 = vand.u32 4294901760, %v7817_v39  ;;  %v9990_v4 = vand.u32 4294901760, %v7822_v44  ;;  %6186 = vmatprep.subr.bf16.mxu0 %v6185_v53  ;;  %v10257_v56 = vand.u32 4294901760, %v7365_v38 }
  0xf5   : >> { %10256 = vst [vmem:[#allocation50_spill] sm:$0xff] %v7833_v43  ;;  %v9993_v24 = vand.u32 4294901760, %v7830_v3  ;;  %v10258_v20 = vand.u32 4294901760, %v7394_v58  ;;  %5806 = vmatprep.subr.bf16.mxu1 %v5805_v47  ;;  %v10259_v31 = vand.u32 4294901760, %v7402_v5  ;;  %6188 = vmatpush3.bf16.msra.mxu0 %v6185_v53 }
  0xf6   : >> { %v7844_v62 = vsub.f32 %v7365_v38, %v10257_v56  ;;  %v2646_v23 = vand.u32 4294901760, %v2645_v35  ;;  %v912_v14 = vsub.f32 %v7817_v39, %v9991_v18  ;;  %v919_v12 = vsub.f32 %v7822_v44, %v9990_v4  ;;  %5808 = vmatpush3.bf16.msra.mxu1 %v5805_v47 }
  0xf7   : >> { %v7849_v63 = vsub.f32 %v7394_v58, %v10258_v20  ;;  %v7860_v38 = vsub.f32 %v7402_v5, %v10259_v31  ;;  %v2652_v58 = vsub.f32 %v7830_v3, %v9993_v24  ;;  %v10260_v56 = vand.u32 4294901760, %v7430_v19 }
  0xf8   : >> { %v10002_v51 = vand.u32 4294901760, %v7844_v62  ;;  %v6189_v4 = vpack.c.bf16 %v2646_v23, %v2639_v28  ;;  %v913_v18 = vand.u32 4294901760, %v912_v14  ;;  %v920_v17 = vand.u32 4294901760, %v919_v12 }
  0xf9   : >> { %v9996_v35 = vand.u32 4294901760, %v7849_v63  ;;  %v7870_v20 = vsub.f32 %v7430_v19, %v10260_v56  ;;  %v9995_v5 = vand.u32 4294901760, %v7860_v38  ;;  %v2653_v53 = vand.u32 4294901760, %v2652_v58 }
  0xfa   : >> { %v2659_v31 = vsub.f32 %v7844_v62, %v10002_v51  ;;  %6190 = vmatprep.subr.bf16.mxu0 %v6189_v4  ;;  %v5809_v19 = vpack.c.bf16 %v920_v17, %v913_v18  ;;  %v10261_v28 = vand.u32 4294901760, %v7439_v6  ;;  %v10262_v14 = vand.u32 4294901760, %v7475_v25 }
  0xfb   : >> { %v926_v24 = vsub.f32 %v7849_v63, %v9996_v35  ;;  %v9997_v36 = vand.u32 4294901760, %v7870_v20  ;;  %v933_v47 = vsub.f32 %v7860_v38, %v9995_v5  ;;  %6192 = vmatpush3.bf16.msra.mxu0 %v6189_v4  ;;  %v10263_v18 = vand.u32 4294901760, %v7477_v10 }
  0xfc   : >> { %v7886_v23 = vsub.f32 %v7439_v6, %v10261_v28  ;;  %v7891_v12 = vsub.f32 %v7475_v25, %v10262_v14  ;;  %v2660_v58 = vand.u32 4294901760, %v2659_v31  ;;  %5810 = vmatprep.subr.bf16.mxu1 %v5809_v19  ;;  %v10264_v25 = vand.u32 4294901760, %v7511_v59 }
  0xfd   : >> { %v927_v56 = vand.u32 4294901760, %v926_v24  ;;  %v2666_v17 = vsub.f32 %v7870_v20, %v9997_v36  ;;  %v7899_v5 = vsub.f32 %v7477_v10, %v10263_v18  ;;  %v934_v6 = vand.u32 4294901760, %v933_v47  ;;  %5812 = vmatpush3.bf16.msra.mxu1 %v5809_v19 }
  0xfe   : >> { %v10000_v28 = vand.u32 4294901760, %v7886_v23  ;;  %v9999_v35 = vand.u32 4294901760, %v7891_v12  ;;  %v7906_v4 = vsub.f32 %v7511_v59, %v10264_v25  ;;  %v6193_v24 = vpack.c.bf16 %v2660_v58, %v2653_v53 }
  0xff   : >> { %v2667_v31 = vand.u32 4294901760, %v2666_v17  ;;  %v9998_v14 = vand.u32 4294901760, %v7899_v5  ;;  %v10265_v36 = vand.u32 4294901760, %v7517_v9  ;;  %v5813_v47 = vpack.c.bf16 %v934_v6, %v927_v56 }
 0x100   : >> { %v2673_v18 = vsub.f32 %v7886_v23, %v10000_v28  ;;  %v940_v59 = vsub.f32 %v7891_v12, %v9999_v35  ;;  %v10001_v53 = vand.u32 4294901760, %v7906_v4  ;;  %6194 = vmatprep.subr.bf16.mxu0 %v6193_v24  ;;  %v10267_v56 = vand.u32 4294901760, %v7554_v0 }
 0x101   : >> { %v7912_v10 = vsub.f32 %v7517_v9, %v10265_v36  ;;  %v947_v19 = vsub.f32 %v7899_v5, %v9998_v14  ;;  %v10266_v9 = vand.u32 4294901760, %v7546_v37  ;;  %6196 = vmatpush3.bf16.msra.mxu0 %v6193_v24  ;;  %5814 = vmatprep.subr.bf16.mxu1 %v5813_v47  ;;  %v10268_v35 = vand.u32 4294901760, %v7582_v8 }
 0x102   : >> { %v7933_v17 = vsub.f32 %v7554_v0, %v10267_v56  ;;  %v2674_v6 = vand.u32 4294901760, %v2673_v18  ;;  %v941_v25 = vand.u32 4294901760, %v940_v59  ;;  %v2680_v14 = vsub.f32 %v7906_v4, %v10001_v53  ;;  %5816 = vmatpush3.bf16.msra.mxu1 %v5813_v47 }
 0x103   : >> { %v10006_v58 = vand.u32 4294901760, %v7912_v10  ;;  %v7928_v36 = vsub.f32 %v7546_v37, %v10266_v9  ;;  %v7941_v28 = vsub.f32 %v7582_v8, %v10268_v35  ;;  %v948_v37 = vand.u32 4294901760, %v947_v19 }
 0x104   : >> { %v10003_v18 = vand.u32 4294901760, %v7933_v17  ;;  %v6197_v59 = vpack.c.bf16 %v2674_v6, %v2667_v31  ;;  %v2681_v9 = vand.u32 4294901760, %v2680_v14  ;;  %v10269_v53 = vand.u32 4294901760, %v7591_v50 }
 0x105   : >> { %v2687_v0 = vsub.f32 %v7912_v10, %v10006_v58  ;;  %v10004_v24 = vand.u32 4294901760, %v7928_v36  ;;  %v10005_v56 = vand.u32 4294901760, %v7941_v28  ;;  %v5817_v8 = vpack.c.bf16 %v948_v37, %v941_v25  ;;  %v2483_v25 = vld [vmem:[#allocation2 + $0x50] sm:$0xff] }
 0x106   : >> { %v7952_v51 = vsub.f32 %v7591_v50, %v10269_v53  ;;  %v961_v19 = vsub.f32 %v7933_v17, %v10003_v18  ;;  %6198 = vmatprep.subr.bf16.mxu0 %v6197_v59  ;;  %v7966_v50 = vsub.f32 %v7810_v55, %v7833_v43  ;;  %v10271_v53 = vand.u32 4294901760, %v7627_v60 }
 0x107   : >> { %v2688_v35 = vand.u32 4294901760, %v2687_v0  ;;  %v954_v47 = vsub.f32 %v7928_v36, %v10004_v24  ;;  %v2694_v31 = vsub.f32 %v7941_v28, %v10005_v56  ;;  %6200 = vmatpush3.bf16.msra.mxu0 %v6197_v59  ;;  %5818 = vmatprep.subr.bf16.mxu1 %v5817_v8  ;;  %v10272_v24 = vand.u32 4294901760, %v7629_v30  ;;  %v744_v59 = vld [vmem:[#allocation2 + $0x68] sm:$0xff] }
 0x108   : >> { %v10008_v14 = vand.u32 4294901760, %v7952_v51  ;;  %10270 = vst [vmem:[#allocation51_spill] sm:$0xff] %v7966_v50  ;;  %v7971_v6 = vsub.f32 %v7627_v60, %v10271_v53  ;;  %v962_v18 = vand.u32 4294901760, %v961_v19  ;;  %5820 = vmatpush3.bf16.msra.mxu1 %v5817_v8  ;;  %v10007_v60 = vand.u32 4294901760, %v7966_v50 }
 0x109   : >> { %v6201_v37 = vpack.c.bf16 %v2688_v35, %v2681_v9  ;;  %v955_v0 = vand.u32 4294901760, %v954_v47  ;;  %v7976_v56 = vsub.f32 %v7629_v30, %v10272_v24  ;;  %v2695_v58 = vand.u32 4294901760, %v2694_v31 }
 0x10a   : >> { %v2701_v55 = vsub.f32 %v7952_v51, %v10008_v14  ;;  %v10009_v53 = vand.u32 4294901760, %v7971_v6  ;;  %v7984_v47 = vand.u32 4294901760, %v2483_v25  ;;  %v10274_v30 = vand.u32 4294901760, %v7666_v33  ;;  %v2484_v14 = vld [vmem:[#allocation2 + $0x70] sm:$0xff] }
 0x10b   : >> { %6202 = vmatprep.subr.bf16.mxu0 %v6201_v37  ;;  %v5821_v9 = vpack.c.bf16 %v962_v18, %v955_v0  ;;  %v10014_v35 = vand.u32 4294901760, %v7976_v56  ;;  %v849_v19 = vsub.f32 %v7966_v50, %v10007_v60  ;;  %v10275_v18 = vand.u32 4294901760, %v7680_v7 }
 0x10c   : >> { %10273 = vst [vmem:[#allocation52_spill] sm:$0xff] %v7984_v47  ;;  %v7989_v24 = vsub.f32 %v7666_v33, %v10274_v30  ;;  %v2702_v8 = vand.u32 4294901760, %v2701_v55  ;;  %v968_v31 = vsub.f32 %v7971_v6, %v10009_v53  ;;  %6204 = vmatpush3.bf16.msra.mxu0 %v6201_v37  ;;  %v8006_v55 = vsub.f32 %v2483_v25, %v7984_v47 }
 0x10d   : >> { %v8000_v0 = vsub.f32 %v7680_v7, %v10275_v18  ;;  %5822 = vmatprep.subr.bf16.mxu1 %v5821_v9  ;;  %v975_v33 = vsub.f32 %v7976_v56, %v10014_v35  ;;  %v8009_v60 = vand.u32 4294901760, %v744_v59  ;;  %v850_v50 = vand.u32 4294901760, %v849_v19 }
 0x10e   : >> { %v10017_v30 = vand.u32 4294901760, %v7989_v24  ;;  %v6205_v53 = vpack.c.bf16 %v2702_v8, %v2695_v58  ;;  %5824 = vmatpush3.bf16.msra.mxu1 %v5821_v9  ;;  %v969_v27 = vand.u32 4294901760, %v968_v31  ;;  %v10024_v18 = vand.u32 4294901760, %v8006_v55 }
 0x10f   : >> { %10276 = vst [vmem:[#allocation53_spill] sm:$0xff] %v8000_v0  ;;  %10277 = vst [vmem:[#allocation54_spill] sm:$0xff] %v8009_v60  ;;  %v2714_v7 = vand.u32 4294901760, %v8000_v0  ;;  %v976_v37 = vand.u32 4294901760, %v975_v33  ;;  %v8017_v25 = vsub.f32 %v744_v59, %v8009_v60  ;;  %4888 = vmatprep.mubr.f32.mxu1 %v850_v50  ;;  %v8020_v58 = vand.u32 4294901760, %v2484_v14 }
 0x110   : >> { %v2708_v35 = vsub.f32 %v7989_v24, %v10017_v30  ;;  %6206 = vmatprep.subr.bf16.mxu0 %v6205_v53  ;;  %v5829_v9 = vpack.c.bf16 %v7671_v21, %v7663_v13  ;;  %v2589_v19 = vsub.f32 %v8006_v55, %v10024_v18 }
 0x111   : >> { %v2715_v2 = vsub.f32 %v8000_v0, %v2714_v7  ;;  %10278 = vst [vmem:[#allocation55_spill] sm:$0xff] %v8020_v58  ;;  %6208 = vmatpush3.bf16.msra.mxu0 %v6205_v53  ;;  %v5825_v8 = vpack.c.bf16 %v976_v37, %v969_v27  ;;  %v10023_v33 = vand.u32 4294901760, %v8017_v25  ;;  %v8029_v30 = vsub.f32 %v2484_v14, %v8020_v58 }
 0x112   : >> { %v2709_v31 = vand.u32 4294901760, %v2708_v35  ;;  %v2590_v50 = vand.u32 4294901760, %v2589_v19  ;;  %v6213_v53 = vpack.c.bf16 %v7690_v29, %v7678_v54  ;;  %v5833_v14 = vpack.c.bf16 %v7744_v32, %v7737_v40 }
 0x113   : >> { %v2716_v59 = vand.u32 4294901760, %v2715_v2  ;;  %5826 = vmatprep.subr.bf16.mxu1 %v5825_v8  ;;  %v859_v0 = vsub.f32 %v8017_v25, %v10023_v33  ;;  %v10022_v27 = vand.u32 4294901760, %v8029_v30  ;;  %v10279_v37 = vand.u32 4294901760, %v7663_v13 }
 0x114   : >> { %5828 = vmatpush3.bf16.msra.mxu1 %v5825_v8  ;;  %5344 = vmatprep.mubr.f32.mxu0 %v2590_v50  ;;  %v10280_v8 = vand.u32 4294901760, %v7671_v21  ;;  %v10285_v13 = vand.u32 4294901760, %v7753_v16  ;;  %v10286_v21 = vand.u32 4294901760, %v7762_v22 }
 0x115   : >> { %v6209_v1 = vpack.c.bf16 %v2716_v59, %v2709_v31  ;;  %v860_v35 = vand.u32 4294901760, %v859_v0  ;;  %5830 = vmatprep.subr.bf16.mxu1 %v5829_v9  ;;  %v2599_v2 = vsub.f32 %v8029_v30, %v10022_v27  ;;  %v10281_v0 = vand.u32 4294901760, %v7678_v54 }
 0x116   : >> { %v8046_v19 = vpack.c.bf16 %v10280_v8, %v10279_v37  ;;  %v10282_v59 = vand.u32 4294901760, %v7690_v29  ;;  %v10287_v37 = vand.u32 4294901760, %v7767_v34  ;;  %v10288_v54 = vand.u32 4294901760, %v7777_v41 }
 0x117   : >> { %6210 = vmatprep.subr.bf16.mxu0 %v6209_v1  ;;  %4889 = vmatmul.mubr.f32.gmra.mrb[2].mxu1 %v860_v35  ;;  %v2600_v31 = vand.u32 4294901760, %v2599_v2  ;;  %v10284_v35 = vand.u32 4294901760, %v7744_v32  ;;  %v8065_v2 = vpack.c.bf16 %v10286_v21, %v10285_v13  ;;  %v10289_v29 = vand.u32 4294901760, %v7800_v45 }
 0x118   : >> { %6212 = vmatpush3.bf16.msra.mxu0 %v6209_v1  ;;  %4923 = vmatprep.mubr.f32.mxu1 %v7658_v52  ;;  %v8053_v50 = vpack.c.bf16 %v10282_v59, %v10281_v0  ;;  %v10283_v1 = vand.u32 4294901760, %v7737_v40  ;;  %v8071_v8 = vpack.c.bf16 %v10288_v54, %v10287_v37  ;;  %v10290_v40 = vand.u32 4294901760, %v7808_v46 }
 0x119   : >> { %6214 = vmatprep.subr.bf16.mxu0 %v6213_v53  ;;  %v10291_v32 = vand.u32 4294901760, %v7817_v39  ;;  %v10292_v59 = vand.u32 4294901760, %v7822_v44  ;;  %v10295_v13 = vand.u32 4294901760, %v7844_v62  ;;  %5345 = vmatmul.mubr.f32.gmra.mrb[2].mxu0 %v2600_v31  ;;  %v10296_v37 = vand.u32 4294901760, %v7849_v63 }
 0x11a   : >> { %v8059_v27 = vpack.c.bf16 %v10284_v35, %v10283_v1  ;;  %v8077_v0 = vpack.c.bf16 %v10290_v40, %v10289_v29  ;;  %v10294_v35 = vand.u32 4294901760, %v7830_v3  ;;  %v10297_v54 = vand.u32 4294901760, %v7860_v38  ;;  %5379 = vmatprep.mubr.f32.mxu0 %v7673_v61 }
 0x11b   : >> { %v8083_v1 = vpack.c.bf16 %v10292_v59, %v10291_v32  ;;  %v10298_v29 = vand.u32 4294901760, %v7870_v20  ;;  %v10299_v40 = vand.u32 4294901760, %v7886_v23  ;;  %v10300_v32 = vand.u32 4294901760, %v7891_v12  ;;  %4924 = vmatmul.mubr.f32.vlgmr.msra.gmra.mrb[0].mxu1 %v7711_v57 }
 0x11c   : >> { %v8089_v21 = vpack.c.bf16 %v10295_v13, %v10294_v35  ;;  %v8095_v33 = vpack.c.bf16 %v10297_v54, %v10296_v37  ;;  %v10301_v59 = vand.u32 4294901760, %v7899_v5  ;;  %v10303_v31 = vand.u32 4294901760, %v7906_v4  ;;  %5832 = vmatpush3.bf16.msra.mxu1 %v5829_v9  ;;  %4926 = vmatprep.mubr.f32.mxu1 %v7833_v43 }
 0x11d   : >> { %10293 = vst [vmem:[#allocation56_spill] sm:$0xff] %v8083_v1  ;;  %v8101_v18 = vpack.c.bf16 %v10299_v40, %v10298_v29  ;;  %v10304_v35 = vand.u32 4294901760, %v7912_v10  ;;  %v10305_v37 = vand.u32 4294901760, %v7928_v36  ;;  %v10306_v54 = vand.u32 4294901760, %v7933_v17  ;;  %5834 = vmatprep.subr.bf16.mxu1 %v5833_v14  ;;  %5380 = vmatmul.mubr.f32.vlgmr.msra.gmra.mrb[0].mxu0 %v7732_v48 }
 0x11e   : >> { %v8107_v1 = vpack.c.bf16 %v10301_v59, %v10300_v32  ;;  %v10307_v40 = vand.u32 4294901760, %v7941_v28  ;;  %v10308_v32 = vand.u32 4294901760, %v7952_v51  ;;  %v6217_v57 = vpack.c.bf16 %v7762_v22, %v7753_v16  ;;  %6216 = vmatpush3.bf16.msra.mxu0 %v6213_v53  ;;  %5382 = vmatprep.mubr.f32.mxu0 %v7984_v47 }
 0x11f   : >> { %v8113_v13 = vpack.c.bf16 %v10304_v35, %v10303_v31  ;;  %v8121_v29 = vpack.c.bf16 %v10306_v54, %v10305_v37  ;;  %v10310_v31 = vand.u32 4294901760, %v7976_v56  ;;  %v10311_v37 = vand.u32 4294901760, %v7989_v24  ;;  %4927 = vmatmul.mubr.f32.gmra.mrb[2].mxu1 %v8009_v60 }
 0x120   : >> { %10302 = vst [vmem:[#allocation57_spill] sm:$0xff] %v8107_v1  ;;  %v8127_v59 = vpack.c.bf16 %v10308_v32, %v10307_v40  ;;  %v10309_v1 = vand.u32 4294901760, %v7971_v6  ;;  %v5837_v40 = vpack.c.bf16 %v7777_v41, %v7767_v34  ;;  %6218 = vmatprep.subr.bf16.mxu0 %v6217_v57  ;;  %5836 = vmatpush3.bf16.msra.mxu1 %v5833_v14 }
 0x121   : >> { %v8140_v54 = vpack.c.bf16 %v2714_v7, %v10311_v37  ;;  %v6221_v16 = vpack.c.bf16 %v7808_v46, %v7800_v45  ;;  %v5841_v22 = vpack.c.bf16 %v7822_v44, %v7817_v39  ;;  %5383 = vmatmul.mubr.f32.gmra.mrb[2].mxu0 %v8020_v58  ;;  %4961 = vmatprep.mubr.f32.mxu1 %v7684_v15  ;;  %v4360_v44 = vadd.s32 4294966912, %v7004_v42  ;;  %v10316_v7 = vld [vmem:[#allocation26_spill] sm:$0xff] }
 0x122   : >> { %v8133_v35 = vpack.c.bf16 %v10310_v31, %v10309_v1  ;;  %5838 = vmatprep.subr.bf16.mxu1 %v5837_v40  ;;  %6220 = vmatpush3.bf16.msra.mxu0 %v6217_v57  ;;  %v6225_v34 = vpack.c.bf16 %v7844_v62, %v7830_v3  ;;  %v5845_v41 = vpack.c.bf16 %v7860_v38, %v7849_v63  ;;  %v4361_v3 = vadd.s32 4294966912, %v7008_v26  ;;  %v10312_v62 = vld [vmem:[#allocation8_spill] sm:$0xff]  ;;  %v10313_v63 = vld [vmem:[#allocation9_spill] sm:$0xff] }
 0x123   : >> { %5417 = vmatprep.mubr.f32.mxu0 %v7695_v11  ;;  %6222 = vmatprep.subr.bf16.mxu0 %v6221_v16  ;;  %v8160_v46 = vrot.slane %v7004_v42, %v6992_v49  ;;  %v8164_v45 = vrot.slane %v7008_v26, %v6992_v49  ;;  %v6229_v57 = vpack.c.bf16 %v7886_v23, %v7870_v20  ;;  %v10314_v38 = vld [vmem:[#allocation25_spill] sm:$0xff]  ;;  %v10315_v23 = vld [vmem:[#allocation24_spill] sm:$0xff] }
 0x124   : >> { %5840 = vmatpush3.bf16.msra.mxu1 %v5837_v40  ;;  %v5849_v39 = vpack.c.bf16 %v7899_v5, %v7891_v12  ;;  %v8182_v20 = vrot.slane %v10314_v38, %v6992_v49  ;;  %v6233_v42 = vpack.c.bf16 %v7912_v10, %v7906_v4  ;;  %v5853_v26 = vpack.c.bf16 %v7933_v17, %v7928_v36  ;;  %v10317_v10 = vld [vmem:[#allocation29_spill] sm:$0xff] }
 0x125   : >> { %5842 = vmatprep.subr.bf16.mxu1 %v5841_v22  ;;  %vm337_vm4 = vcmp.eq.s32.totalorder %v10312_v62, %v8160_v46  ;;  %vm377_vm5 = vcmp.eq.s32.totalorder %v10312_v62, %v8164_v45  ;;  %vm338_vm6 = vcmp.eq.s32.totalorder %v10313_v63, %v8160_v46  ;;  %vm378_vm7 = vcmp.eq.s32.totalorder %v10313_v63, %v8164_v45 }
 0x126   : >> { %6224 = vmatpush3.bf16.msra.mxu0 %v6221_v16  ;;  %v4362_v5 = vadd.s32 4294966912, %v10314_v38  ;;  %v357_v12 = vsel %vm337_vm4, %v10315_v23, 0.0  ;;  %v397_v9 = vsel %vm377_vm5, %v10316_v7, 0.0  ;;  %v8192_v53 = vrot.slane %v4360_v44, %v6992_v49  ;;  %v10318_v16 = vld [vmem:[#allocation27_spill] sm:$0xff]  ;;  %v10320_v44 = vld [vmem:[#allocation28_spill] sm:$0xff] }
 0x127   : >> { %6226 = vmatprep.subr.bf16.mxu0 %v6225_v34  ;;  %v8195_v14 = vrot.slane %v4361_v3, %v6992_v49  ;;  %v358_v1 = vsel %vm338_vm6, %v10315_v23, 0.0  ;;  %v398_v4 = vsel %vm378_vm7, %v10316_v7, 0.0  ;;  %v8201_v36 = vrot.slane %v10317_v10, %v6992_v49 }
 0x128   : >> { %5844 = vmatpush3.bf16.msra.mxu1 %v5841_v22  ;;  %vm433_vm8 = vcmp.eq.s32.totalorder %v10312_v62, %v8182_v20  ;;  %vm434_vm9 = vcmp.eq.s32.totalorder %v10313_v63, %v8182_v20  ;;  %v6237_v17 = vpack.c.bf16 %v7952_v51, %v7941_v28  ;;  %v5857_v32 = vpack.c.bf16 %v7976_v56, %v7971_v6  ;;  %v10319_v28 = vld [vmem:[#allocation53_spill] sm:$0xff] }
 0x129   : >> { %5846 = vmatprep.subr.bf16.mxu1 %v5845_v41  ;;  %v413_v31 = vadd.f32 %v397_v9, %v357_v12  ;;  %v414_v37 = vadd.f32 %v398_v4, %v358_v1  ;;  %vm3267_vm10 = vcmp.eq.s32.totalorder %v10312_v62, %v8192_v53  ;;  %vm3303_vm11 = vcmp.eq.s32.totalorder %v10312_v62, %v8195_v14  ;;  %v10321_v9 = vld [vmem:[#allocation10_spill] sm:$0xff] }
 0x12a   : >> { %6228 = vmatpush3.bf16.msra.mxu0 %v6225_v34  ;;  %v8216_v40 = vrot.slane %v4362_v5, %v6992_v49  ;;  %v453_v22 = vsel %vm433_vm8, %v10318_v16, 0.0  ;;  %v454_v34 = vsel %vm434_vm9, %v10318_v16, 0.0  ;;  %vm489_vm12 = vcmp.eq.s32.totalorder %v10312_v62, %v8201_v36  ;;  %v10322_v1 = vld [vmem:[#allocation30_spill] sm:$0xff] }
 0x12b   : >> { %6230 = vmatprep.subr.bf16.mxu0 %v6229_v57  ;;  %v4363_v51 = vadd.s32 4294966912, %v10317_v10  ;;  %vm490_vm13 = vcmp.eq.s32.totalorder %v10313_v63, %v8201_v36  ;;  %vm3268_vm14 = vcmp.eq.s32.totalorder %v10313_v63, %v8192_v53  ;;  %vm3304_vm15 = vcmp.eq.s32.totalorder %v10313_v63, %v8195_v14 }
 0x12c   : >> { %5848 = vmatpush3.bf16.msra.mxu1 %v5845_v41  ;;  %v6241_v56 = vpack.c.bf16 %v10319_v28, %v7989_v24  ;;  %v3283_v6 = vsel %vm3267_vm10, %v10315_v23, 0.0  ;;  %v3319_v41 = vsel %vm3303_vm11, %v10316_v7, 0.0  ;;  %v509_v3 = vsel %vm489_vm12, %v10320_v44, 0.0  ;;  %v10328_v28 = vld [vmem:[#allocation32_spill] sm:$0xff] }
 0x12d   : >> { %5850 = vmatprep.subr.bf16.mxu1 %v5849_v39  ;;  %vm3355_vm0 = vcmp.eq.s32.totalorder %v10312_v62, %v8216_v40  ;;  %v510_v38 = vsel %vm490_vm13, %v10320_v44, 0.0  ;;  %v8240_v24 = vrot.slane %v4363_v51, %v6992_v49  ;;  %v3335_v5 = vadd.f32 %v3319_v41, %v3283_v6  ;;  %v10327_v51 = vld [vmem:[#allocation31_spill] sm:$0xff] }
 0x12e   : >> { %6232 = vmatpush3.bf16.msra.mxu0 %v6229_v57  ;;  %v469_v57 = vadd.f32 %v453_v22, %v413_v31  ;;  %vm3356_vm1 = vcmp.eq.s32.totalorder %v10313_v63, %v8216_v40  ;;  %v3371_v12 = vsel %vm3355_vm0, %v10318_v16, 0.0  ;;  %vm339_vm2 = vcmp.eq.s32.totalorder %v10321_v9, %v8160_v46  ;;  %v10326_v31 = vld [vmem:[#allocation47_spill] sm:$0xff] }
 0x12f   : >> { %6234 = vmatprep.subr.bf16.mxu0 %v6233_v42  ;;  %vm379_vm3 = vcmp.eq.s32.totalorder %v10321_v9, %v8164_v45  ;;  %vm3407_vm4 = vcmp.eq.s32.totalorder %v10312_v62, %v8240_v24  ;;  %vm3408_vm5 = vcmp.eq.s32.totalorder %v10313_v63, %v8240_v24  ;;  %v359_v22 = vsel %vm339_vm2, %v10315_v23, 0.0 }
 0x130   : >> { %5852 = vmatpush3.bf16.msra.mxu1 %v5849_v39  ;;  %v470_v39 = vadd.f32 %v454_v34, %v414_v37  ;;  %v8250_v4 = vadd.f32 %v509_v3, %v469_v57  ;;  %v3387_v37 = vadd.f32 %v3371_v12, %v3335_v5  ;;  %v399_v34 = vsel %vm379_vm3, %v10316_v7, 0.0  ;;  %v10330_v3 = vld [vmem:[#allocation49_spill] sm:$0xff] }
 0x131   : >> { %5854 = vmatprep.subr.bf16.mxu1 %v5853_v26  ;;  %vm435_vm8 = vcmp.eq.s32.totalorder %v10321_v9, %v8182_v20  ;;  %vm3269_vm9 = vcmp.eq.s32.totalorder %v10321_v9, %v8192_v53  ;;  %vm3305_vm10 = vcmp.eq.s32.totalorder %v10321_v9, %v8195_v14  ;;  %v3423_v41 = vsel %vm3407_vm4, %v10320_v44, 0.0  ;;  %v10331_v5 = vld [vmem:[#allocation33_spill] sm:$0xff] }
 0x132   : >> { %6236 = vmatpush3.bf16.msra.mxu0 %v6233_v42  ;;  %v3284_v42 = vsel %vm3268_vm14, %v10315_v23, 0.0  ;;  %10323 = vst [vmem:[#allocation25_spill] sm:$0xff] %v8250_v4  ;;  %v8252_v49 = vadd.f32 %v510_v38, %v470_v39  ;;  %v3424_v57 = vsel %vm3408_vm5, %v10320_v44, 0.0  ;;  %v455_v62 = vsel %vm435_vm8, %v10318_v16, 0.0 }
 0x133   : >> { %6238 = vmatprep.subr.bf16.mxu0 %v6237_v17  ;;  %v3285_v63 = vsel %vm3269_vm9, %v10315_v23, 0.0  ;;  %v8312_v12 = vadd.f32 %v3423_v41, %v3387_v37  ;;  %vm491_vm14 = vcmp.eq.s32.totalorder %v10321_v9, %v8201_v36  ;;  %v10334_v41 = vand.u32 4294901760, %v7684_v15 }
 0x134   : >> { %5856 = vmatpush3.bf16.msra.mxu1 %v5853_v26  ;;  %v3320_v26 = vsel %vm3304_vm15, %v10316_v7, 0.0  ;;  %10324 = vst [vmem:[#allocation24_spill] sm:$0xff] %v8252_v49  ;;  %vm3357_vm15 = vcmp.eq.s32.totalorder %v10321_v9, %v8216_v40  ;;  %v511_v15 = vsel %vm491_vm14, %v10320_v44, 0.0  ;;  %vm3409_vm2 = vcmp.eq.s32.totalorder %v10321_v9, %v8240_v24 }
 0x135   : >> { %5858 = vmatprep.subr.bf16.mxu1 %v5857_v32  ;;  %v3336_v10 = vadd.f32 %v3320_v26, %v3284_v42  ;;  %v415_v42 = vadd.f32 %v399_v34, %v359_v22  ;;  %v3321_v26 = vsel %vm3305_vm10, %v10316_v7, 0.0  ;;  %10332 = vst [vmem:[#allocation26_spill] sm:$0xff] %v8312_v12 }
 0x136   : >> { %6240 = vmatpush3.bf16.msra.mxu0 %v6237_v17  ;;  %v3372_v17 = vsel %vm3356_vm1, %v10318_v16, 0.0 }
 0x137   : >> { %6242 = vmatprep.subr.bf16.mxu0 %v6241_v56  ;;  %v3388_v6 = vadd.f32 %v3372_v17, %v3336_v10  ;;  %v10333_v10 = vld [vmem:[#allocation34_spill] sm:$0xff] }
 0x138   : >> { %5860 = vmatpush3.bf16.msra.mxu1 %v5857_v32  ;;  %v10325_v32 = vld [vmem:[#allocation11_spill] sm:$0xff] }
 0x139   : >> { %5862 = vmatprep.subr.bf16.mxu1 %v10322_v1  ;;  %vm340_vm6 = vcmp.eq.s32.totalorder %v10325_v32, %v8160_v46  ;;  %vm380_vm7 = vcmp.eq.s32.totalorder %v10325_v32, %v8164_v45  ;;  %vm3270_vm11 = vcmp.eq.s32.totalorder %v10325_v32, %v8192_v53  ;;  %vm3306_vm12 = vcmp.eq.s32.totalorder %v10325_v32, %v8195_v14 }
 0x13a   : >> { %6244 = vmatpush3.bf16.msra.mxu0 %v6241_v56  ;;  %v10329_v56 = vld [vmem:[#allocation51_spill] sm:$0xff]  ;;  %v360_v39 = vsel %vm340_vm6, %v10315_v23, 0.0  ;;  %v400_v38 = vsel %vm380_vm7, %v10316_v7, 0.0  ;;  %vm436_vm13 = vcmp.eq.s32.totalorder %v10325_v32, %v8182_v20  ;;  %v8320_v17 = vadd.f32 %v3424_v57, %v3388_v6 }
 0x13b   : >> { %4962 = vmatmul.mubr.f32.vlgmr.msra.gmra.mrb[0].mxu1 %v10326_v31  ;;  %6246 = vmatprep.subr.bf16.mxu0 %v10327_v51  ;;  %v416_v22 = vadd.f32 %v400_v38, %v360_v39  ;;  %v3286_v34 = vsel %vm3270_vm11, %v10315_v23, 0.0  ;;  %v3322_v37 = vsel %vm3306_vm12, %v10316_v7, 0.0  ;;  %v456_v6 = vsel %vm436_vm13, %v10318_v16, 0.0 }
 0x13c   : >> { %5864 = vmatpush3.bf16.msra.mxu1 %v10322_v1  ;;  %4964 = vmatprep.mubr.f32.mxu1 %v10329_v56  ;;  %v471_v57 = vadd.f32 %v455_v62, %v415_v42  ;;  %v3337_v39 = vadd.f32 %v3321_v26, %v3285_v63  ;;  %vm3358_vm0 = vcmp.eq.s32.totalorder %v10325_v32, %v8216_v40  ;;  %v10335_v38 = vand.u32 4294901760, %v7695_v11  ;;  %v10336_v42 = vld [vmem:[#allocation35_spill] sm:$0xff] }
 0x13d   : >> { %5866 = vmatprep.subr.bf16.mxu1 %v10328_v28  ;;  %5418 = vmatmul.mubr.f32.vlgmr.msra.gmra.mrb[0].mxu0 %v10330_v3  ;;  %v3338_v26 = vadd.f32 %v3322_v37, %v3286_v34  ;;  %v472_v60 = vadd.f32 %v456_v6, %v416_v22  ;;  %vm492_vm1 = vcmp.eq.s32.totalorder %v10325_v32, %v8201_v36  ;;  %v10338_v34 = vld [vmem:[#allocation12_spill] sm:$0xff]  ;;  %v10339_v22 = vld [vmem:[#allocation13_spill] sm:$0xff]  ;;  %v10341_v6 = vld [vmem:[#allocation38_spill] sm:$0xff] }
 0x13e   : >> { %6248 = vmatpush3.bf16.msra.mxu0 %v10327_v51  ;;  %5420 = vmatprep.mubr.f32.mxu0 %v8006_v55  ;;  %v8360_v47 = vadd.f32 %v511_v15, %v471_v57  ;;  %vm3410_vm3 = vcmp.eq.s32.totalorder %v10325_v32, %v8240_v24  ;;  %vm341_vm4 = vcmp.eq.s32.totalorder %v10338_v34, %v8160_v46  ;;  %v10340_v37 = vld [vmem:[#allocation37_spill] sm:$0xff]  ;;  %v512_v9 = vsel %vm492_vm1, %v10320_v44, 0.0  ;;  %v10342_v63 = vld [vmem:[#allocation39_spill] sm:$0xff] }
 0x13f   : >> { %6250 = vmatprep.subr.bf16.mxu0 %v10331_v5  ;;  %4965 = vmatmul.mubr.f32.gmra.mrb[2].mxu1 %v8017_v25  ;;  %vm342_vm5 = vcmp.eq.s32.totalorder %v10339_v22, %v8160_v46  ;;  %vm381_vm6 = vcmp.eq.s32.totalorder %v10338_v34, %v8164_v45  ;;  %vm382_vm7 = vcmp.eq.s32.totalorder %v10339_v22, %v8164_v45  ;;  %v3425_v57 = vsel %vm3409_vm2, %v10320_v44, 0.0 }
 0x140   : >> { %5868 = vmatpush3.bf16.msra.mxu1 %v10328_v28  ;;  %4999 = vmatprep.mubr.f32.mxu1 %v10334_v41  ;;  %v3373_v41 = vsel %vm3357_vm15, %v10318_v16, 0.0  ;;  %vm3271_vm8 = vcmp.eq.s32.totalorder %v10338_v34, %v8192_v53  ;;  %vm3307_vm9 = vcmp.eq.s32.totalorder %v10338_v34, %v8195_v14  ;;  %vm3272_vm10 = vcmp.eq.s32.totalorder %v10339_v22, %v8192_v53 }
 0x141   : >> { %5870 = vmatprep.subr.bf16.mxu1 %v10333_v10  ;;  %5421 = vmatmul.mubr.f32.gmra.mrb[2].mxu0 %v8029_v30  ;;  %vm3308_vm11 = vcmp.eq.s32.totalorder %v10339_v22, %v8195_v14  ;;  %v362_v15 = vsel %vm342_vm5, %v10315_v23, 0.0  ;;  %vm437_vm12 = vcmp.eq.s32.totalorder %v10338_v34, %v8182_v20  ;;  %vm438_vm13 = vcmp.eq.s32.totalorder %v10339_v22, %v8182_v20 }
 0x142   : >> { %6252 = vmatpush3.bf16.msra.mxu0 %v10331_v5  ;;  %5455 = vmatprep.mubr.f32.mxu0 %v10335_v38  ;;  %v10337_v38 = vld [vmem:[#allocation36_spill] sm:$0xff]  ;;  %v3374_v5 = vsel %vm3358_vm0, %v10318_v16, 0.0  ;;  %v3287_v58 = vsel %vm3271_vm8, %v10315_v23, 0.0  ;;  %v3323_v11 = vsel %vm3307_vm9, %v10316_v7, 0.0  ;;  %v8402_v62 = vadd.f32 %v512_v9, %v472_v60 }
 0x143   : >> { %6254 = vmatprep.subr.bf16.mxu0 %v10336_v42  ;;  %v3390_v32 = vadd.f32 %v3374_v5, %v3338_v26  ;;  %v361_v5 = vsel %vm341_vm4, %v10315_v23, 0.0  ;;  %v402_v26 = vsel %vm382_vm7, %v10316_v7, 0.0  ;;  %vm3359_vm14 = vcmp.eq.s32.totalorder %v10338_v34, %v8216_v40 }
 0x144   : >> { %5872 = vmatpush3.bf16.msra.mxu1 %v10333_v10  ;;  %v3389_v10 = vadd.f32 %v3373_v41, %v3337_v39  ;;  %v3426_v39 = vsel %vm3410_vm3, %v10320_v44, 0.0  ;;  %v401_v41 = vsel %vm381_vm6, %v10316_v7, 0.0  ;;  %v418_v28 = vadd.f32 %v402_v26, %v362_v15 }
 0x145   : >> { %5874 = vmatprep.subr.bf16.mxu1 %v10337_v38  ;;  %v417_v43 = vadd.f32 %v401_v41, %v361_v5  ;;  %vm3360_vm15 = vcmp.eq.s32.totalorder %v10339_v22, %v8216_v40  ;;  %v8413_v51 = vadd.f32 %v3426_v39, %v3390_v32  ;;  %v457_v60 = vsel %vm437_vm12, %v10318_v16, 0.0 }
 0x146   : >> { %6256 = vmatpush3.bf16.msra.mxu0 %v10336_v42  ;;  %v10343_v42 = vld [vmem:[#allocation40_spill] sm:$0xff]  ;;  %v8409_v48 = vadd.f32 %v3425_v57, %v3389_v10  ;;  %v458_v9 = vsel %vm438_vm13, %v10318_v16, 0.0  ;;  %vm493_vm0 = vcmp.eq.s32.totalorder %v10338_v34, %v8201_v36  ;;  %vm494_vm1 = vcmp.eq.s32.totalorder %v10339_v22, %v8201_v36  ;;  %v10344_v57 = vld [vmem:[#allocation41_spill] sm:$0xff] }
 0x147   : >> { %6258 = vmatprep.subr.bf16.mxu0 %v10340_v37  ;;  %v3375_v32 = vsel %vm3359_vm14, %v10318_v16, 0.0  ;;  %vm3411_vm2 = vcmp.eq.s32.totalorder %v10338_v34, %v8240_v24  ;;  %vm3412_vm3 = vcmp.eq.s32.totalorder %v10339_v22, %v8240_v24  ;;  %v513_v26 = vsel %vm493_vm0, %v10320_v44, 0.0  ;;  %v10350_v22 = vld [vmem:[#allocation14_spill] sm:$0xff] }
 0x148   : >> { %5876 = vmatpush3.bf16.msra.mxu1 %v10337_v38  ;;  %v3288_v38 = vsel %vm3272_vm10, %v10315_v23, 0.0  ;;  %v514_v5 = vsel %vm494_vm1, %v10320_v44, 0.0  ;;  %v10348_v34 = vand.u32 4294901760, %v8252_v49  ;;  %v3428_v15 = vsel %vm3412_vm3, %v10320_v44, 0.0 }
 0x149   : >> { %5878 = vmatprep.subr.bf16.mxu1 %v10341_v6  ;;  %vm343_vm4 = vcmp.eq.s32.totalorder %v10350_v22, %v8160_v46  ;;  %vm383_vm5 = vcmp.eq.s32.totalorder %v10350_v22, %v8164_v45  ;;  %v10355_v49 = vand.u32 4294901760, %v8360_v47  ;;  %vm3273_vm8 = vcmp.eq.s32.totalorder %v10350_v22, %v8192_v53 }
 0x14a   : >> { %6260 = vmatpush3.bf16.msra.mxu0 %v10340_v37  ;;  %v3324_v37 = vsel %vm3308_vm11, %v10316_v7, 0.0  ;;  %vm3309_vm10 = vcmp.eq.s32.totalorder %v10350_v22, %v8195_v14  ;;  %vm439_vm12 = vcmp.eq.s32.totalorder %v10350_v22, %v8182_v20  ;;  %vm3361_vm14 = vcmp.eq.s32.totalorder %v10350_v22, %v8216_v40 }
 0x14b   : >> { %6262 = vmatprep.subr.bf16.mxu0 %v10342_v63  ;;  %v3340_v10 = vadd.f32 %v3324_v37, %v3288_v38  ;;  %v473_v38 = vadd.f32 %v457_v60, %v417_v43  ;;  %v474_v37 = vadd.f32 %v458_v9, %v418_v28  ;;  %v3427_v28 = vsel %vm3411_vm2, %v10320_v44, 0.0  ;;  %v10346_v60 = vld [vmem:[#allocation43_spill] sm:$0xff] }
 0x14c   : >> { %5880 = vmatpush3.bf16.msra.mxu1 %v10341_v6  ;;  %v3339_v6 = vadd.f32 %v3323_v11, %v3287_v58  ;;  %v3376_v58 = vsel %vm3360_vm15, %v10318_v16, 0.0  ;;  %v10345_v11 = vld [vmem:[#allocation42_spill] sm:$0xff]  ;;  %v10347_v9 = vand.u32 4294901760, %v8250_v4  ;;  %vm495_vm2 = vcmp.eq.s32.totalorder %v10350_v22, %v8201_v36 }
 0x14d   : >> { %5882 = vmatprep.subr.bf16.mxu1 %v10343_v42  ;;  %v3392_v43 = vadd.f32 %v3376_v58, %v3340_v10  ;;  %v10352_v10 = vand.u32 4294901760, %v8312_v12  ;;  %v8479_v4 = vadd.f32 %v514_v5, %v474_v37  ;;  %v363_v5 = vsel %vm343_vm4, %v10315_v23, 0.0 }
 0x14e   : >> { %6264 = vmatpush3.bf16.msra.mxu0 %v10342_v63  ;;  %v3391_v39 = vadd.f32 %v3375_v32, %v3339_v6  ;;  %v8457_v41 = vpack.c.bf16 %v10348_v34, %v10347_v9  ;;  %v10351_v6 = vld [vmem:[#allocation44_spill] sm:$0xff]  ;;  %v10353_v32 = vand.u32 4294901760, %v8320_v17  ;;  %v10356_v9 = vand.u32 4294901760, %v8402_v62 }
 0x14f   : >> { %6266 = vmatprep.subr.bf16.mxu0 %v10344_v57  ;;  %vm3413_vm4 = vcmp.eq.s32.totalorder %v10350_v22, %v8240_v24 }
 0x150   : >> { %5884 = vmatpush3.bf16.msra.mxu1 %v10343_v42  ;;  %10349 = vst [vmem:[#allocation29_spill] sm:$0xff] %v8457_v41  ;;  %v8469_v58 = vpack.c.bf16 %v10353_v32, %v10352_v10  ;;  %v8475_v34 = vpack.c.bf16 %v10356_v9, %v10355_v49  ;;  %v8477_v41 = vadd.f32 %v513_v26, %v473_v38  ;;  %v10362_v10 = vld [vmem:[#allocation15_spill] sm:$0xff]  ;;  %v403_v38 = vsel %vm383_vm5, %v10316_v7, 0.0 }
 0x151   : >> { %5886 = vmatprep.subr.bf16.mxu1 %v10345_v11  ;;  %v8487_v12 = vadd.f32 %v3427_v28, %v3391_v39  ;;  %vm344_vm6 = vcmp.eq.s32.totalorder %v10362_v10, %v8160_v46  ;;  %vm384_vm7 = vcmp.eq.s32.totalorder %v10362_v10, %v8164_v45  ;;  %v8494_v49 = vadd.f32 %v3428_v15, %v3392_v43 }
 0x152   : >> { %6268 = vmatpush3.bf16.msra.mxu0 %v10344_v57  ;;  %10354 = vst [vmem:[#allocation27_spill] sm:$0xff] %v8469_v58  ;;  %10357 = vst [vmem:[#allocation53_spill] sm:$0xff] %v8475_v34  ;;  %v10359_v57 = vand.u32 4294901760, %v8413_v51  ;;  %vm3274_vm9 = vcmp.eq.s32.totalorder %v10362_v10, %v8192_v53  ;;  %vm3310_vm11 = vcmp.eq.s32.totalorder %v10362_v10, %v8195_v14  ;;  %v364_v15 = vsel %vm344_vm6, %v10315_v23, 0.0 }
 0x153   : >> { %6270 = vmatprep.subr.bf16.mxu0 %v10346_v60  ;;  %10361 = vst [vmem:[#allocation30_spill] sm:$0xff] %v8487_v12  ;;  %10363 = vst [vmem:[#allocation47_spill] sm:$0xff] %v8494_v49  ;;  %v404_v37 = vsel %vm384_vm7, %v10316_v7, 0.0  ;;  %v419_v43 = vadd.f32 %v403_v38, %v363_v5  ;;  %vm440_vm13 = vcmp.eq.s32.totalorder %v10362_v10, %v8182_v20  ;;  %v10365_v28 = vand.u32 4294901760, %v10326_v31 }
 0x154   : >> { %5888 = vmatpush3.bf16.msra.mxu1 %v10345_v11  ;;  %v10358_v11 = vand.u32 4294901760, %v8409_v48  ;;  %v3289_v32 = vsel %vm3273_vm8, %v10315_v23, 0.0  ;;  %v3290_v9 = vsel %vm3274_vm9, %v10315_v23, 0.0  ;;  %v3325_v5 = vsel %vm3309_vm10, %v10316_v7, 0.0 }
 0x155   : >> { %5890 = vmatprep.subr.bf16.mxu1 %v10351_v6  ;;  %v3326_v38 = vsel %vm3310_vm11, %v10316_v7, 0.0  ;;  %vm3362_vm15 = vcmp.eq.s32.totalorder %v10362_v10, %v8216_v40  ;;  %v10366_v31 = vand.u32 4294901760, %v10329_v56  ;;  %vm496_vm3 = vcmp.eq.s32.totalorder %v10362_v10, %v8201_v36 }
 0x156   : >> { %v8485_v42 = vpack.c.bf16 %v10359_v57, %v10358_v11  ;;  %6272 = vmatpush3.bf16.msra.mxu0 %v10346_v60  ;;  %v10364_v57 = vld [vmem:[#allocation46_spill] sm:$0xff]  ;;  %v420_v11 = vadd.f32 %v404_v37, %v364_v15  ;;  %v10367_v15 = vld [vmem:[#allocation16_spill] sm:$0xff]  ;;  %v10368_v37 = vand.u32 4294901760, %v10330_v3  ;;  %v3341_v56 = vadd.f32 %v3325_v5, %v3289_v32  ;;  %v10370_v3 = vld [vmem:[#allocation17_spill] sm:$0xff] }
 0x157   : >> { %6274 = vmatprep.subr.bf16.mxu0 %v10364_v57  ;;  %vm345_vm0 = vcmp.eq.s32.totalorder %v10367_v15, %v8160_v46  ;;  %vm385_vm1 = vcmp.eq.s32.totalorder %v10367_v15, %v8164_v45  ;;  %v10369_v26 = vand.u32 4294901760, %v8006_v55  ;;  %v3377_v39 = vsel %vm3361_vm14, %v10318_v16, 0.0 }
 0x158   : >> { %10360 = vst [vmem:[#allocation28_spill] sm:$0xff] %v8485_v42  ;;  %5892 = vmatpush3.bf16.msra.mxu1 %v10351_v6  ;;  %v3378_v42 = vsel %vm3362_vm15, %v10318_v16, 0.0  ;;  %vm3414_vm5 = vcmp.eq.s32.totalorder %v10362_v10, %v8240_v24  ;;  %vm346_vm6 = vcmp.eq.s32.totalorder %v10370_v3, %v8160_v46  ;;  %v365_v55 = vsel %vm345_vm0, %v10315_v23, 0.0 }
 0x159   : >> { %5894 = vmatprep.subr.bf16.mxu1 %v8046_v19  ;;  %vm386_vm7 = vcmp.eq.s32.totalorder %v10370_v3, %v8164_v45  ;;  %vm441_vm8 = vcmp.eq.s32.totalorder %v10367_v15, %v8182_v20  ;;  %v10372_v5 = vand.u32 4294901760, %v8029_v30  ;;  %v3430_v30 = vsel %vm3414_vm5, %v10320_v44, 0.0 }
 0x15a   : >> { %6276 = vmatpush3.bf16.msra.mxu0 %v10364_v57  ;;  %v10374_v10 = vand.u32 4294901760, %v8479_v4  ;;  %vm442_vm9 = vcmp.eq.s32.totalorder %v10370_v3, %v8182_v20  ;;  %vm497_vm10 = vcmp.eq.s32.totalorder %v10367_v15, %v8201_v36  ;;  %vm3275_vm11 = vcmp.eq.s32.totalorder %v10367_v15, %v8192_v53 }
 0x15b   : >> { %5000 = vmatmul.mubr.f32.vlgmr.msra.gmra.mrb[0].mxu1 %v10365_v28  ;;  %6278 = vmatprep.subr.bf16.mxu0 %v8053_v50  ;;  %v459_v28 = vsel %vm439_vm12, %v10318_v16, 0.0  ;;  %vm3311_vm12 = vcmp.eq.s32.totalorder %v10367_v15, %v8195_v14  ;;  %vm3312_vm14 = vcmp.eq.s32.totalorder %v10370_v3, %v8195_v14  ;;  %vm498_vm15 = vcmp.eq.s32.totalorder %v10370_v3, %v8201_v36 }
 0x15c   : >> { %5896 = vmatpush3.bf16.msra.mxu1 %v8046_v19  ;;  %5002 = vmatprep.mubr.f32.mxu1 %v10366_v31  ;;  %v460_v19 = vsel %vm440_vm13, %v10318_v16, 0.0  ;;  %v3342_v31 = vadd.f32 %v3326_v38, %v3290_v9  ;;  %v515_v9 = vsel %vm495_vm2, %v10320_v44, 0.0  ;;  %v3429_v38 = vsel %vm3413_vm4, %v10320_v44, 0.0 }
 0x15d   : >> { %5898 = vmatprep.subr.bf16.mxu1 %v8059_v27  ;;  %5456 = vmatmul.mubr.f32.vlgmr.msra.gmra.mrb[0].mxu0 %v10368_v37  ;;  %v476_v32 = vadd.f32 %v460_v19, %v420_v11  ;;  %v10376_v19 = vand.u32 4294901760, %v8487_v12  ;;  %v10377_v37 = vand.u32 4294901760, %v8494_v49  ;;  %vm3276_vm13 = vcmp.eq.s32.totalorder %v10370_v3, %v8192_v53 }
 0x15e   : >> { %6280 = vmatpush3.bf16.msra.mxu0 %v8053_v50  ;;  %5458 = vmatprep.mubr.f32.mxu0 %v10369_v26  ;;  %v405_v50 = vsel %vm385_vm1, %v10316_v7, 0.0  ;;  %v475_v26 = vadd.f32 %v459_v28, %v419_v43  ;;  %v3393_v43 = vadd.f32 %v3377_v39, %v3341_v56  ;;  %v3394_v11 = vadd.f32 %v3378_v42, %v3342_v31  ;;  %v10379_v31 = vld [vmem:[#allocation56_spill] sm:$0xff] }
 0x15f   : >> { %6282 = vmatprep.subr.bf16.mxu0 %v8065_v2  ;;  %v366_v39 = vsel %vm346_vm6, %v10315_v23, 0.0  ;;  %v406_v42 = vsel %vm386_vm7, %v10316_v7, 0.0  ;;  %v421_v22 = vadd.f32 %v405_v50, %v365_v55  ;;  %v8625_v56 = vpack.c.bf16 %v10377_v37, %v10376_v19 }
 0x160   : >> { %5900 = vmatpush3.bf16.msra.mxu1 %v8059_v27  ;;  %v10371_v27 = vand.u32 4294901760, %v8017_v25  ;;  %v516_v25 = vsel %vm496_vm3, %v10320_v44, 0.0  ;;  %v8634_v55 = vadd.f32 %v515_v9, %v475_v26  ;;  %v462_v26 = vsel %vm442_vm9, %v10318_v16, 0.0 }
 0x161   : >> { %5902 = vmatprep.subr.bf16.mxu1 %v8071_v8  ;;  %5459 = vmatmul.mubr.f32.gmra.mrb[2].mxu0 %v10372_v5  ;;  %10378 = vst [vmem:[#allocation49_spill] sm:$0xff] %v8625_v56  ;;  %v8642_v50 = vadd.f32 %v516_v25, %v476_v32  ;;  %v8646_v5 = vadd.f32 %v3430_v30, %v3394_v11  ;;  %v517_v32 = vsel %vm497_vm10, %v10320_v44, 0.0  ;;  %v3327_v25 = vsel %vm3311_vm12, %v10316_v7, 0.0  ;;  %v10385_v11 = vld [vmem:[#allocation19_spill] sm:$0xff] }
 0x162   : >> { %5003 = vmatmul.mubr.f32.gmra.mrb[2].mxu1 %v10371_v27  ;;  %6284 = vmatpush3.bf16.msra.mxu0 %v8065_v2  ;;  %v10373_v2 = vand.u32 4294901760, %v8477_v41  ;;  %10380 = vst [vmem:[#allocation39_spill] sm:$0xff] %v8634_v55  ;;  %v8644_v27 = vadd.f32 %v3429_v38, %v3393_v43  ;;  %v10384_v43 = vld [vmem:[#allocation18_spill] sm:$0xff]  ;;  %vm348_vm1 = vcmp.eq.s32.totalorder %v10385_v11, %v8160_v46  ;;  %v3292_v30 = vsel %vm3276_vm13, %v10315_v23, 0.0 }
 0x163   : >> { %5037 = vmatprep.mubr.f32.mxu1 %v7658_v52  ;;  %5493 = vmatprep.mubr.f32.mxu0 %v7673_v61  ;;  %10381 = vst [vmem:[#allocation43_spill] sm:$0xff] %v8642_v50  ;;  %10383 = vst [vmem:[#allocation46_spill] sm:$0xff] %v8646_v5  ;;  %vm347_vm0 = vcmp.eq.s32.totalorder %v10384_v43, %v8160_v46  ;;  %vm387_vm2 = vcmp.eq.s32.totalorder %v10384_v43, %v8164_v45  ;;  %v368_v37 = vsel %vm348_vm1, %v10315_v23, 0.0 }
 0x164   : >> { %6286 = vmatprep.subr.bf16.mxu0 %v8077_v0  ;;  %5904 = vmatpush3.bf16.msra.mxu1 %v8071_v8  ;;  %v8619_v28 = vpack.c.bf16 %v10374_v10, %v10373_v2  ;;  %v461_v8 = vsel %vm441_vm8, %v10318_v16, 0.0  ;;  %10382 = vst [vmem:[#allocation44_spill] sm:$0xff] %v8644_v27  ;;  %v422_v2 = vadd.f32 %v406_v42, %v366_v39  ;;  %v3328_v39 = vsel %vm3312_vm14, %v10316_v7, 0.0 }
 0x165   : >> { %5906 = vmatprep.subr.bf16.mxu1 %v10379_v31  ;;  %v477_v9 = vadd.f32 %v461_v8, %v421_v22  ;;  %vm388_vm3 = vcmp.eq.s32.totalorder %v10385_v11, %v8164_v45  ;;  %vm3363_vm4 = vcmp.eq.s32.totalorder %v10367_v15, %v8216_v40  ;;  %v518_v42 = vsel %vm498_vm15, %v10320_v44, 0.0 }
 0x166   : >> { %10375 = vst [vmem:[#allocation51_spill] sm:$0xff] %v8619_v28  ;;  %6288 = vmatpush3.bf16.msra.mxu0 %v8077_v0  ;;  %v3291_v0 = vsel %vm3275_vm11, %v10315_v23, 0.0  ;;  %v478_v38 = vadd.f32 %v462_v26, %v422_v2  ;;  %vm3364_vm5 = vcmp.eq.s32.totalorder %v10370_v3, %v8216_v40  ;;  %v367_v19 = vsel %vm347_vm0, %v10315_v23, 0.0 }
 0x167   : >> { %6290 = vmatprep.subr.bf16.mxu0 %v8089_v21  ;;  %v8676_v22 = vadd.f32 %v517_v32, %v477_v9  ;;  %v3343_v10 = vadd.f32 %v3327_v25, %v3291_v0  ;;  %v407_v8 = vsel %vm387_vm2, %v10316_v7, 0.0  ;;  %v3344_v2 = vadd.f32 %v3328_v39, %v3292_v30 }
 0x168   : >> { %5908 = vmatpush3.bf16.msra.mxu1 %v10379_v31  ;;  %v10387_v31 = vld [vmem:[#allocation57_spill] sm:$0xff]  ;;  %v3379_v26 = vsel %vm3363_vm4, %v10318_v16, 0.0  ;;  %vm443_vm6 = vcmp.eq.s32.totalorder %v10384_v43, %v8182_v20  ;;  %vm444_vm7 = vcmp.eq.s32.totalorder %v10385_v11, %v8182_v20  ;;  %vm3415_vm8 = vcmp.eq.s32.totalorder %v10367_v15, %v8240_v24 }
 0x169   : >> { %5910 = vmatprep.subr.bf16.mxu1 %v8095_v33  ;;  %10386 = vst [vmem:[#allocation56_spill] sm:$0xff] %v8676_v22  ;;  %vm3277_vm9 = vcmp.eq.s32.totalorder %v10384_v43, %v8192_v53  ;;  %vm3313_vm10 = vcmp.eq.s32.totalorder %v10384_v43, %v8195_v14  ;;  %v423_v9 = vadd.f32 %v407_v8, %v367_v19  ;;  %v463_v25 = vsel %vm443_vm6, %v10318_v16, 0.0 }
 0x16a   : >> { %6292 = vmatpush3.bf16.msra.mxu0 %v8089_v21  ;;  %v408_v21 = vsel %vm388_vm3, %v10316_v7, 0.0  ;;  %vm3278_vm11 = vcmp.eq.s32.totalorder %v10385_v11, %v8192_v53  ;;  %vm3314_vm12 = vcmp.eq.s32.totalorder %v10385_v11, %v8195_v14  ;;  %v3395_v0 = vadd.f32 %v3379_v26, %v3343_v10 }
 0x16b   : >> { %6294 = vmatprep.subr.bf16.mxu0 %v8101_v18  ;;  %v424_v32 = vadd.f32 %v408_v21, %v368_v37  ;;  %vm3416_vm13 = vcmp.eq.s32.totalorder %v10370_v3, %v8240_v24  ;;  %vm499_vm14 = vcmp.eq.s32.totalorder %v10384_v43, %v8201_v36  ;;  %vm500_vm15 = vcmp.eq.s32.totalorder %v10385_v11, %v8201_v36 }
 0x16c   : >> { %5912 = vmatpush3.bf16.msra.mxu1 %v8095_v33  ;;  %v3380_v33 = vsel %vm3364_vm5, %v10318_v16, 0.0  ;;  %v3293_v30 = vsel %vm3277_vm9, %v10315_v23, 0.0  ;;  %v3329_v39 = vsel %vm3313_vm10, %v10316_v7, 0.0  ;;  %v3431_v10 = vsel %vm3415_vm8, %v10320_v44, 0.0 }
 0x16d   : >> { %5914 = vmatprep.subr.bf16.mxu1 %v10387_v31  ;;  %v3294_v19 = vsel %vm3278_vm11, %v10315_v23, 0.0  ;;  %v3330_v37 = vsel %vm3314_vm12, %v10316_v7, 0.0  ;;  %vm3365_vm0 = vcmp.eq.s32.totalorder %v10384_v43, %v8216_v40  ;;  %v3396_v8 = vadd.f32 %v3380_v33, %v3344_v2 }
 0x16e   : >> { %6296 = vmatpush3.bf16.msra.mxu0 %v8101_v18  ;;  %v464_v18 = vsel %vm444_vm7, %v10318_v16, 0.0  ;;  %v479_v21 = vadd.f32 %v463_v25, %v423_v9  ;;  %vm3366_vm1 = vcmp.eq.s32.totalorder %v10385_v11, %v8216_v40  ;;  %v3432_v15 = vsel %vm3416_vm13, %v10320_v44, 0.0 }
 0x16f   : >> { %6298 = vmatprep.subr.bf16.mxu0 %v8113_v13  ;;  %v520_v2 = vsel %vm500_vm15, %v10320_v44, 0.0  ;;  %v3345_v26 = vadd.f32 %v3329_v39, %v3293_v30  ;;  %v8749_v33 = vadd.f32 %v518_v42, %v478_v38  ;;  %v3346_v9 = vadd.f32 %v3330_v37, %v3294_v19  ;;  %v10400_v37 = vld [vmem:[#allocation32_spill] sm:$0xff] }
 0x170   : >> { %5916 = vmatpush3.bf16.msra.mxu1 %v10387_v31  ;;  %v480_v31 = vadd.f32 %v464_v18, %v424_v32  ;;  %v3381_v3 = vsel %vm3365_vm0, %v10318_v16, 0.0  ;;  %v10061_v32 = vand.u32 4294901760, %v8634_v55  ;;  %v10058_v25 = vand.u32 4294901760, %v8642_v50  ;;  %v10424_v55 = vld [vmem:[#allocation38_spill] sm:$0xff] }
 0x171   : >> { %5918 = vmatprep.subr.bf16.mxu1 %v8121_v29  ;;  %10388 = vst [vmem:[#allocation57_spill] sm:$0xff] %v8749_v33  ;;  %v3382_v18 = vsel %vm3366_vm1, %v10318_v16, 0.0  ;;  %vm3417_vm2 = vcmp.eq.s32.totalorder %v10384_v43, %v8240_v24  ;;  %v10060_v38 = vand.u32 4294901760, %v8644_v27  ;;  %v8764_v42 = vadd.f32 %v3432_v15, %v3396_v8  ;;  %v10394_v15 = vld [vmem:[#allocation21_spill] sm:$0xff]  ;;  %v8823_v43 = vld [vmem:[#allocation2 + $0x20] sm:$0xff] }
 0x172   : >> { %6300 = vmatpush3.bf16.msra.mxu0 %v8113_v13  ;;  %v519_v13 = vsel %vm499_vm14, %v10320_v44, 0.0  ;;  %v8768_v30 = vadd.f32 %v520_v2, %v480_v31  ;;  %v10059_v39 = vand.u32 4294901760, %v8646_v5  ;;  %v3397_v19 = vadd.f32 %v3381_v3, %v3345_v26  ;;  %v10393_v31 = vld [vmem:[#allocation20_spill] sm:$0xff]  ;;  %v8802_v3 = vld [vmem:[#allocation2 + $0x18] sm:$0xff] }
 0x173   : >> { %6302 = vmatprep.subr.bf16.mxu0 %v8127_v59  ;;  %10390 = vst [vmem:[#allocation59_spill] sm:$0xff] %v8764_v42  ;;  %vm3418_vm3 = vcmp.eq.s32.totalorder %v10385_v11, %v8240_v24  ;;  %v3398_v8 = vadd.f32 %v3382_v18, %v3346_v9  ;;  %vm349_vm4 = vcmp.eq.s32.totalorder %v10393_v31, %v8160_v46  ;;  %v10396_v18 = vld [vmem:[#allocation31_spill] sm:$0xff]  ;;  %v8857_v27 = vand.u32 4294901760, %v8802_v3 }
 0x174   : >> { %5920 = vmatpush3.bf16.msra.mxu1 %v8121_v29  ;;  %v8751_v29 = vadd.f32 %v3431_v10, %v3395_v0  ;;  %v8766_v0 = vadd.f32 %v519_v13, %v479_v21  ;;  %10392 = vst [vmem:[#allocation61_spill] sm:$0xff] %v8768_v30  ;;  %v10073_v10 = vand.u32 4294901760, %v8676_v22  ;;  %v8783_v21 = vld [vmem:[#allocation2] sm:$0xff]  ;;  %vm350_vm5 = vcmp.eq.s32.totalorder %v10394_v15, %v8160_v46  ;;  %v10395_v13 = vld [vmem:[#allocation45_spill] sm:$0xff] }
 0x175   : >> { %5922 = vmatprep.subr.bf16.mxu1 %v8133_v35  ;;  %vm389_vm6 = vcmp.eq.s32.totalorder %v10393_v31, %v8164_v45  ;;  %vm390_vm7 = vcmp.eq.s32.totalorder %v10394_v15, %v8164_v45  ;;  %v3434_v9 = vsel %vm3418_vm3, %v10320_v44, 0.0  ;;  %v8816_v26 = vpack.c.bf16 %v10059_v39, %v10060_v38  ;;  %v10402_v38 = vld [vmem:[#allocation48_spill] sm:$0xff] }
 0x176   : >> { %10389 = vst [vmem:[#allocation58_spill] sm:$0xff] %v8751_v29  ;;  %6304 = vmatpush3.bf16.msra.mxu0 %v8127_v59  ;;  %10391 = vst [vmem:[#allocation60_spill] sm:$0xff] %v8766_v0  ;;  %v8821_v2 = vand.u32 4294901760, %v8783_v21  ;;  %v10401_v59 = vld [vmem:[#allocation50_spill] sm:$0xff]  ;;  %v410_v39 = vsel %vm390_vm7, %v10316_v7, 0.0  ;;  %v8852_v5 = vadd.f32 %v3434_v9, %v3398_v8  ;;  %vm445_vm8 = vcmp.eq.s32.totalorder %v10393_v31, %v8182_v20 }
 0x177   : >> { %6306 = vmatprep.subr.bf16.mxu0 %v8140_v54  ;;  %10398 = vst [vmem:[#allocation31_spill] sm:$0xff] %v8816_v26  ;;  %10405 = vst [vmem:[#allocation50_spill] sm:$0xff] %v8857_v27  ;;  %v10407_v56 = vand.u32 4294901760, %v8751_v29  ;;  %v10408_v22 = vand.u32 4294901760, %v8764_v42  ;;  %v10411_v8 = vand.u32 4294901760, %v8768_v30  ;;  %vm446_vm9 = vcmp.eq.s32.totalorder %v10394_v15, %v8182_v20  ;;  %v10416_v30 = vld [vmem:[#allocation34_spill] sm:$0xff] }
 0x178   : >> { %5924 = vmatpush3.bf16.msra.mxu1 %v8133_v35  ;;  %v3433_v35 = vsel %vm3417_vm2, %v10320_v44, 0.0  ;;  %10399 = vst [vmem:[#allocation62_spill] sm:$0xff] %v8821_v2  ;;  %vm501_vm10 = vcmp.eq.s32.totalorder %v10393_v31, %v8201_v36  ;;  %vm3279_vm11 = vcmp.eq.s32.totalorder %v10393_v31, %v8192_v53  ;;  %vm3280_vm12 = vcmp.eq.s32.totalorder %v10394_v15, %v8192_v53  ;;  %v10422_v42 = vld [vmem:[#allocation36_spill] sm:$0xff] }
 0x179   : >> { %5926 = vmatprep.subr.bf16.mxu1 %v10322_v1  ;;  %v8818_v11 = vadd.f32 %v3433_v35, %v3397_v19  ;;  %v370_v19 = vsel %vm350_vm5, %v10315_v23, 0.0  ;;  %v409_v35 = vsel %vm389_vm6, %v10316_v7, 0.0  ;;  %v8865_v50 = vpack.c.bf16 %v10408_v22, %v10407_v56 }
 0x17a   : >> { %6308 = vmatpush3.bf16.msra.mxu0 %v8140_v54  ;;  %v8810_v54 = vpack.c.bf16 %v10058_v25, %v10061_v32  ;;  %v369_v25 = vsel %vm349_vm4, %v10315_v23, 0.0  ;;  %v10403_v32 = vand.u32 4294901760, %v8749_v33  ;;  %v426_v22 = vadd.f32 %v410_v39, %v370_v19 }
 0x17b   : >> { %5038 = vmatmul.mubr.f32.vlgmr.msra.gmra.mrb[0].mxu1 %v10395_v13  ;;  %6310 = vmatprep.subr.bf16.mxu0 %v10396_v18  ;;  %10409 = vst [vmem:[#allocation48_spill] sm:$0xff] %v8865_v50  ;;  %v425_v56 = vadd.f32 %v409_v35, %v369_v25  ;;  %v10418_v25 = vld [vmem:[#allocation55_spill] sm:$0xff]  ;;  %vm3315_vm13 = vcmp.eq.s32.totalorder %v10393_v31, %v8195_v14  ;;  %v466_v19 = vsel %vm446_vm9, %v10318_v16, 0.0 }
 0x17c   : >> { %5928 = vmatpush3.bf16.msra.mxu1 %v10322_v1  ;;  %10397 = vst [vmem:[#allocation45_spill] sm:$0xff] %v8810_v54  ;;  %v8825_v1 = vld [vmem:[#allocation2 + $0x38] sm:$0xff]  ;;  %5040 = vmatprep.mubr.f32.mxu1 %v10401_v59  ;;  %v8850_v26 = vpack.c.bf16 %v10403_v32, %v10073_v10  ;;  %v10406_v54 = vld [vmem:[#allocation52_spill] sm:$0xff]  ;;  %v10410_v32 = vand.u32 4294901760, %v8766_v0  ;;  %v8874_v10 = vand.u32 4294901760, %v8823_v43  ;;  %vm3316_vm14 = vcmp.eq.s32.totalorder %v10394_v15, %v8195_v14 }
 0x17d   : >> { %5930 = vmatprep.subr.bf16.mxu1 %v10400_v37  ;;  %5494 = vmatmul.mubr.f32.vlgmr.msra.gmra.mrb[0].mxu0 %v10402_v38  ;;  %v10420_v35 = vld [vmem:[#allocation23_spill] sm:$0xff]  ;;  %vm502_vm3 = vcmp.eq.s32.totalorder %v10394_v15, %v8201_v36  ;;  %vm3367_vm4 = vcmp.eq.s32.totalorder %v10393_v31, %v8216_v40  ;;  %v482_v29 = vadd.f32 %v466_v19, %v426_v22 }
 0x17e   : >> { %10404 = vst [vmem:[#allocation32_spill] sm:$0xff] %v8850_v26  ;;  %6312 = vmatpush3.bf16.msra.mxu0 %v10396_v18  ;;  %5496 = vmatprep.mubr.f32.mxu0 %v10406_v54  ;;  %v8871_v9 = vpack.c.bf16 %v10411_v8, %v10410_v32  ;;  %10413 = vst [vmem:[#allocation63_spill] sm:$0xff] %v8874_v10  ;;  %v8877_v26 = vand.u32 4294901760, %v8825_v1  ;;  %v10415_v18 = vld [vmem:[#allocation33_spill] sm:$0xff]  ;;  %v10417_v32 = vld [vmem:[#allocation54_spill] sm:$0xff]  ;;  %v465_v8 = vsel %vm445_vm8, %v10318_v16, 0.0 }
 0x17f   : >> { %6314 = vmatprep.subr.bf16.mxu0 %v10415_v18  ;;  %5041 = vmatmul.mubr.f32.gmra.mrb[2].mxu1 %v10417_v32  ;;  %vm352_vm0 = vcmp.eq.s32.totalorder %v10420_v35, %v8160_v46  ;;  %vm392_vm2 = vcmp.eq.s32.totalorder %v10420_v35, %v8164_v45  ;;  %v481_v39 = vadd.f32 %v465_v8, %v425_v56  ;;  %v3332_v56 = vsel %vm3316_vm14, %v10316_v7, 0.0 }
 0x180   : >> { %10412 = vst [vmem:[#allocation52_spill] sm:$0xff] %v8871_v9  ;;  %10414 = vst [vmem:[#allocation64_spill] sm:$0xff] %v8877_v26  ;;  %5932 = vmatpush3.bf16.msra.mxu1 %v10400_v37  ;;  %5075 = vmatprep.mubr.f32.mxu1 %v7658_v52  ;;  %v10419_v37 = vld [vmem:[#allocation22_spill] sm:$0xff]  ;;  %v10421_v52 = vld [vmem:[#allocation35_spill] sm:$0xff]  ;;  %v372_v0 = vsel %vm352_vm0, %v10315_v23, 0.0  ;;  %v412_v50 = vsel %vm392_vm2, %v10316_v7, 0.0  ;;  %vm3368_vm5 = vcmp.eq.s32.totalorder %v10394_v15, %v8216_v40 }
 0x181   : >> { %5934 = vmatprep.subr.bf16.mxu1 %v10416_v30  ;;  %5497 = vmatmul.mubr.f32.gmra.mrb[2].mxu0 %v10418_v25  ;;  %vm351_vm15 = vcmp.eq.s32.totalorder %v10419_v37, %v8160_v46  ;;  %vm391_vm1 = vcmp.eq.s32.totalorder %v10419_v37, %v8164_v45  ;;  %v3296_v45 = vsel %vm3280_vm12, %v10315_v23, 0.0  ;;  %vm447_vm6 = vcmp.eq.s32.totalorder %v10419_v37, %v8182_v20  ;;  %v10423_v46 = vld [vmem:[#allocation37_spill] sm:$0xff] }
 0x182   : >> { %6316 = vmatpush3.bf16.msra.mxu0 %v10415_v18  ;;  %5531 = vmatprep.mubr.f32.mxu0 %v7673_v61  ;;  %v521_v61 = vsel %vm501_vm10, %v10320_v44, 0.0  ;;  %v3295_v18 = vsel %vm3279_vm11, %v10315_v23, 0.0  ;;  %v371_v8 = vsel %vm351_vm15, %v10315_v23, 0.0  ;;  %v411_v9 = vsel %vm391_vm1, %v10316_v7, 0.0 }
 0x183   : >> { %6318 = vmatprep.subr.bf16.mxu0 %v10421_v52  ;;  %vm448_vm7 = vcmp.eq.s32.totalorder %v10420_v35, %v8182_v20  ;;  %v522_v33 = vsel %vm502_vm3, %v10320_v44, 0.0  ;;  %v3348_v19 = vadd.f32 %v3332_v56, %v3296_v45  ;;  %v3383_v20 = vsel %vm3367_vm4, %v10318_v16, 0.0 }
 0x184   : >> { %5936 = vmatpush3.bf16.msra.mxu1 %v10416_v30  ;;  %v3331_v30 = vsel %vm3315_vm13, %v10316_v7, 0.0  ;;  %vm3419_vm8 = vcmp.eq.s32.totalorder %v10393_v31, %v8240_v24  ;;  %v428_v49 = vadd.f32 %v412_v50, %v372_v0  ;;  %v3384_v12 = vsel %vm3368_vm5, %v10318_v16, 0.0 }
 0x185   : >> { %5938 = vmatprep.subr.bf16.mxu1 %v10422_v42  ;;  %v3347_v22 = vadd.f32 %v3331_v30, %v3295_v18  ;;  %vm3420_vm9 = vcmp.eq.s32.totalorder %v10394_v15, %v8240_v24  ;;  %vm503_vm10 = vcmp.eq.s32.totalorder %v10419_v37, %v8201_v36  ;;  %vm504_vm11 = vcmp.eq.s32.totalorder %v10420_v35, %v8201_v36  ;;  %v10425_v36 = vld [vmem:[#allocation40_spill] sm:$0xff] }
 0x186   : >> { %6320 = vmatpush3.bf16.msra.mxu0 %v10421_v52  ;;  %v8961_v52 = vadd.f32 %v521_v61, %v481_v39  ;;  %v467_v39 = vsel %vm447_vm6, %v10318_v16, 0.0  ;;  %v468_v61 = vsel %vm448_vm7, %v10318_v16, 0.0  ;;  %vm3281_vm12 = vcmp.eq.s32.totalorder %v10419_v37, %v8192_v53 }
 0x187   : >> { %6322 = vmatprep.subr.bf16.mxu0 %v10423_v46  ;;  %vm3317_vm13 = vcmp.eq.s32.totalorder %v10419_v37, %v8195_v14  ;;  %v3399_v50 = vadd.f32 %v3383_v20, %v3347_v22  ;;  %v3435_v0 = vsel %vm3419_vm8, %v10320_v44, 0.0  ;;  %vm3282_vm14 = vcmp.eq.s32.totalorder %v10420_v35, %v8192_v53  ;;  %v10430_v22 = vld [vmem:[#allocation42_spill] sm:$0xff] }
 0x188   : >> { %5940 = vmatpush3.bf16.msra.mxu1 %v10422_v42  ;;  %v427_v42 = vadd.f32 %v411_v9, %v371_v8  ;;  %vm3318_vm15 = vcmp.eq.s32.totalorder %v10420_v35, %v8195_v14  ;;  %v3400_v31 = vadd.f32 %v3384_v12, %v3348_v19  ;;  %v3436_v9 = vsel %vm3420_vm9, %v10320_v44, 0.0 }
 0x189   : >> { %5942 = vmatprep.subr.bf16.mxu1 %v10424_v55  ;;  %v484_v45 = vadd.f32 %v468_v61, %v428_v49  ;;  %v524_v30 = vsel %vm504_vm11, %v10320_v44, 0.0  ;;  %v3297_v56 = vsel %vm3281_vm12, %v10315_v23, 0.0  ;;  %v3333_v53 = vsel %vm3317_vm13, %v10316_v7, 0.0  ;;  %v10426_v49 = vld [vmem:[#allocation41_spill] sm:$0xff] }
 0x18a   : >> { %6324 = vmatpush3.bf16.msra.mxu0 %v10423_v46  ;;  %v483_v18 = vadd.f32 %v467_v39, %v427_v42  ;;  %v3298_v14 = vsel %vm3282_vm14, %v10315_v23, 0.0  ;;  %v3334_v12 = vsel %vm3318_vm15, %v10316_v7, 0.0  ;;  %vm3369_vm0 = vcmp.eq.s32.totalorder %v10419_v37, %v8216_v40 }
 0x18b   : >> { %6326 = vmatprep.subr.bf16.mxu0 %v10342_v63  ;;  %vm3370_vm1 = vcmp.eq.s32.totalorder %v10420_v35, %v8216_v40  ;;  %v10427_v15 = vand.u32 4294901760, %v8818_v11  ;;  %v10428_v8 = vand.u32 4294901760, %v8852_v5  ;;  %v10105_v23 = vand.u32 4294901760, %v8961_v52 }
 0x18c   : >> { %5944 = vmatpush3.bf16.msra.mxu1 %v10424_v55  ;;  %v523_v55 = vsel %vm503_vm10, %v10320_v44, 0.0  ;;  %v9018_v7 = vadd.f32 %v3435_v0, %v3399_v50  ;;  %v9021_v19 = vadd.f32 %v3436_v9, %v3400_v31  ;;  %v9025_v20 = vadd.f32 %v524_v30, %v484_v45  ;;  %v10434_v31 = vld [vmem:[#allocation24_spill] sm:$0xff]  ;;  %v10437_v45 = vld [vmem:[#allocation26_spill] sm:$0xff] }
 0x18d   : >> { %5946 = vmatprep.subr.bf16.mxu1 %v10425_v36  ;;  %v9013_v46 = vpack.c.bf16 %v10428_v8, %v10427_v15  ;;  %v9023_v40 = vadd.f32 %v523_v55, %v483_v18  ;;  %v3349_v42 = vadd.f32 %v3333_v53, %v3297_v56  ;;  %v3350_v39 = vadd.f32 %v3334_v12, %v3298_v14 }
 0x18e   : >> { %6328 = vmatpush3.bf16.msra.mxu0 %v10342_v63  ;;  %v9015_v63 = vadd.f32 %v522_v33, %v482_v29  ;;  %v3385_v61 = vsel %vm3369_vm0, %v10318_v16, 0.0  ;;  %v9031_v33 = vsub.f32 %v8783_v21, %v8821_v2  ;;  %vm3421_vm2 = vcmp.eq.s32.totalorder %v10419_v37, %v8240_v24  ;;  %v10432_v29 = vld [vmem:[#allocation25_spill] sm:$0xff] }
 0x18f   : >> { %6330 = vmatprep.subr.bf16.mxu0 %v10426_v49  ;;  %10429 = vst [vmem:[#allocation33_spill] sm:$0xff] %v9013_v46  ;;  %v10433_v50 = vand.u32 4294901760, %v10432_v29  ;;  %v10435_v9 = vand.u32 4294901760, %v10434_v31  ;;  %vm3422_vm3 = vcmp.eq.s32.totalorder %v10420_v35, %v8240_v24  ;;  %v10438_v55 = vand.u32 4294901760, %v10437_v45 }
 0x190   : >> { %5948 = vmatpush3.bf16.msra.mxu1 %v10425_v36  ;;  %v3386_v36 = vsel %vm3370_vm1, %v10318_v16, 0.0  ;;  %10431 = vst [vmem:[#allocation34_spill] sm:$0xff] %v9031_v33  ;;  %v9048_v16 = vsub.f32 %v8802_v3, %v8857_v27  ;;  %v10103_v21 = vand.u32 4294901760, %v9015_v63  ;;  %v10439_v56 = vand.u32 4294901760, %v8320_v17  ;;  %v10492_v27 = vld [vmem:[#allocation48_spill] sm:$0xff] }
 0x191   : >> { %5950 = vmatprep.subr.bf16.mxu1 %v10430_v22  ;;  %v9039_v0 = vsub.f32 %v10432_v29, %v10433_v50  ;;  %v9044_v18 = vsub.f32 %v10434_v31, %v10435_v9  ;;  %v9058_v30 = vsub.f32 %v10437_v45, %v10438_v55  ;;  %v10094_v3 = vand.u32 4294901760, %v9018_v7 }
 0x192   : >> { %6332 = vmatpush3.bf16.msra.mxu0 %v10426_v49  ;;  %10436 = vst [vmem:[#allocation54_spill] sm:$0xff] %v9048_v16  ;;  %v9063_v53 = vsub.f32 %v8320_v17, %v10439_v56  ;;  %v10093_v14 = vand.u32 4294901760, %v9021_v19  ;;  %v10102_v12 = vand.u32 4294901760, %v9023_v40  ;;  %v10101_v35 = vand.u32 4294901760, %v9025_v20 }
 0x193   : >> { %6334 = vmatprep.subr.bf16.mxu0 %v10346_v60  ;;  %v3401_v49 = vadd.f32 %v3385_v61, %v3349_v42  ;;  %v3402_v15 = vadd.f32 %v3386_v36, %v3350_v39  ;;  %v3437_v8 = vsel %vm3421_vm2, %v10320_v44, 0.0  ;;  %v10096_v17 = vand.u32 4294901760, %v9031_v33  ;;  %v9096_v39 = vld [vmem:[#allocation2 + $0x58] sm:$0xff]  ;;  %v10442_v61 = vld [vmem:[#allocation29_spill] sm:$0xff] }
 0x194   : >> { %5952 = vmatpush3.bf16.msra.mxu1 %v10430_v22  ;;  %v9075_v22 = vld [vmem:[#allocation2 + $0x40] sm:$0xff]  ;;  %v3438_v29 = vsel %vm3422_vm3, %v10320_v44, 0.0  ;;  %v10100_v50 = vand.u32 4294901760, %v9039_v0  ;;  %v10098_v31 = vand.u32 4294901760, %v9044_v18  ;;  %v10095_v42 = vand.u32 4294901760, %v9048_v16 }
 0x195   : >> { %5954 = vmatprep.subr.bf16.mxu1 %v10351_v6  ;;  %v9088_v24 = vpack.c.bf16 %v10103_v21, %v10105_v23  ;;  %v10099_v44 = vand.u32 4294901760, %v9063_v53  ;;  %v9094_v37 = vsub.f32 %v8823_v43, %v8874_v10  ;;  %v10443_v36 = vand.u32 4294901760, %v8360_v47  ;;  %v10456_v23 = vld [vmem:[#allocation47_spill] sm:$0xff] }
 0x196   : >> { %6336 = vmatpush3.bf16.msra.mxu0 %v10346_v60  ;;  %v10097_v60 = vand.u32 4294901760, %v9058_v30  ;;  %v10444_v45 = vand.u32 4294901760, %v8402_v62  ;;  %v9116_v55 = vand.u32 4294901760, %v9075_v22  ;;  %v9122_v56 = vpack.c.bf16 %v10101_v35, %v10102_v12 }
 0x197   : >> { %6338 = vmatprep.subr.bf16.mxu0 %v10364_v57  ;;  %10440 = vst [vmem:[#allocation55_spill] sm:$0xff] %v9088_v24  ;;  %10441 = vst [vmem:[#allocation35_spill] sm:$0xff] %v9094_v37  ;;  %v9108_v9 = vsub.f32 %v8360_v47, %v10443_v36  ;;  %v1599_v47 = vsub.f32 %v9031_v33, %v10096_v17  ;;  %v1647_v36 = vsub.f32 %v9044_v18, %v10098_v31 }
 0x198   : >> { %5956 = vmatpush3.bf16.msra.mxu1 %v10351_v6  ;;  %v9103_v6 = vpack.c.bf16 %v10093_v14, %v10094_v3  ;;  %v9113_v43 = vsub.f32 %v8402_v62, %v10444_v45  ;;  %10445 = vst [vmem:[#allocation36_spill] sm:$0xff] %v9116_v55  ;;  %10446 = vst [vmem:[#allocation37_spill] sm:$0xff] %v9122_v56  ;;  %v9124_v14 = vadd.f32 %v3437_v8, %v3401_v49 }
 0x199   : >> { %5958 = vmatprep.subr.bf16.mxu1 %v10442_v61  ;;  %v9126_v3 = vadd.f32 %v3438_v29, %v3402_v15  ;;  %v1640_v62 = vsub.f32 %v9039_v0, %v10100_v50  ;;  %v3543_v49 = vsub.f32 %v9048_v16, %v10095_v42  ;;  %v9143_v15 = vand.u32 4294901760, %v9096_v39 }
 0x19a   : >> { %6340 = vmatpush3.bf16.msra.mxu0 %v10364_v57  ;;  %v3584_v57 = vsub.f32 %v9058_v30, %v10097_v60  ;;  %v10104_v8 = vand.u32 4294901760, %v9094_v37  ;;  %v10448_v29 = vand.u32 4294901760, %v8409_v48  ;;  %v10106_v42 = vand.u32 4294901760, %v9108_v9 }
 0x19b   : >> { %5076 = vmatmul.mubr.f32.vlgmr.msra.gmra.mrb[0].mxu1 %v10395_v13  ;;  %10447 = vst [vmem:[#allocation38_spill] sm:$0xff] %v9143_v15  ;;  %6342 = vmatprep.subr.bf16.mxu0 %v8469_v58  ;;  %v3591_v13 = vsub.f32 %v9063_v53, %v10099_v44  ;;  %v10107_v17 = vand.u32 4294901760, %v9113_v43  ;;  %v10449_v60 = vand.u32 4294901760, %v8413_v51  ;;  %v10450_v44 = vand.u32 4294901760, %v8477_v41 }
 0x19c   : >> { %5960 = vmatpush3.bf16.msra.mxu1 %v10442_v61  ;;  %v9157_v45 = vsub.f32 %v8409_v48, %v10448_v29  ;;  %5078 = vmatprep.mubr.f32.mxu1 %v10401_v59  ;;  %v10108_v48 = vand.u32 4294901760, %v9124_v14  ;;  %v1600_v29 = vand.u32 4294901760, %v1599_v47  ;;  %v10451_v35 = vand.u32 4294901760, %v8479_v4  ;;  %v10478_v61 = vld [vmem:[#allocation57_spill] sm:$0xff] }
 0x19d   : >> { %5962 = vmatprep.subr.bf16.mxu1 %v8475_v34  ;;  %v9166_v31 = vsub.f32 %v8413_v51, %v10449_v60  ;;  %v9171_v50 = vsub.f32 %v8477_v41, %v10450_v44  ;;  %5532 = vmatmul.mubr.f32.vlgmr.msra.gmra.mrb[0].mxu0 %v10402_v38  ;;  %v1641_v51 = vand.u32 4294901760, %v1640_v62  ;;  %v1648_v60 = vand.u32 4294901760, %v1647_v36  ;;  %v10453_v44 = vld [vmem:[#allocation28_spill] sm:$0xff] }
 0x19e   : >> { %v9179_v12 = vsub.f32 %v8479_v4, %v10451_v35  ;;  %6344 = vmatpush3.bf16.msra.mxu0 %v8469_v58  ;;  %5534 = vmatprep.mubr.f32.mxu0 %v10406_v54  ;;  %v3544_v41 = vand.u32 4294901760, %v3543_v49  ;;  %v9185_v38 = vsub.f32 %v8825_v1, %v8877_v26  ;;  %v3585_v47 = vand.u32 4294901760, %v3584_v57  ;;  %v9195_v35 = vld [vmem:[#allocation2 + $0x60] sm:$0xff] }
 0x19f   : >> { %6346 = vmatprep.subr.bf16.mxu0 %v10453_v44  ;;  %v3592_v21 = vand.u32 4294901760, %v3591_v13  ;;  %v9192_v4 = vsub.f32 %v9094_v37, %v10104_v8  ;;  %5079 = vmatmul.mubr.f32.gmra.mrb[2].mxu1 %v10417_v32  ;;  %v1654_v1 = vsub.f32 %v9108_v9, %v10106_v42  ;;  %v1661_v62 = vsub.f32 %v9113_v43, %v10107_v17  ;;  %v10454_v13 = vld [vmem:[#allocation30_spill] sm:$0xff]  ;;  %v10458_v17 = vld [vmem:[#allocation39_spill] sm:$0xff] }
 0x1a0   : >> { %10452 = vst [vmem:[#allocation40_spill] sm:$0xff] %v9185_v38  ;;  %5964 = vmatpush3.bf16.msra.mxu1 %v8475_v34  ;;  %5113 = vmatprep.mubr.f32.mxu1 %v1600_v29  ;;  %v10455_v8 = vand.u32 4294901760, %v10454_v13  ;;  %v10457_v42 = vand.u32 4294901760, %v10456_v23  ;;  %v10459_v59 = vand.u32 4294901760, %v10458_v17  ;;  %v10473_v37 = vld [vmem:[#allocation46_spill] sm:$0xff]  ;;  %v10479_v16 = vand.u32 4294901760, %v10478_v61 }
 0x1a1   : >> { %5966 = vmatprep.subr.bf16.mxu1 %v8619_v28  ;;  %5535 = vmatmul.mubr.f32.gmra.mrb[2].mxu0 %v10418_v25  ;;  %v10460_v25 = vand.u32 4294901760, %v9126_v3  ;;  %v9244_v49 = vpack.c.bf16 %v3592_v21, %v3585_v47  ;;  %v10499_v2 = vand.u32 4294901760, %v8818_v11 }
 0x1a2   : >> { %v9212_v32 = vsub.f32 %v10454_v13, %v10455_v8  ;;  %v9217_v54 = vsub.f32 %v10456_v23, %v10457_v42  ;;  %v9222_v36 = vsub.f32 %v10458_v17, %v10459_v59  ;;  %6348 = vmatpush3.bf16.msra.mxu0 %v10453_v44  ;;  %5569 = vmatprep.mubr.f32.mxu0 %v3544_v41  ;;  %v10462_v13 = vld [vmem:[#allocation43_spill] sm:$0xff]  ;;  %v9238_v42 = vand.u32 4294901760, %v9195_v35  ;;  %v10464_v17 = vld [vmem:[#allocation49_spill] sm:$0xff] }
 0x1a3   : >> { %v9229_v29 = vpack.c.bf16 %v10460_v25, %v10108_v48  ;;  %v10463_v57 = vand.u32 4294901760, %v10462_v13  ;;  %6350 = vmatprep.subr.bf16.mxu0 %v10464_v17  ;;  %v9242_v59 = vpack.c.bf16 %v1648_v60, %v1641_v51  ;;  %v10465_v25 = vand.u32 4294901760, %v9157_v45 }
 0x1a4   : >> { %5968 = vmatpush3.bf16.msra.mxu1 %v8619_v28  ;;  %v1662_v8 = vand.u32 4294901760, %v1661_v62  ;;  %v10467_v44 = vand.u32 4294901760, %v9166_v31  ;;  %v10468_v51 = vand.u32 4294901760, %v9171_v50  ;;  %v10469_v60 = vand.u32 4294901760, %v9179_v12  ;;  %v10471_v28 = vld [vmem:[#allocation44_spill] sm:$0xff]  ;;  %v10475_v62 = vld [vmem:[#allocation31_spill] sm:$0xff] }
 0x1a5   : >> { %10461 = vst [vmem:[#allocation41_spill] sm:$0xff] %v9229_v29  ;;  %v9235_v23 = vsub.f32 %v10462_v13, %v10463_v57  ;;  %v9250_v48 = vsub.f32 %v9157_v45, %v10465_v25  ;;  %v10466_v57 = vld [vmem:[#allocation45_spill] sm:$0xff]  ;;  %v1655_v13 = vand.u32 4294901760, %v1654_v1  ;;  %v10472_v58 = vand.u32 4294901760, %v10471_v28 }
 0x1a6   : >> { %5970 = vmatprep.subr.bf16.mxu1 %v10466_v57  ;;  %v9256_v34 = vsub.f32 %v9166_v31, %v10467_v44  ;;  %v9261_v21 = vsub.f32 %v9171_v50, %v10468_v51  ;;  %v9266_v47 = vsub.f32 %v9179_v12, %v10469_v60  ;;  %6352 = vmatpush3.bf16.msra.mxu0 %v10464_v17  ;;  %v10470_v44 = vand.u32 4294901760, %v9185_v38  ;;  %v3458_v17 = vld [vmem:[#allocation2 + $0x78] sm:$0xff] }
 0x1a7   : >> { %v9281_v60 = vsub.f32 %v10471_v28, %v10472_v58  ;;  %v10474_v25 = vand.u32 4294901760, %v10473_v37  ;;  %6354 = vmatprep.subr.bf16.mxu0 %v10475_v62  ;;  %v9299_v58 = vsub.f32 %v10478_v61, %v10479_v16  ;;  %v10480_v28 = vld [vmem:[#allocation58_spill] sm:$0xff]  ;;  %v10486_v61 = vand.u32 4294901760, %v9212_v32 }
 0x1a8   : >> { %v9275_v41 = vsub.f32 %v9185_v38, %v10470_v44  ;;  %5972 = vmatpush3.bf16.msra.mxu1 %v10466_v57  ;;  %v10476_v44 = vld [vmem:[#allocation56_spill] sm:$0xff]  ;;  %v10481_v33 = vand.u32 4294901760, %v10480_v28  ;;  %v9307_v57 = vpack.c.bf16 %v1662_v8, %v1655_v13  ;;  %v10488_v13 = vand.u32 4294901760, %v9222_v36 }
 0x1a9   : >> { %v9286_v1 = vsub.f32 %v10473_v37, %v10474_v25  ;;  %v10477_v38 = vand.u32 4294901760, %v10476_v44  ;;  %v10482_v25 = vld [vmem:[#allocation32_spill] sm:$0xff] }
 0x1aa   : >> { %v9304_v37 = vsub.f32 %v10480_v28, %v10481_v33  ;;  %5974 = vmatprep.subr.bf16.mxu1 %v10482_v25  ;;  %10483 = vst [vmem:[#allocation42_spill] sm:$0xff] %v9307_v57  ;;  %v9320_v33 = vsub.f32 %v9212_v32, %v10486_v61  ;;  %v10487_v28 = vand.u32 4294901760, %v9217_v54  ;;  %v9330_v26 = vsub.f32 %v9222_v36, %v10488_v13  ;;  %v10494_v61 = vld [vmem:[#allocation52_spill] sm:$0xff] }
 0x1ab   : >> { %v9294_v51 = vsub.f32 %v10476_v44, %v10477_v38  ;;  %v10484_v38 = vld [vmem:[#allocation59_spill] sm:$0xff]  ;;  %6356 = vmatpush3.bf16.msra.mxu0 %v10475_v62  ;;  %v9365_v62 = vand.u32 4294901760, %v3458_v17 }
 0x1ac   : >> { %v10485_v44 = vand.u32 4294901760, %v10484_v38  ;;  %v9325_v8 = vsub.f32 %v9217_v54, %v10487_v28  ;;  %10489 = vst [vmem:[#allocation25_spill] sm:$0xff] %v9330_v26  ;;  %v9342_v28 = vsub.f32 %v9075_v22, %v9116_v55  ;;  %6358 = vmatprep.subr.bf16.mxu0 %v10492_v27  ;;  %5976 = vmatpush3.bf16.msra.mxu1 %v10482_v25  ;;  %v10495_v22 = vld [vmem:[#allocation60_spill] sm:$0xff]  ;;  %v10497_v25 = vld [vmem:[#allocation61_spill] sm:$0xff] }
 0x1ad   : >> { %5978 = vmatprep.subr.bf16.mxu1 %v10494_v61  ;;  %v10496_v55 = vand.u32 4294901760, %v10495_v22  ;;  %v10498_v57 = vand.u32 4294901760, %v10497_v25 }
 0x1ae   : >> { %v9314_v10 = vsub.f32 %v10484_v38, %v10485_v44  ;;  %v10490_v38 = vand.u32 4294901760, %v9235_v23 }
 0x1af   : >> { %v9363_v13 = vsub.f32 %v10497_v25, %v10498_v57  ;;  %v10502_v57 = vand.u32 4294901760, %v9015_v63  ;;  %6360 = vmatpush3.bf16.msra.mxu0 %v10492_v27 }
 0x1b0   : >> { %v9336_v44 = vsub.f32 %v9235_v23, %v10490_v38  ;;  %v9351_v38 = vsub.f32 %v9096_v39, %v9143_v15  ;;  %v9370_v39 = vsub.f32 %v8818_v11, %v10499_v2  ;;  %v10500_v15 = vand.u32 4294901760, %v8852_v5  ;;  %6362 = vmatprep.subr.bf16.mxu0 %v9013_v46  ;;  %5980 = vmatpush3.bf16.msra.mxu1 %v10494_v61 }
 0x1b1   : >> { %v9385_v25 = vsub.f32 %v9015_v63, %v10502_v57  ;;  %v10503_v2 = vand.u32 4294901760, %v9018_v7  ;;  %v10506_v63 = vand.u32 4294901760, %v9025_v20  ;;  %5982 = vmatprep.subr.bf16.mxu1 %v9088_v24 }
 0x1b2   : >> { %10491 = vst [vmem:[#allocation24_spill] sm:$0xff] %v9336_v44  ;;  %10493 = vst [vmem:[#allocation26_spill] sm:$0xff] %v9351_v38  ;;  %v9358_v44 = vsub.f32 %v10495_v22, %v10496_v55  ;;  %v9375_v16 = vsub.f32 %v8852_v5, %v10500_v15  ;;  %v10501_v55 = vand.u32 4294901760, %v8961_v52  ;;  %v10504_v5 = vand.u32 4294901760, %v9021_v19 }
 0x1b3   : >> { %v9391_v11 = vsub.f32 %v9018_v7, %v10503_v2  ;;  %v9409_v7 = vsub.f32 %v9025_v20, %v10506_v63  ;;  %v9427_v20 = vsub.f32 %v9195_v35, %v9238_v42  ;;  %v9430_v63 = vsub.f32 %v3458_v17, %v9365_v62  ;;  %6364 = vmatpush3.bf16.msra.mxu0 %v9013_v46 }
 0x1b4   : >> { %v9380_v22 = vsub.f32 %v8961_v52, %v10501_v55  ;;  %v9396_v15 = vsub.f32 %v9021_v19, %v10504_v5  ;;  %v10505_v55 = vand.u32 4294901760, %v9023_v40  ;;  %v10507_v19 = vand.u32 4294901760, %v9124_v14  ;;  %6366 = vmatprep.subr.bf16.mxu0 %v9103_v6  ;;  %5984 = vmatpush3.bf16.msra.mxu1 %v9088_v24 }
 0x1b5   : >> { %v10508_v5 = vand.u32 4294901760, %v9126_v3  ;;  %v10509_v35 = vand.u32 4294901760, %v9342_v28  ;;  %5986 = vmatprep.subr.bf16.mxu1 %v9122_v56  ;;  %v10512_v24 = vand.u32 4294901760, %v9044_v18  ;;  %v10517_v52 = vand.u32 4294901760, %v9108_v9 }
 0x1b6   : >> { %v9402_v26 = vsub.f32 %v9023_v40, %v10505_v55  ;;  %v9415_v2 = vsub.f32 %v9124_v14, %v10507_v19  ;;  %v10511_v14 = vand.u32 4294901760, %v9039_v0  ;;  %v10518_v55 = vand.u32 4294901760, %v9113_v43 }
 0x1b7   : >> { %v9420_v40 = vsub.f32 %v9126_v3, %v10508_v5  ;;  %v1619_v57 = vsub.f32 %v9342_v28, %v10509_v35  ;;  %v10510_v5 = vand.u32 4294901760, %v9351_v38  ;;  %v10514_v3 = vand.u32 4294901760, %v9058_v30  ;;  %6368 = vmatpush3.bf16.msra.mxu0 %v9103_v6 }
 0x1b8   : >> { %v9458_v46 = vpack.c.bf16 %v10512_v24, %v10511_v14  ;;  %v9470_v27 = vpack.c.bf16 %v10518_v55, %v10517_v52  ;;  %v10520_v17 = vand.u32 4294901760, %v9157_v45  ;;  %v10521_v35 = vand.u32 4294901760, %v9166_v31  ;;  %6370 = vmatprep.subr.bf16.mxu0 %v9229_v29  ;;  %5988 = vmatpush3.bf16.msra.mxu1 %v9122_v56 }
 0x1b9   : >> { %v3563_v19 = vsub.f32 %v9351_v38, %v10510_v5  ;;  %v10515_v5 = vand.u32 4294901760, %v9063_v53  ;;  %v10523_v24 = vand.u32 4294901760, %v9171_v50  ;;  %v10524_v14 = vand.u32 4294901760, %v9179_v12  ;;  %5990 = vmatprep.subr.bf16.mxu1 %v9242_v59 }
 0x1ba   : >> { %10513 = vst [vmem:[#allocation30_spill] sm:$0xff] %v9458_v46  ;;  %10519 = vst [vmem:[#allocation39_spill] sm:$0xff] %v9470_v27  ;;  %v9476_v38 = vpack.c.bf16 %v10521_v35, %v10520_v17  ;;  %v10529_v52 = vand.u32 4294901760, %v9222_v36  ;;  %v10530_v55 = vand.u32 4294901760, %v9235_v23  ;;  %v10532_v35 = vand.u32 4294901760, %v9281_v60 }
 0x1bb   : >> { %v9464_v61 = vpack.c.bf16 %v10515_v5, %v10514_v3  ;;  %v9482_v46 = vpack.c.bf16 %v10524_v14, %v10523_v24  ;;  %v10526_v3 = vand.u32 4294901760, %v9212_v32  ;;  %v10527_v5 = vand.u32 4294901760, %v9217_v54  ;;  %6372 = vmatpush3.bf16.msra.mxu0 %v9229_v29 }
 0x1bc   : >> { %10522 = vst [vmem:[#allocation43_spill] sm:$0xff] %v9476_v38  ;;  %v9495_v17 = vpack.c.bf16 %v10530_v55, %v10529_v52  ;;  %v10533_v38 = vand.u32 4294901760, %v9286_v1  ;;  %v10535_v14 = vand.u32 4294901760, %v9294_v51  ;;  %v1620_v52 = vand.u32 4294901760, %v1619_v57  ;;  %6374 = vmatprep.subr.bf16.mxu0 %v9244_v49 }
 0x1bd   : >> { %10516 = vst [vmem:[#allocation47_spill] sm:$0xff] %v9464_v61  ;;  %10525 = vst [vmem:[#allocation44_spill] sm:$0xff] %v9482_v46  ;;  %v9488_v61 = vpack.c.bf16 %v10527_v5, %v10526_v3  ;;  %v10536_v46 = vand.u32 4294901760, %v9299_v58  ;;  %v10538_v5 = vand.u32 4294901760, %v9304_v37  ;;  %v10542_v55 = vand.u32 4294901760, %v9363_v13 }
 0x1be   : >> { %10531 = vst [vmem:[#allocation56_spill] sm:$0xff] %v9495_v17  ;;  %v9501_v24 = vpack.c.bf16 %v10533_v38, %v10532_v35  ;;  %v10541_v38 = vand.u32 4294901760, %v9358_v44  ;;  %v10550_v57 = vand.u32 4294901760, %v9427_v20  ;;  %v10560_v17 = vand.u32 4294901760, %v9430_v63 }
 0x1bf   : >> { %10528 = vst [vmem:[#allocation46_spill] sm:$0xff] %v9488_v61  ;;  %v9507_v3 = vpack.c.bf16 %v10536_v46, %v10535_v14  ;;  %v10539_v61 = vand.u32 4294901760, %v9314_v10  ;;  %v10544_v46 = vand.u32 4294901760, %v9370_v39  ;;  %v10545_v14 = vand.u32 4294901760, %v9375_v16 }
 0x1c0   : >> { %10534 = vst [vmem:[#allocation57_spill] sm:$0xff] %v9501_v24  ;;  %v9521_v35 = vpack.c.bf16 %v10542_v55, %v10541_v38  ;;  %v1629_v24 = vsub.f32 %v9427_v20, %v10550_v57  ;;  %v10551_v38 = vand.u32 4294901760, %v9391_v11  ;;  %v10552_v55 = vand.u32 4294901760, %v9396_v15 }
 0x1c1   : >> { %10537 = vst [vmem:[#allocation58_spill] sm:$0xff] %v9507_v3  ;;  %v9513_v27 = vpack.c.bf16 %v10539_v61, %v10538_v5  ;;  %v9527_v3 = vpack.c.bf16 %v10545_v14, %v10544_v46  ;;  %v10547_v61 = vand.u32 4294901760, %v9380_v22  ;;  %v10548_v5 = vand.u32 4294901760, %v9385_v25 }
 0x1c2   : >> { %10543 = vst [vmem:[#allocation60_spill] sm:$0xff] %v9521_v35  ;;  %v9543_v35 = vpack.c.bf16 %v10552_v55, %v10551_v38  ;;  %v10554_v46 = vand.u32 4294901760, %v9402_v26  ;;  %v10555_v14 = vand.u32 4294901760, %v9409_v7  ;;  %v3554_v57 = vand.u32 4294901760, %v9275_v41 }
 0x1c3   : >> { %10540 = vst [vmem:[#allocation59_spill] sm:$0xff] %v9513_v27  ;;  %10546 = vst [vmem:[#allocation61_spill] sm:$0xff] %v9527_v3  ;;  %v9533_v27 = vpack.c.bf16 %v10548_v5, %v10547_v61  ;;  %v10557_v61 = vand.u32 4294901760, %v9415_v2  ;;  %v10558_v5 = vand.u32 4294901760, %v9420_v40  ;;  %v3573_v56 = vsub.f32 %v9430_v63, %v10560_v17 }
 0x1c4   : >> { %10553 = vst [vmem:[#allocation66_spill] sm:$0xff] %v9543_v35  ;;  %v9549_v3 = vpack.c.bf16 %v10555_v14, %v10554_v46  ;;  %v10561_v38 = vand.u32 4294901760, %v9192_v4  ;;  %v10562_v55 = vand.u32 4294901760, %v9250_v48  ;;  %v10563_v46 = vand.u32 4294901760, %v9256_v34  ;;  %5570 = vmatmul.mubr.f32.vlgmr.msra.gmra.mrb[0].mxu0 %v3554_v57 }
 0x1c5   : >> { %10549 = vst [vmem:[#allocation65_spill] sm:$0xff] %v9533_v27  ;;  %v9555_v27 = vpack.c.bf16 %v10558_v5, %v10557_v61  ;;  %v3620_v61 = vand.u32 4294901760, %v9325_v8  ;;  %v3564_v5 = vand.u32 4294901760, %v3563_v19  ;;  %v10564_v41 = vand.u32 4294901760, %v9261_v21  ;;  %v10569_v19 = vld [vmem:[#allocation42_spill] sm:$0xff]  ;;  %6376 = vmatpush3.bf16.msra.mxu0 %v9244_v49 }
 0x1c6   : >> { %10556 = vst [vmem:[#allocation67_spill] sm:$0xff] %v9549_v3  ;;  %5114 = vmatmul.mubr.f32.vlgmr.msra.gmra.mrb[0].mxu1 %v10561_v38  ;;  %v6377_v14 = vpack.c.bf16 %v10563_v46, %v10562_v55  ;;  %v3613_v3 = vand.u32 4294901760, %v9320_v33  ;;  %v10565_v17 = vand.u32 4294901760, %v9266_v47  ;;  %v10566_v38 = vld [vmem:[#allocation25_spill] sm:$0xff]  ;;  %v10567_v48 = vand.u32 4294901760, %v9281_v60  ;;  %v10570_v55 = vld [vmem:[#allocation24_spill] sm:$0xff] }
 0x1c7   : >> { %10559 = vst [vmem:[#allocation68_spill] sm:$0xff] %v9555_v27  ;;  %5992 = vmatpush3.bf16.msra.mxu1 %v9242_v59  ;;  %v1683_v27 = vand.u32 4294901760, %v10566_v38  ;;  %v10568_v33 = vand.u32 4294901760, %v9286_v1  ;;  %v1690_v46 = vand.u32 4294901760, %v10570_v55  ;;  %v10571_v59 = vand.u32 4294901760, %v9294_v51  ;;  %5116 = vmatprep.mubr.f32.mxu1 %v1620_v52 }
 0x1c8   : >> { %v5997_v4 = vpack.c.bf16 %v10565_v17, %v10564_v41  ;;  %v3626_v34 = vsub.f32 %v9281_v60, %v10567_v48  ;;  %5994 = vmatprep.subr.bf16.mxu1 %v10569_v19  ;;  %v10572_v47 = vand.u32 4294901760, %v9299_v58  ;;  %v1630_v17 = vand.u32 4294901760, %v1629_v24  ;;  %5572 = vmatprep.mubr.f32.mxu0 %v3564_v5  ;;  %v10577_v5 = vld [vmem:[#allocation62_spill] sm:$0xff] }
 0x1c9   : >> { %v3633_v8 = vsub.f32 %v9286_v1, %v10568_v33  ;;  %v1696_v21 = vsub.f32 %v9294_v51, %v10571_v59  ;;  %v3574_v38 = vand.u32 4294901760, %v3573_v56  ;;  %v6381_v48 = vpack.c.bf16 %v3620_v61, %v3613_v3  ;;  %6378 = vmatprep.subr.bf16.mxu0 %v6377_v14 }
 0x1ca   : >> { %v1703_v41 = vsub.f32 %v9299_v58, %v10572_v47  ;;  %v10573_v33 = vand.u32 4294901760, %v9304_v37  ;;  %v10574_v55 = vand.u32 4294901760, %v9314_v10  ;;  %v3627_v59 = vand.u32 4294901760, %v3626_v34  ;;  %5117 = vmatmul.mubr.f32.gmra.mrb[2].mxu1 %v1630_v17  ;;  %6380 = vmatpush3.bf16.msra.mxu0 %v6377_v14 }
 0x1cb   : >> { %5996 = vmatpush3.bf16.msra.mxu1 %v10569_v19  ;;  %v3634_v52 = vand.u32 4294901760, %v3633_v8  ;;  %v10575_v24 = vand.u32 4294901760, %v9358_v44  ;;  %v10576_v49 = vand.u32 4294901760, %v9363_v13  ;;  %v6001_v57 = vpack.c.bf16 %v1690_v46, %v1683_v27  ;;  %5573 = vmatmul.mubr.f32.gmra.mrb[2].mxu0 %v3574_v38 }
 0x1cc   : >> { %v3640_v35 = vsub.f32 %v9304_v37, %v10573_v33  ;;  %v3647_v29 = vsub.f32 %v9314_v10, %v10574_v55  ;;  %5998 = vmatprep.subr.bf16.mxu1 %v5997_v4  ;;  %v1697_v61 = vand.u32 4294901760, %v1696_v21  ;;  %v1704_v47 = vand.u32 4294901760, %v1703_v41  ;;  %5151 = vmatprep.mubr.f32.mxu1 %v10577_v5 }
 0x1cd   : >> { %v1710_v56 = vsub.f32 %v9358_v44, %v10575_v24  ;;  %v1717_v3 = vsub.f32 %v9363_v13, %v10576_v49  ;;  %v10578_v8 = vand.u32 4294901760, %v9370_v39  ;;  %v10579_v55 = vand.u32 4294901760, %v9375_v16  ;;  %v10580_v49 = vld [vmem:[#allocation50_spill] sm:$0xff]  ;;  %6382 = vmatprep.subr.bf16.mxu0 %v6381_v48 }
 0x1ce   : >> { %v3641_v19 = vand.u32 4294901760, %v3640_v35  ;;  %v3648_v34 = vand.u32 4294901760, %v3647_v29  ;;  %5607 = vmatprep.mubr.f32.mxu0 %v10580_v49  ;;  %v6385_v27 = vpack.c.bf16 %v3634_v52, %v3627_v59  ;;  %v6005_v41 = vpack.c.bf16 %v1704_v47, %v1697_v61  ;;  %6384 = vmatpush3.bf16.msra.mxu0 %v6381_v48 }
 0x1cf   : >> { %v3654_v33 = vsub.f32 %v9370_v39, %v10578_v8  ;;  %v3661_v24 = vsub.f32 %v9375_v16, %v10579_v55  ;;  %6000 = vmatpush3.bf16.msra.mxu1 %v5997_v4  ;;  %v1711_v46 = vand.u32 4294901760, %v1710_v56  ;;  %v1718_v21 = vand.u32 4294901760, %v1717_v3 }
 0x1d0   : >> { %6002 = vmatprep.subr.bf16.mxu1 %v6001_v57  ;;  %v10581_v35 = vand.u32 4294901760, %v9380_v22  ;;  %v10582_v14 = vand.u32 4294901760, %v9385_v25  ;;  %v6389_v38 = vpack.c.bf16 %v3648_v34, %v3641_v19  ;;  %6386 = vmatprep.subr.bf16.mxu0 %v6385_v27  ;;  %v10583_v59 = vand.u32 4294901760, %v9391_v11 }
 0x1d1   : >> { %v3655_v8 = vand.u32 4294901760, %v3654_v33  ;;  %v3662_v55 = vand.u32 4294901760, %v3661_v24  ;;  %v6009_v4 = vpack.c.bf16 %v1718_v21, %v1711_v46  ;;  %v10584_v56 = vand.u32 4294901760, %v9396_v15 }
 0x1d2   : >> { %v1724_v29 = vsub.f32 %v9380_v22, %v10581_v35  ;;  %v1731_v17 = vsub.f32 %v9385_v25, %v10582_v14  ;;  %v3668_v52 = vsub.f32 %v9391_v11, %v10583_v59  ;;  %v10585_v35 = vand.u32 4294901760, %v9402_v26  ;;  %6388 = vmatpush3.bf16.msra.mxu0 %v6385_v27 }
 0x1d3   : >> { %6004 = vmatpush3.bf16.msra.mxu1 %v6001_v57  ;;  %v3675_v3 = vsub.f32 %v9396_v15, %v10584_v56  ;;  %v10586_v19 = vand.u32 4294901760, %v9409_v7  ;;  %v6393_v34 = vpack.c.bf16 %v3662_v55, %v3655_v8  ;;  %6390 = vmatprep.subr.bf16.mxu0 %v6389_v38  ;;  %v10587_v46 = vand.u32 4294901760, %v9415_v2 }
 0x1d4   : >> { %6006 = vmatprep.subr.bf16.mxu1 %v6005_v41  ;;  %v1725_v61 = vand.u32 4294901760, %v1724_v29  ;;  %v1732_v47 = vand.u32 4294901760, %v1731_v17  ;;  %v1738_v48 = vsub.f32 %v9402_v26, %v10585_v35  ;;  %v3669_v33 = vand.u32 4294901760, %v3668_v52  ;;  %v10591_v35 = vld [vmem:[#allocation64_spill] sm:$0xff] }
 0x1d5   : >> { %v1745_v57 = vsub.f32 %v9409_v7, %v10586_v19  ;;  %v3676_v24 = vand.u32 4294901760, %v3675_v3  ;;  %v3682_v21 = vsub.f32 %v9415_v2, %v10587_v46  ;;  %v10588_v29 = vand.u32 4294901760, %v9420_v40  ;;  %v10612_v19 = vld [vmem:[#allocation55_spill] sm:$0xff] }
 0x1d6   : >> { %v6013_v17 = vpack.c.bf16 %v1732_v47, %v1725_v61  ;;  %v1739_v59 = vand.u32 4294901760, %v1738_v48  ;;  %6392 = vmatpush3.bf16.msra.mxu0 %v6389_v38  ;;  %v6021_v3 = vpack.c.bf16 %v9044_v18, %v9039_v0  ;;  %v6405_v38 = vpack.c.bf16 %v9063_v53, %v9058_v30  ;;  %v10589_v61 = vld [vmem:[#allocation63_spill] sm:$0xff]  ;;  %v10590_v18 = vld [vmem:[#allocation36_spill] sm:$0xff]  ;;  %v10592_v30 = vld [vmem:[#allocation38_spill] sm:$0xff] }
 0x1d7   : >> { %6008 = vmatpush3.bf16.msra.mxu1 %v6005_v41  ;;  %v3689_v14 = vsub.f32 %v9420_v40, %v10588_v29  ;;  %v1746_v56 = vand.u32 4294901760, %v1745_v57  ;;  %6394 = vmatprep.subr.bf16.mxu0 %v6393_v34  ;;  %v6397_v27 = vpack.c.bf16 %v3676_v24, %v3669_v33  ;;  %v3683_v8 = vand.u32 4294901760, %v3682_v21  ;;  %v10611_v48 = vld [vmem:[#allocation33_spill] sm:$0xff]  ;;  %v10615_v33 = vld [vmem:[#allocation30_spill] sm:$0xff]  ;;  %v10617_v46 = vld [vmem:[#allocation47_spill] sm:$0xff] }
 0x1d8   : >> { %6010 = vmatprep.subr.bf16.mxu1 %v6009_v4  ;;  %v6409_v47 = vpack.c.bf16 %v9166_v31, %v9157_v45  ;;  %v6029_v0 = vpack.c.bf16 %v9179_v12, %v9171_v50  ;;  %v6413_v53 = vpack.c.bf16 %v9217_v54, %v9212_v32  ;;  %v6033_v31 = vpack.c.bf16 %v9235_v23, %v9222_v36  ;;  %v10593_v12 = vld [vmem:[#allocation34_spill] sm:$0xff]  ;;  %v10613_v57 = vld [vmem:[#allocation37_spill] sm:$0xff]  ;;  %v10618_v21 = vld [vmem:[#allocation39_spill] sm:$0xff] }
 0x1d9   : >> { %v3690_v41 = vand.u32 4294901760, %v3689_v14  ;;  %v6017_v55 = vpack.c.bf16 %v1746_v56, %v1739_v59  ;;  %v10594_v50 = vld [vmem:[#allocation54_spill] sm:$0xff]  ;;  %v6421_v45 = vpack.c.bf16 %v9314_v10, %v9304_v37  ;;  %v6041_v54 = vpack.c.bf16 %v9363_v13, %v9358_v44  ;;  %v10599_v37 = vld [vmem:[#allocation40_spill] sm:$0xff]  ;;  %v10602_v13 = vld [vmem:[#allocation51_spill] sm:$0xff] }
 0x1da   : >> { %6396 = vmatpush3.bf16.msra.mxu0 %v6393_v34  ;;  %v6425_v36 = vpack.c.bf16 %v9375_v16, %v9370_v39  ;;  %v6045_v32 = vpack.c.bf16 %v9385_v25, %v9380_v22  ;;  %v6429_v10 = vpack.c.bf16 %v9396_v15, %v9391_v11  ;;  %v6049_v23 = vpack.c.bf16 %v9409_v7, %v9402_v26  ;;  %v10598_v26 = vld [vmem:[#allocation53_spill] sm:$0xff]  ;;  %v10600_v16 = vld [vmem:[#allocation26_spill] sm:$0xff]  ;;  %v10601_v44 = vld [vmem:[#allocation28_spill] sm:$0xff] }
 0x1db   : >> { %6012 = vmatpush3.bf16.msra.mxu1 %v6009_v4  ;;  %6398 = vmatprep.subr.bf16.mxu0 %v6397_v27  ;;  %v6401_v52 = vpack.c.bf16 %v3690_v41, %v3683_v8  ;;  %v6025_v4 = vpack.c.bf16 %v9113_v43, %v9108_v9  ;;  %v6417_v9 = vpack.c.bf16 %v9286_v1, %v9281_v60  ;;  %v10596_v60 = vld [vmem:[#allocation35_spill] sm:$0xff]  ;;  %v10603_v39 = vand.u32 4294901760, %v10593_v12  ;;  %v10605_v25 = vld [vmem:[#allocation49_spill] sm:$0xff]  ;;  %v10608_v7 = vld [vmem:[#allocation32_spill] sm:$0xff] }
 0x1dc   : >> { %6014 = vmatprep.subr.bf16.mxu1 %v6013_v17  ;;  %v6037_v43 = vpack.c.bf16 %v9299_v58, %v9294_v51  ;;  %v6433_v1 = vpack.c.bf16 %v9420_v40, %v9415_v2  ;;  %v10595_v51 = vld [vmem:[#allocation29_spill] sm:$0xff]  ;;  %v10597_v58 = vld [vmem:[#allocation27_spill] sm:$0xff]  ;;  %v10604_v22 = vand.u32 4294901760, %v10594_v50  ;;  %v10609_v2 = vld [vmem:[#allocation48_spill] sm:$0xff]  ;;  %v10616_v24 = vand.u32 4294901760, %v10596_v60 }
 0x1dd   : >> { %v10606_v11 = vld [vmem:[#allocation45_spill] sm:$0xff]  ;;  %v10607_v15 = vld [vmem:[#allocation31_spill] sm:$0xff]  ;;  %v10610_v40 = vld [vmem:[#allocation52_spill] sm:$0xff]  ;;  %v10619_v29 = vand.u32 4294901760, %v9342_v28  ;;  %v10620_v14 = vand.u32 4294901760, %v10599_v37 }
 0x1de   : >> { %6400 = vmatpush3.bf16.msra.mxu0 %v6397_v27  ;;  %v10614_v34 = vld [vmem:[#allocation41_spill] sm:$0xff]  ;;  %v10622_v59 = vld [vmem:[#allocation43_spill] sm:$0xff]  ;;  %v10623_v56 = vld [vmem:[#allocation44_spill] sm:$0xff]  ;;  %v10624_v27 = vand.u32 4294901760, %v9427_v20 }
 0x1df   : >> { %6016 = vmatpush3.bf16.msra.mxu1 %v6013_v17  ;;  %6402 = vmatprep.subr.bf16.mxu0 %v6401_v52  ;;  %v10621_v17 = vand.u32 4294901760, %v10600_v16  ;;  %v10626_v8 = vld [vmem:[#allocation46_spill] sm:$0xff]  ;;  %v10627_v41 = vld [vmem:[#allocation56_spill] sm:$0xff] }
 0x1e0   : >> { %6018 = vmatprep.subr.bf16.mxu1 %v6017_v55 }
 0x1e2   : >> { %6404 = vmatpush3.bf16.msra.mxu0 %v6401_v52  ;;  %v10631_v52 = vld [vmem:[#allocation60_spill] sm:$0xff] }
 0x1e3   : >> { %6020 = vmatpush3.bf16.msra.mxu1 %v6017_v55  ;;  %6406 = vmatprep.subr.bf16.mxu0 %v6405_v38  ;;  %v10628_v55 = vld [vmem:[#allocation57_spill] sm:$0xff] }
 0x1e4   : >> { %6022 = vmatprep.subr.bf16.mxu1 %v6021_v3 }
 0x1e5   : >> { %5608 = vmatmul.mubr.f32.vlgmr.msra.gmra.mrb[0].mxu0 %v10591_v35 }
 0x1e6   : >> { %5152 = vmatmul.mubr.f32.vlgmr.msra.gmra.mrb[0].mxu1 %v10589_v61  ;;  %6408 = vmatpush3.bf16.msra.mxu0 %v6405_v38  ;;  %v10633_v38 = vld [vmem:[#allocation65_spill] sm:$0xff] }
 0x1e7   : >> { %6024 = vmatpush3.bf16.msra.mxu1 %v6021_v3  ;;  %5154 = vmatprep.mubr.f32.mxu1 %v10590_v18  ;;  %v10632_v3 = vld [vmem:[#allocation61_spill] sm:$0xff] }
 0x1e8   : >> { %6026 = vmatprep.subr.bf16.mxu1 %v6025_v4  ;;  %5610 = vmatprep.mubr.f32.mxu0 %v10592_v30 }
 0x1e9   : >> { %6410 = vmatprep.subr.bf16.mxu0 %v6409_v47  ;;  %5611 = vmatmul.mubr.f32.gmra.mrb[2].mxu0 %v9365_v62 }
 0x1ea   : >> { %5155 = vmatmul.mubr.f32.gmra.mrb[2].mxu1 %v9238_v42  ;;  %6412 = vmatpush3.bf16.msra.mxu0 %v6409_v47  ;;  %v10635_v47 = vld [vmem:[#allocation67_spill] sm:$0xff] }
 0x1eb   : >> { %6028 = vmatpush3.bf16.msra.mxu1 %v6025_v4  ;;  %5189 = vmatprep.mubr.f32.mxu1 %v10593_v12  ;;  %v10634_v4 = vld [vmem:[#allocation66_spill] sm:$0xff] }
 0x1ec   : >> { %6030 = vmatprep.subr.bf16.mxu1 %v6029_v0  ;;  %5645 = vmatprep.mubr.f32.mxu0 %v10594_v50 }
 0x1ed   : >> { %6414 = vmatprep.subr.bf16.mxu0 %v6413_v53 }
 0x1ee   : >> { %6416 = vmatpush3.bf16.msra.mxu0 %v6413_v53 }
 0x1ef   : >> { %6032 = vmatpush3.bf16.msra.mxu1 %v6029_v0  ;;  %6418 = vmatprep.subr.bf16.mxu0 %v6417_v9  ;;  %v10636_v0 = vld [vmem:[#allocation68_spill] sm:$0xff] }
 0x1f0   : >> { %6034 = vmatprep.subr.bf16.mxu1 %v6033_v31 }
 0x1f2   : >> { %6420 = vmatpush3.bf16.msra.mxu0 %v6417_v9 }
 0x1f3   : >> { %6036 = vmatpush3.bf16.msra.mxu1 %v6033_v31  ;;  %6422 = vmatprep.subr.bf16.mxu0 %v6421_v45 }
 0x1f4   : >> { %6038 = vmatprep.subr.bf16.mxu1 %v6037_v43 }
 0x1f6   : >> { %6424 = vmatpush3.bf16.msra.mxu0 %v6421_v45 }
 0x1f7   : >> { %6040 = vmatpush3.bf16.msra.mxu1 %v6037_v43  ;;  %6426 = vmatprep.subr.bf16.mxu0 %v6425_v36 }
 0x1f8   : >> { %6042 = vmatprep.subr.bf16.mxu1 %v6041_v54 }
 0x1fa   : >> { %6428 = vmatpush3.bf16.msra.mxu0 %v6425_v36 }
 0x1fb   : >> { %6044 = vmatpush3.bf16.msra.mxu1 %v6041_v54  ;;  %6430 = vmatprep.subr.bf16.mxu0 %v6429_v10 }
 0x1fc   : >> { %6046 = vmatprep.subr.bf16.mxu1 %v6045_v32 }
 0x1fe   : >> { %6432 = vmatpush3.bf16.msra.mxu0 %v6429_v10 }
 0x1ff   : >> { %6048 = vmatpush3.bf16.msra.mxu1 %v6045_v32  ;;  %6434 = vmatprep.subr.bf16.mxu0 %v6433_v1 }
 0x200   : >> { %6050 = vmatprep.subr.bf16.mxu1 %v6049_v23 }
 0x202   : >> { %6436 = vmatpush3.bf16.msra.mxu0 %v6433_v1 }
 0x203   : >> { %6052 = vmatpush3.bf16.msra.mxu1 %v6049_v23  ;;  %6438 = vmatprep.subr.bf16.mxu0 %v10597_v58 }
 0x204   : >> { %6054 = vmatprep.subr.bf16.mxu1 %v10595_v51 }
 0x205   : >> { %5646 = vmatmul.mubr.f32.vlgmr.msra.gmra.mrb[0].mxu0 %v10599_v37 }
 0x206   : >> { %5190 = vmatmul.mubr.f32.vlgmr.msra.gmra.mrb[0].mxu1 %v10596_v60  ;;  %6440 = vmatpush3.bf16.msra.mxu0 %v10597_v58 }
 0x207   : >> { %6056 = vmatpush3.bf16.msra.mxu1 %v10595_v51  ;;  %5192 = vmatprep.mubr.f32.mxu1 %v9342_v28  ;;  %v10625_v28 = vand.u32 4294901760, %v9430_v63 }
 0x208   : >> { %6058 = vmatprep.subr.bf16.mxu1 %v10598_v26  ;;  %5648 = vmatprep.mubr.f32.mxu0 %v10600_v16 }
 0x209   : >> { %6442 = vmatprep.subr.bf16.mxu0 %v10601_v44  ;;  %5649 = vmatmul.mubr.f32.gmra.mrb[2].mxu0 %v9430_v63  ;;  %v10630_v63 = vld [vmem:[#allocation59_spill] sm:$0xff] }
 0x20a   : >> { %5193 = vmatmul.mubr.f32.gmra.mrb[2].mxu1 %v9427_v20  ;;  %6444 = vmatpush3.bf16.msra.mxu0 %v10601_v44  ;;  %v10629_v20 = vld [vmem:[#allocation58_spill] sm:$0xff] }
 0x20b   : >> { %6060 = vmatpush3.bf16.msra.mxu1 %v10598_v26  ;;  %5227 = vmatprep.mubr.f32.mxu1 %v10603_v39 }
 0x20c   : >> { %6062 = vmatprep.subr.bf16.mxu1 %v10602_v13  ;;  %5683 = vmatprep.mubr.f32.mxu0 %v10604_v22 }
 0x20d   : >> { %6446 = vmatprep.subr.bf16.mxu0 %v10605_v25 }
 0x20e   : >> { %6448 = vmatpush3.bf16.msra.mxu0 %v10605_v25 }
 0x20f   : >> { %6064 = vmatpush3.bf16.msra.mxu1 %v10602_v13  ;;  %6450 = vmatprep.subr.bf16.mxu0 %v10607_v15 }
 0x210   : >> { %6066 = vmatprep.subr.bf16.mxu1 %v10606_v11 }
 0x212   : >> { %6452 = vmatpush3.bf16.msra.mxu0 %v10607_v15 }
 0x213   : >> { %6068 = vmatpush3.bf16.msra.mxu1 %v10606_v11  ;;  %6454 = vmatprep.subr.bf16.mxu0 %v10609_v2 }
 0x214   : >> { %6070 = vmatprep.subr.bf16.mxu1 %v10608_v7 }
 0x216   : >> { %6456 = vmatpush3.bf16.msra.mxu0 %v10609_v2 }
 0x217   : >> { %6072 = vmatpush3.bf16.msra.mxu1 %v10608_v7  ;;  %6458 = vmatprep.subr.bf16.mxu0 %v10611_v48 }
 0x218   : >> { %6074 = vmatprep.subr.bf16.mxu1 %v10610_v40 }
 0x21a   : >> { %6460 = vmatpush3.bf16.msra.mxu0 %v10611_v48 }
 0x21b   : >> { %6076 = vmatpush3.bf16.msra.mxu1 %v10610_v40  ;;  %6462 = vmatprep.subr.bf16.mxu0 %v9103_v6 }
 0x21c   : >> { %6078 = vmatprep.subr.bf16.mxu1 %v10612_v19 }
 0x21e   : >> { %6464 = vmatpush3.bf16.msra.mxu0 %v9103_v6 }
 0x21f   : >> { %6080 = vmatpush3.bf16.msra.mxu1 %v10612_v19  ;;  %6466 = vmatprep.subr.bf16.mxu0 %v10614_v34 }
 0x220   : >> { %6082 = vmatprep.subr.bf16.mxu1 %v10613_v57 }
 0x222   : >> { %6468 = vmatpush3.bf16.msra.mxu0 %v10614_v34 }
 0x223   : >> { %6084 = vmatpush3.bf16.msra.mxu1 %v10613_v57  ;;  %6470 = vmatprep.subr.bf16.mxu0 %v10617_v46 }
 0x224   : >> { %6086 = vmatprep.subr.bf16.mxu1 %v10615_v33 }
 0x225   : >> { %5684 = vmatmul.mubr.f32.vlgmr.msra.gmra.mrb[0].mxu0 %v10620_v14 }
 0x226   : >> { %5228 = vmatmul.mubr.f32.vlgmr.msra.gmra.mrb[0].mxu1 %v10616_v24  ;;  %6472 = vmatpush3.bf16.msra.mxu0 %v10617_v46 }
 0x227   : >> { %6088 = vmatpush3.bf16.msra.mxu1 %v10615_v33  ;;  %5230 = vmatprep.mubr.f32.mxu1 %v10619_v29 }
 0x228   : >> { %6090 = vmatprep.subr.bf16.mxu1 %v10618_v21  ;;  %5686 = vmatprep.mubr.f32.mxu0 %v10621_v17 }
 0x229   : >> { %6474 = vmatprep.subr.bf16.mxu0 %v10622_v59  ;;  %5687 = vmatmul.mubr.f32.gmra.mrb[2].mxu0 %v10625_v28 }
 0x22a   : >> { %5231 = vmatmul.mubr.f32.gmra.mrb[2].mxu1 %v10624_v27  ;;  %6476 = vmatpush3.bf16.msra.mxu0 %v10622_v59 }
 0x22b   : >> { %6092 = vmatpush3.bf16.msra.mxu1 %v10618_v21  ;;  %5265 = vmatprep.mubr.f32.mxu1 %v10577_v5 }
 0x22c   : >> { %6094 = vmatprep.subr.bf16.mxu1 %v10623_v56  ;;  %5721 = vmatprep.mubr.f32.mxu0 %v10580_v49 }
 0x22d   : >> { %6478 = vmatprep.subr.bf16.mxu0 %v10626_v8 }
 0x22e   : >> { %6480 = vmatpush3.bf16.msra.mxu0 %v10626_v8 }
 0x22f   : >> { %6096 = vmatpush3.bf16.msra.mxu1 %v10623_v56  ;;  %6482 = vmatprep.subr.bf16.mxu0 %v10628_v55 }
 0x230   : >> { %6098 = vmatprep.subr.bf16.mxu1 %v10627_v41 }
 0x232   : >> { %6484 = vmatpush3.bf16.msra.mxu0 %v10628_v55 }
 0x233   : >> { %6100 = vmatpush3.bf16.msra.mxu1 %v10627_v41  ;;  %6486 = vmatprep.subr.bf16.mxu0 %v10630_v63 }
 0x234   : >> { %6102 = vmatprep.subr.bf16.mxu1 %v10629_v20 }
 0x236   : >> { %6488 = vmatpush3.bf16.msra.mxu0 %v10630_v63 }
 0x237   : >> { %6104 = vmatpush3.bf16.msra.mxu1 %v10629_v20  ;;  %6490 = vmatprep.subr.bf16.mxu0 %v10632_v3 }
 0x238   : >> { %6106 = vmatprep.subr.bf16.mxu1 %v10631_v52 }
 0x23a   : >> { %6492 = vmatpush3.bf16.msra.mxu0 %v10632_v3 }
 0x23b   : >> { %6108 = vmatpush3.bf16.msra.mxu1 %v10631_v52  ;;  %6494 = vmatprep.subr.bf16.mxu0 %v10634_v4 }
 0x23c   : >> { %6110 = vmatprep.subr.bf16.mxu1 %v10633_v38 }
 0x23e   : >> { %6496 = vmatpush3.bf16.msra.mxu0 %v10634_v4 }
 0x23f   : >> { %6112 = vmatpush3.bf16.msra.mxu1 %v10633_v38  ;;  %6498 = vmatprep.subr.bf16.mxu0 %v10636_v0 }
 0x240   : >> { %6114 = vmatprep.subr.bf16.mxu1 %v10635_v47 }
 0x242   : >> { %6500 = vmatpush3.bf16.msra.mxu0 %v10636_v0 }
 0x243   : >> { %6116 = vmatpush3.bf16.msra.mxu1 %v10635_v47  ;;  %6502 = vmatprep.subr.bf16.mxu0 %v10597_v58 }
 0x244   : >> { %6118 = vmatprep.subr.bf16.mxu1 %v10595_v51 }
 0x245   : >> { %5722 = vmatmul.mubr.f32.vlgmr.msra.gmra.mrb[0].mxu0 %v10591_v35 }
 0x246   : >> { %5266 = vmatmul.mubr.f32.vlgmr.msra.gmra.mrb[0].mxu1 %v10589_v61  ;;  %6504 = vmatpush3.bf16.msra.mxu0 %v10597_v58 }
 0x247   : >> { %6120 = vmatpush3.bf16.msra.mxu1 %v10595_v51  ;;  %5268 = vmatprep.mubr.f32.mxu1 %v10590_v18 }
 0x248   : >> { %6122 = vmatprep.subr.bf16.mxu1 %v10598_v26  ;;  %5724 = vmatprep.mubr.f32.mxu0 %v10592_v30 }
 0x249   : >> { %6506 = vmatprep.subr.bf16.mxu0 %v10601_v44  ;;  %5725 = vmatmul.mubr.f32.gmra.mrb[2].mxu0 %v9365_v62 }
 0x24a   : >> { %5269 = vmatmul.mubr.f32.gmra.mrb[2].mxu1 %v9238_v42  ;;  %6508 = vmatpush3.bf16.msra.mxu0 %v10601_v44 }
 0x24b   : >> { %6124 = vmatpush3.bf16.msra.mxu1 %v10598_v26  ;;  %5303 = vmatprep.mubr.f32.mxu1 %v10577_v5 }
 0x24c   : >> { %6126 = vmatprep.subr.bf16.mxu1 %v10602_v13  ;;  %5759 = vmatprep.mubr.f32.mxu0 %v10580_v49 }
 0x24d   : >> { %6510 = vmatprep.subr.bf16.mxu0 %v10605_v25 }
 0x24e   : >> { %6512 = vmatpush3.bf16.msra.mxu0 %v10605_v25 }
 0x24f   : >> { %6128 = vmatpush3.bf16.msra.mxu1 %v10602_v13  ;;  %6514 = vmatprep.subr.bf16.mxu0 %v10607_v15 }
 0x250   : >> { %6130 = vmatprep.subr.bf16.mxu1 %v10606_v11 }
 0x252   : >> { %6516 = vmatpush3.bf16.msra.mxu0 %v10607_v15 }
 0x253   : >> { %6132 = vmatpush3.bf16.msra.mxu1 %v10606_v11  ;;  %6518 = vmatprep.subr.bf16.mxu0 %v10609_v2 }
 0x254   : >> { %6134 = vmatprep.subr.bf16.mxu1 %v10608_v7 }
 0x256   : >> { %6520 = vmatpush3.bf16.msra.mxu0 %v10609_v2 }
 0x257   : >> { %6136 = vmatpush3.bf16.msra.mxu1 %v10608_v7  ;;  %6522 = vmatprep.subr.bf16.mxu0 %v10611_v48 }
 0x258   : >> { %6138 = vmatprep.subr.bf16.mxu1 %v10610_v40 }
 0x25a   : >> { %6524 = vmatpush3.bf16.msra.mxu0 %v10611_v48 }
 0x25b   : >> { %6140 = vmatpush3.bf16.msra.mxu1 %v10610_v40  ;;  %6526 = vmatprep.subr.bf16.mxu0 %v9103_v6 }
 0x25c   : >> { %6142 = vmatprep.subr.bf16.mxu1 %v10612_v19 }
 0x25e   : >> { %6528 = vmatpush3.bf16.msra.mxu0 %v9103_v6 }
 0x25f   : >> { %6144 = vmatpush3.bf16.msra.mxu1 %v10612_v19  ;;  %6530 = vmatprep.subr.bf16.mxu0 %v10614_v34 }
 0x260   : >> { %6146 = vmatprep.subr.bf16.mxu1 %v10613_v57 }
 0x262   : >> { %6532 = vmatpush3.bf16.msra.mxu0 %v10614_v34 }
 0x263   : >> { %6148 = vmatpush3.bf16.msra.mxu1 %v10613_v57 }
 0x265   : >> { %5760 = vmatmul.mubr.f32.vlgmr.msra.gmra.mrb[0].mxu0 %v10591_v35 }
 0x266   : >> { %5304 = vmatmul.mubr.f32.vlgmr.msra.gmra.mrb[0].mxu1 %v10589_v61  ;;  %5762 = vmatprep.mubr.f32.mxu0 %v10592_v30 }
 0x267   : >> { %5306 = vmatprep.mubr.f32.mxu1 %v10590_v18 }
 0x269   : >> { %5763 = vmatmul.mubr.f32.gmra.mrb[2].mxu0 %v9365_v62 }
 0x26a   : >> { %5307 = vmatmul.mubr.f32.gmra.mrb[2].mxu1 %v9238_v42 }
 0x338   : >> { %v5761_v49 = vpop.f32.mrb[0].mxu0 }
 0x339   : >> { %v5305_v5 = vpop.f32.mrb[0].mxu1  ;;  %v4207_v31 = vpop.f32.mrb[1].mxu0 }
 0x33a   : >> { %v2263_v6 = vpop.f32.mrb[1].mxu1  ;;  %v6533_v53 = vadd.f32 %v5761_v49, %v5305_v5 }
 0x33b   : >> { %v6534_v61 = vadd.f32 %v4207_v31, %v2263_v6  ;;  %181 = sbr.rel (!%p179_p6) target bundleno = 68 (0x44), region = 77 }
 0x33c   : >> { %4236 = vst [vmem:[%s4234_s30 + $0x8] sm:$0xff] %v6533_v53  ;;  %v5764_v18 = vpop.f32.mrb[2].mxu0 }
 0x33d   : >> { %v5308_v12 = vpop.f32.mrb[2].mxu1  ;;  %4235 = vst [vmem:[%s4234_s30] sm:$0xff] %v6534_v61  ;;  %v4219_v30 = vpop.f32.mrb[3].mxu0 }
 0x33e   : >> { %v2275_v50 = vpop.f32.mrb[3].mxu1  ;;  %v6535_v35 = vadd.f32 %v5764_v18, %v5308_v12 }
 0x33f   : >> { %v6536_v9 = vadd.f32 %v4219_v30, %v2275_v50 }
 0x340   : >> { %4238 = vst [vmem:[%s4234_s30 + $0x18] sm:$0xff] %v6535_v35 }
 0x341   : >> { %4237 = vst [vmem:[%s4234_s30 + $0x10] sm:$0xff] %v6536_v9 }
 0x342   : > { %6753 = shalt.err (!%p6750_p8)
}
 0x343   : > { %s6754_s14 = scalar_lea.hbm %s9821_s6, 2048  ;;  %s6758_s24 = scalar_lea.hbm %s9872_s2, 4096 }
 0x344   : > { %p6755_p11 = scmp.ne.s32.totalorder %s9821_s6, %s6754_s14  ;;  %p6759_p0 = scmp.lt.u32.totalorder %s9821_s6, %s9872_s2 }
 0x345   : > { %p6760_p5 = scmp.lt.u32.totalorder %s6758_s24, %s6754_s14  ;;  %p6762_p9 = scmp.lt.u32.totalorder %s6754_s14, %s9821_s6 }
 0x346   : > { %p6756_p13 = pnand %p6755_p11, %p10637_p10 }
 0x347   : > { %p6761_p6 = por %p6760_p5, %p6759_p0 }
 0x348   : > { %p6757_p1 = pneg %p6756_p13 }
 0x349   : > { %p6763_p12 = por %p6762_p9, %p6761_p6 }
 0x34b   : > { %p6764_p2 = pnand %p6763_p12, %p6757_p1 }
 0x34d   : > { %6767 = shalt.err (!%p6764_p2)
}
 0x34e   : > { %s6821_s27 = smov 128   ;;  %s6822_s28 = smov 8  }
 0x34f   : > { %6653 = dma.vmem_to_hbm [thread:$0]  (%p10637_p10), %s9825_s7, 2048, %s9821_s6, %s9829_s8, %s6821_s27, %s6821_s27, %s6822_s28  }
 0x350 PF: > { %p6665_p3 = scmp.ge.s32.totalorder %s6810_s12, 2  ;;  %s4269_s29 = sand.u32 1, %s6798_s9  }
 0x351   : > { %p10638_p4 = scmp.ne.s32.totalorder %s10171_s20, 0  ;;  %s4270_s30 = scalar_lea.sflag [#allocation4], %s4269_s29 }
 0x353   : > { %p6660_p7 = pnand %p6665_p3, %p10638_p4 }
 0x355   : > { %6793 = dma.done.wait (!%p6660_p7), %s4270_s30, 2048  }
 0x356   : > { %6795 = vsyncadd (!%p6660_p7), %s4270_s30, 4294965248  ;;  %p13_p8 = scmp.ge.s32.totalorder %s6863_s15, 4   ;;  %s10639_s9 = smov %s6802_s10 }
 0x357   : > { %s10640_s10 = smov %s6806_s11  ;;  %s10641_s11 = smov %s6874_s18 }
 0x358   : > { %s10642_s12 = smov %s6863_s15  ;;  %15 = sbr.rel (!%p13_p8) target bundleno = 4 (0x4), region = 88 }
 0x35f   :  { %4275 = vsyncpa [#allocation3], 1 }
 0x360   :  { %4277 = vsyncpa [#allocation3 + $0x1], 1 }
 0x361   :  { %4278 = vsyncpa [#allocation4], 1 }
 0x362   :  { %4280 = vsyncpa [#allocation4 + $0x1], 1 }

</bundles_post_ra>
